<compile_context>
chip_gen: v7x
topology: tpu7x:2x2x1
jax: 0.10.0
libtpu: 0.0.40
codegen_flags: <defaults>
</compile_context>

<pallas_src>
import jax
import jax.numpy as jnp
from jax.experimental import pallas as pl
from jax.experimental.pallas import tpu as pltpu


# ------------------------- kernel-side helpers -------------------------

def _l2norm(h):
    # torch: h.norm(2, 1, keepdim=True)
    return jnp.sqrt(jnp.sum(h * h, axis=1, keepdims=True))


def _ff_layer(h, w_t, b):
    # Layer.forward: x_dir = x / (||x||_2 + 0.02); relu(x_dir @ W.T + b)
    inv = pl.reciprocal(_l2norm(h) + 0.02, approx=True)   # per-row scalar (EUP)
    h_dir = (h * inv).astype(w_t.dtype)                   # bf16 for the MXU
    z = jnp.dot(h_dir, w_t, preferred_element_type=jnp.float32) + b
    return jnp.maximum(z, 0.0)


def net_kernel(x_ref, w1_ref, b1_ref, w2_ref, b2_ref, w3_ref, b3_ref,
               w4_ref, b4_ref, wf2_ref, wf3_ref, wf4_ref, bf_ref, o_ref):
    x = x_ref[...]                                         # (tb, INp) f32
    n1 = _ff_layer(x, w1_ref[...], b1_ref[...])
    n2 = _ff_layer(n1, w2_ref[...], b2_ref[...])
    n3 = _ff_layer(n2, w3_ref[...], b3_ref[...])
    n4 = _ff_layer(n3, w4_ref[...], b4_ref[...])

    # Net.forward quirk, reproduced exactly: n2 is normalized first, and the
    # divisors for n3 and n4 use the norm of the *already normalized* n2.
    inv2 = pl.reciprocal(_l2norm(n2) + 0.01, approx=True)      # (tb, 1)
    n2d = n2 * inv2
    inv_d = pl.reciprocal(_l2norm(n2d) + 0.01, approx=True)    # (tb, 1)

    # fc(cat(n2d, n3/d, n4/d)) == n2d@Wf2 + (n3@Wf3 + n4@Wf4) * (1/d) + b
    wf2 = wf2_ref[...]
    wf3 = wf3_ref[...]
    wf4 = wf4_ref[...]
    wd = wf2.dtype
    t2 = jnp.dot(n2d.astype(wd), wf2, preferred_element_type=jnp.float32)
    t34 = (jnp.dot(n3.astype(wd), wf3, preferred_element_type=jnp.float32)
           + jnp.dot(n4.astype(wd), wf4, preferred_element_type=jnp.float32))
    o_ref[...] = t2 + t34 * inv_d + bf_ref[...]


# ------------------------------ wrapper --------------------------------

def _round_up(n, m):
    return ((n + m - 1) // m) * m


def _pad2(a, rows, cols):
    pr, pc = rows - a.shape[0], cols - a.shape[1]
    if pr == 0 and pc == 0:
        return a
    return jnp.pad(a, ((0, pr), (0, pc)))


def _physical_vmem_bytes():
    try:
        info = pltpu.get_tpu_info()
        v = int(getattr(info, "vmem_capacity_bytes", 0) or 0)
        if v > 0:
            return v
    except Exception:
        pass
    return 64 << 20   # conservative: v7x per-TensorCore physical VMEM


def net_forward(x_img, params, *, tb=None, weight_dtype=jnp.bfloat16,
                vmem_limit_bytes=None):
    """x_img: (B, C, H, W) float32 (NCHW, like the torch module)."""
    x = x_img.reshape(x_img.shape[0], -1).astype(jnp.float32)  # torch.flatten(x, 1)
    B, IN = x.shape
    H = params["w1"].shape[0]
    OUT = params["wfc"].shape[0]

    # Lane-align every contraction / output dimension.  Zero-padded weight
    # columns + zero bias entries -> ReLU outputs 0 on padded columns, so all
    # L2 norms and the readout are exactly preserved.
    INp = _round_up(IN, 128)
    Hp = _round_up(H, 128)
    OUTP = _round_up(OUT, 128)

    phys_vmem = _physical_vmem_bytes()
    if tb is None:
        # 512-row tiles on 128 MiB-VMEM parts (v5e/v6e); 256 on v7x (64 MiB).
        tb = 512 if phys_vmem >= (100 << 20) else 256

    # Batch tiling: pad instead of asserting; collapse to one grid step when
    # the whole (8-aligned) batch fits in a single tile.  Zero rows are safe
    # (0 / (0 + eps) = 0 propagates) and are sliced off at the end.
    B8 = _round_up(B, 8)
    tb_eff = B8 if B8 <= tb else _round_up(tb, 8)
    B_pad = _round_up(B, tb_eff)
    xp = _pad2(x, B_pad, INp)   # no-op (no extra HBM traffic) if already aligned

    # pre-transpose + pad + bf16-cast weights (glue): torch.mm(x, W.T) == x @ W_t
    wd = weight_dtype
    w1t = _pad2(params["w1"].T, INp, Hp).astype(wd)          # (INp, Hp)
    w2t = _pad2(params["w2"].T, Hp, Hp).astype(wd)
    w3t = _pad2(params["w3"].T, Hp, Hp).astype(wd)
    w4t = _pad2(params["w4"].T, Hp, Hp).astype(wd)
    b1p = _pad2(params["b1"].astype(jnp.float32), 1, Hp)
    b2p = _pad2(params["b2"].astype(jnp.float32), 1, Hp)
    b3p = _pad2(params["b3"].astype(jnp.float32), 1, Hp)
    b4p = _pad2(params["b4"].astype(jnp.float32), 1, Hp)
    wfc = params["wfc"]                                      # (OUT, 3H)
    wf2 = _pad2(wfc[:, :H].T, Hp, OUTP).astype(wd)           # (Hp, OUTP)
    wf3 = _pad2(wfc[:, H:2 * H].T, Hp, OUTP).astype(wd)
    wf4 = _pad2(wfc[:, 2 * H:].T, Hp, OUTP).astype(wd)
    bfp = _pad2(params["bfc"].astype(jnp.float32), 1, OUTP)  # (1, OUTP)

    grid = B_pad // tb_eff
    wbytes = int((INp * Hp + 3 * Hp * Hp + 3 * Hp * OUTP) * jnp.dtype(wd).itemsize
                 + (4 * Hp + OUTP) * 4)
    io_bytes = int(B_pad * (INp + OUTP) * 4)

    cost = pl.CostEstimate(
        flops=int(2 * B_pad * (INp * Hp + 3 * Hp * Hp + 3 * Hp * OUTP)),
        transcendentals=int(8 * B_pad),       # 6 norms + approx reciprocals / row
        bytes_accessed=int(wbytes + io_bytes),
    )

    x_spec = pl.BlockSpec((tb_eff, INp), lambda i: (i, 0))
    out_spec = pl.BlockSpec((tb_eff, OUTP), lambda i: (i, 0))

    def _call(single_buffer_weights):
        def wspec(shape):
            # Resident weights: constant index_map; single-buffer when supported
            # so VMEM holds exactly one copy per TensorCore.
            if single_buffer_weights:
                return pl.BlockSpec(shape, lambda i: (0, 0),
                                    pipeline_mode=pl.Buffered(1))
            return pl.BlockSpec(shape, lambda i: (0, 0))

        weight_buf = 1 if single_buffer_weights else 2
        # double-buffered x/out tiles + ~6 live f32 activation slabs in-body
        act_bytes = tb_eff * (2 * INp + 6 * Hp + 2 * OUTP) * 4
        if vmem_limit_bytes is not None:
            limit = int(vmem_limit_bytes)
        else:
            need = int((weight_buf * wbytes + act_bytes) * 1.2) + (4 << 20)
            limit = max(32 << 20, need)
            limit = min(limit, int(phys_vmem * 0.9))

        return pl.pallas_call(
            net_kernel,
            out_shape=jax.ShapeDtypeStruct((B_pad, OUTP), jnp.float32),
            grid=(grid,),
            in_specs=[
                x_spec,                 # x tile
                wspec((INp, Hp)),       # W1.T
                wspec((1, Hp)),         # b1
                wspec((Hp, Hp)),        # W2.T
                wspec((1, Hp)),         # b2
                wspec((Hp, Hp)),        # W3.T
                wspec((1, Hp)),         # b3
                wspec((Hp, Hp)),        # W4.T
                wspec((1, Hp)),         # b4
                wspec((Hp, OUTP)),      # Wfc.T slab for n2
                wspec((Hp, OUTP)),      # Wfc.T slab for n3
                wspec((Hp, OUTP)),      # Wfc.T slab for n4
                wspec((1, OUTP)),       # bfc (padded)
            ],
            out_specs=out_spec,
            compiler_params=pltpu.CompilerParams(
                dimension_semantics=("parallel",),
                vmem_limit_bytes=limit),
            cost_estimate=cost,
        )(xp, w1t, b1p, w2t, b2p, w3t, b3p, w4t, b4p, wf2, wf3, wf4, bfp)

    try:
        out = _call(True)
    except Exception:
        # pipeline_mode=pl.Buffered(1) unsupported on this JAX build; fall back
        # to default (double-buffered) resident weights.
        out = _call(False)

    return out[:B, :OUT]


# ---------------------- pure-JAX reference (check) ----------------------

def net_reference(x_img, params, weight_dtype=jnp.bfloat16):
    """Torch-faithful structure (concat + fc), same matmul operand precision."""
    x = x_img.reshape(x_img.shape[0], -1).astype(jnp.float32)

    def mm(a, w):   # torch.mm(a, w.T) with bf16 operands / f32 accumulation
        return jnp.dot(a.astype(weight_dtype), w.T.astype(weight_dtype),
                       preferred_element_type=jnp.float32)

    def layer(h, w, b):
        hd = h / (_l2norm(h) + 0.02)
        return jnp.maximum(mm(hd, w) + b, 0.0)

    n1 = layer(x, params["w1"], params["b1"])
    n2 = layer(n1, params["w2"], params["b2"])
    n3 = layer(n2, params["w3"], params["b3"])
    n4 = layer(n3, params["w4"], params["b4"])
    n2 = n2 / (_l2norm(n2) + 0.01)
    d = _l2norm(n2) + 0.01
    n3 = n3 / d
    n4 = n4 / d
    n5 = jnp.concatenate((n2, n3, n4), axis=1)
    return mm(n5, params["wfc"]) + params["bfc"]


# ------------------------------- main ----------------------------------

def _linear_init(key, out_f, in_f):
    # deterministic PyTorch-Linear-style init: U(-1/sqrt(in), 1/sqrt(in))
    kw, kb = jax.random.split(key)
    bound = 1.0 / float(in_f) ** 0.5
    w = jax.random.uniform(kw, (out_f, in_f), jnp.float32, -bound, bound)
    b = jax.random.uniform(kb, (1, out_f), jnp.float32, -bound, bound)
    return w, b


if __name__ == "__main__":
    # Small shapes consistent with the module: MNIST-like 1x28x28 input (784
    # features). Hidden width scaled down 2000 -> 256 for this synthetic run;
    # fc is 3*H -> 10, mirroring the 6000 -> 10 readout structure.
    B, C, HH, WW = 16, 1, 28, 28
    IN, HID, OUT = C * HH * WW, 256, 10

    root = jax.random.PRNGKey(0)
    k_x, k1, k2, k3, k4, k5 = jax.random.split(root, 6)

    x_img = jax.random.normal(k_x, (B, C, HH, WW), jnp.float32)

    w1, b1 = _linear_init(k1, HID, IN)
    w2, b2 = _linear_init(k2, HID, HID)
    w3, b3 = _linear_init(k3, HID, HID)
    w4, b4 = _linear_init(k4, HID, HID)
    wfc, bfc = _linear_init(k5, OUT, 3 * HID)

    params = dict(w1=w1, b1=b1, w2=w2, b2=b2, w3=w3, b3=b3, w4=w4, b4=b4,
                  wfc=wfc, bfc=bfc)

    out = net_forward(x_img, params)
    out = jax.block_until_ready(out)

    ref = net_reference(x_img, params)
    assert out.shape == (B, OUT), out.shape
    # bf16 matmuls + approx reciprocals: compare at bf16-appropriate tolerance.
    assert jnp.allclose(out, ref, rtol=1e-2, atol=1e-2), (
        float(jnp.max(jnp.abs(out - ref))))

    print("KERNEL_OK")
</pallas_src>

<mosaic_0001>
module attributes {stable_mosaic.version = 11 : i64} {
  func.func @net_kernel(%arg0: i32, %arg1: memref<16x896xf32, #tpu.memory_space<vmem>>, %arg2: memref<896x256xbf16, #tpu.memory_space<vmem>>, %arg3: memref<1x256xf32, #tpu.memory_space<vmem>>, %arg4: memref<256x256xbf16, #tpu.memory_space<vmem>>, %arg5: memref<1x256xf32, #tpu.memory_space<vmem>>, %arg6: memref<256x256xbf16, #tpu.memory_space<vmem>>, %arg7: memref<1x256xf32, #tpu.memory_space<vmem>>, %arg8: memref<256x256xbf16, #tpu.memory_space<vmem>>, %arg9: memref<1x256xf32, #tpu.memory_space<vmem>>, %arg10: memref<256x128xbf16, #tpu.memory_space<vmem>>, %arg11: memref<256x128xbf16, #tpu.memory_space<vmem>>, %arg12: memref<256x128xbf16, #tpu.memory_space<vmem>>, %arg13: memref<1x128xf32, #tpu.memory_space<vmem>>, %arg14: memref<16x128xf32, #tpu.memory_space<vmem>>) attributes {dimension_semantics = [#tpu.dimension_semantics<parallel>], iteration_bounds = array<i64: 1>, scalar_prefetch = 0 : i64, scratch_operands = 0 : i64, tpu.core_type = #tpu.core_type<tc>, window_params = [{transform_indices = @transform_0, window_bounds = array<i64: 16, 896>}, {pipeline_mode = #tpu.pipeline_mode<synchronous>, transform_indices = @transform_1, window_bounds = array<i64: 896, 256>}, {pipeline_mode = #tpu.pipeline_mode<synchronous>, transform_indices = @transform_2, window_bounds = array<i64: 1, 256>}, {pipeline_mode = #tpu.pipeline_mode<synchronous>, transform_indices = @transform_3, window_bounds = array<i64: 256, 256>}, {pipeline_mode = #tpu.pipeline_mode<synchronous>, transform_indices = @transform_4, window_bounds = array<i64: 1, 256>}, {pipeline_mode = #tpu.pipeline_mode<synchronous>, transform_indices = @transform_5, window_bounds = array<i64: 256, 256>}, {pipeline_mode = #tpu.pipeline_mode<synchronous>, transform_indices = @transform_6, window_bounds = array<i64: 1, 256>}, {pipeline_mode = #tpu.pipeline_mode<synchronous>, transform_indices = @transform_7, window_bounds = array<i64: 256, 256>}, {pipeline_mode = #tpu.pipeline_mode<synchronous>, transform_indices = @transform_8, window_bounds = array<i64: 1, 256>}, {pipeline_mode = #tpu.pipeline_mode<synchronous>, transform_indices = @transform_9, window_bounds = array<i64: 256, 128>}, {pipeline_mode = #tpu.pipeline_mode<synchronous>, transform_indices = @transform_10, window_bounds = array<i64: 256, 128>}, {pipeline_mode = #tpu.pipeline_mode<synchronous>, transform_indices = @transform_11, window_bounds = array<i64: 256, 128>}, {pipeline_mode = #tpu.pipeline_mode<synchronous>, transform_indices = @transform_12, window_bounds = array<i64: 1, 128>}, {transform_indices = @transform_13, window_bounds = array<i64: 16, 128>}]} {
    %c0 = arith.constant 0 : index
    %c0_0 = arith.constant 0 : index
    %0 = vector.load %arg1[%c0, %c0_0] : memref<16x896xf32, #tpu.memory_space<vmem>>, vector<16x896xf32>
    %c0_1 = arith.constant 0 : index
    %c0_2 = arith.constant 0 : index
    %1 = vector.load %arg2[%c0_1, %c0_2] : memref<896x256xbf16, #tpu.memory_space<vmem>>, vector<896x256xbf16>
    %c0_3 = arith.constant 0 : index
    %c0_4 = arith.constant 0 : index
    %2 = vector.load %arg3[%c0_3, %c0_4] : memref<1x256xf32, #tpu.memory_space<vmem>>, vector<1x256xf32>
    %3 = arith.mulf %0, %0 : vector<16x896xf32>
    %cst = arith.constant dense<0.000000e+00> : vector<16xf32>
    %4 = vector.multi_reduction <add>, %3, %cst [1] : vector<16x896xf32> to vector<16xf32>
    %5 = vector.shape_cast %4 : vector<16xf32> to vector<16x1xf32>
    %6 = math.sqrt %5 : vector<16x1xf32>
    %cst_5 = arith.constant 2.000000e-02 : f32
    %7 = vector.broadcast %cst_5 : f32 to vector<16x1xf32>
    %8 = arith.addf %6, %7 : vector<16x1xf32>
    %9 = tpu.reciprocal %8 {approx = true} : vector<16x1xf32> -> vector<16x1xf32>
    %10 = vector.broadcast %9 : vector<16x1xf32> to vector<16x896xf32>
    %11 = arith.mulf %0, %10 : vector<16x896xf32>
    %12 = arith.truncf %11 : vector<16x896xf32> to vector<16x896xbf16>
    %cst_6 = arith.constant dense<0.000000e+00> : vector<16x256xf32>
    %13 = tpu.matmul %12, %1, %cst_6 {dimension_numbers = #tpu.dot_dimension_numbers<[1], [0], [0], [1], [0, 0, 1, 1], [], []>} : vector<16x896xbf16>, vector<896x256xbf16>, vector<16x256xf32> -> vector<16x256xf32>
    %14 = vector.broadcast %2 : vector<1x256xf32> to vector<16x256xf32>
    %15 = arith.addf %13, %14 : vector<16x256xf32>
    %cst_7 = arith.constant 0.000000e+00 : f32
    %16 = vector.broadcast %cst_7 : f32 to vector<16x256xf32>
    %17 = arith.maximumf %15, %16 : vector<16x256xf32>
    %c0_8 = arith.constant 0 : index
    %c0_9 = arith.constant 0 : index
    %18 = vector.load %arg4[%c0_8, %c0_9] : memref<256x256xbf16, #tpu.memory_space<vmem>>, vector<256x256xbf16>
    %c0_10 = arith.constant 0 : index
    %c0_11 = arith.constant 0 : index
    %19 = vector.load %arg5[%c0_10, %c0_11] : memref<1x256xf32, #tpu.memory_space<vmem>>, vector<1x256xf32>
    %20 = arith.mulf %17, %17 : vector<16x256xf32>
    %cst_12 = arith.constant dense<0.000000e+00> : vector<16xf32>
    %21 = vector.multi_reduction <add>, %20, %cst_12 [1] : vector<16x256xf32> to vector<16xf32>
    %22 = vector.shape_cast %21 : vector<16xf32> to vector<16x1xf32>
    %23 = math.sqrt %22 : vector<16x1xf32>
    %cst_13 = arith.constant 2.000000e-02 : f32
    %24 = vector.broadcast %cst_13 : f32 to vector<16x1xf32>
    %25 = arith.addf %23, %24 : vector<16x1xf32>
    %26 = tpu.reciprocal %25 {approx = true} : vector<16x1xf32> -> vector<16x1xf32>
    %27 = vector.broadcast %26 : vector<16x1xf32> to vector<16x256xf32>
    %28 = arith.mulf %17, %27 : vector<16x256xf32>
    %29 = arith.truncf %28 : vector<16x256xf32> to vector<16x256xbf16>
    %cst_14 = arith.constant dense<0.000000e+00> : vector<16x256xf32>
    %30 = tpu.matmul %29, %18, %cst_14 {dimension_numbers = #tpu.dot_dimension_numbers<[1], [0], [0], [1], [0, 0, 1, 1], [], []>} : vector<16x256xbf16>, vector<256x256xbf16>, vector<16x256xf32> -> vector<16x256xf32>
    %31 = vector.broadcast %19 : vector<1x256xf32> to vector<16x256xf32>
    %32 = arith.addf %30, %31 : vector<16x256xf32>
    %cst_15 = arith.constant 0.000000e+00 : f32
    %33 = vector.broadcast %cst_15 : f32 to vector<16x256xf32>
    %34 = arith.maximumf %32, %33 : vector<16x256xf32>
    %c0_16 = arith.constant 0 : index
    %c0_17 = arith.constant 0 : index
    %35 = vector.load %arg6[%c0_16, %c0_17] : memref<256x256xbf16, #tpu.memory_space<vmem>>, vector<256x256xbf16>
    %c0_18 = arith.constant 0 : index
    %c0_19 = arith.constant 0 : index
    %36 = vector.load %arg7[%c0_18, %c0_19] : memref<1x256xf32, #tpu.memory_space<vmem>>, vector<1x256xf32>
    %37 = arith.mulf %34, %34 : vector<16x256xf32>
    %cst_20 = arith.constant dense<0.000000e+00> : vector<16xf32>
    %38 = vector.multi_reduction <add>, %37, %cst_20 [1] : vector<16x256xf32> to vector<16xf32>
    %39 = vector.shape_cast %38 : vector<16xf32> to vector<16x1xf32>
    %40 = math.sqrt %39 : vector<16x1xf32>
    %cst_21 = arith.constant 2.000000e-02 : f32
    %41 = vector.broadcast %cst_21 : f32 to vector<16x1xf32>
    %42 = arith.addf %40, %41 : vector<16x1xf32>
    %43 = tpu.reciprocal %42 {approx = true} : vector<16x1xf32> -> vector<16x1xf32>
    %44 = vector.broadcast %43 : vector<16x1xf32> to vector<16x256xf32>
    %45 = arith.mulf %34, %44 : vector<16x256xf32>
    %46 = arith.truncf %45 : vector<16x256xf32> to vector<16x256xbf16>
    %cst_22 = arith.constant dense<0.000000e+00> : vector<16x256xf32>
    %47 = tpu.matmul %46, %35, %cst_22 {dimension_numbers = #tpu.dot_dimension_numbers<[1], [0], [0], [1], [0, 0, 1, 1], [], []>} : vector<16x256xbf16>, vector<256x256xbf16>, vector<16x256xf32> -> vector<16x256xf32>
    %48 = vector.broadcast %36 : vector<1x256xf32> to vector<16x256xf32>
    %49 = arith.addf %47, %48 : vector<16x256xf32>
    %cst_23 = arith.constant 0.000000e+00 : f32
    %50 = vector.broadcast %cst_23 : f32 to vector<16x256xf32>
    %51 = arith.maximumf %49, %50 : vector<16x256xf32>
    %c0_24 = arith.constant 0 : index
    %c0_25 = arith.constant 0 : index
    %52 = vector.load %arg8[%c0_24, %c0_25] : memref<256x256xbf16, #tpu.memory_space<vmem>>, vector<256x256xbf16>
    %c0_26 = arith.constant 0 : index
    %c0_27 = arith.constant 0 : index
    %53 = vector.load %arg9[%c0_26, %c0_27] : memref<1x256xf32, #tpu.memory_space<vmem>>, vector<1x256xf32>
    %54 = arith.mulf %51, %51 : vector<16x256xf32>
    %cst_28 = arith.constant dense<0.000000e+00> : vector<16xf32>
    %55 = vector.multi_reduction <add>, %54, %cst_28 [1] : vector<16x256xf32> to vector<16xf32>
    %56 = vector.shape_cast %55 : vector<16xf32> to vector<16x1xf32>
    %57 = math.sqrt %56 : vector<16x1xf32>
    %cst_29 = arith.constant 2.000000e-02 : f32
    %58 = vector.broadcast %cst_29 : f32 to vector<16x1xf32>
    %59 = arith.addf %57, %58 : vector<16x1xf32>
    %60 = tpu.reciprocal %59 {approx = true} : vector<16x1xf32> -> vector<16x1xf32>
    %61 = vector.broadcast %60 : vector<16x1xf32> to vector<16x256xf32>
    %62 = arith.mulf %51, %61 : vector<16x256xf32>
    %63 = arith.truncf %62 : vector<16x256xf32> to vector<16x256xbf16>
    %cst_30 = arith.constant dense<0.000000e+00> : vector<16x256xf32>
    %64 = tpu.matmul %63, %52, %cst_30 {dimension_numbers = #tpu.dot_dimension_numbers<[1], [0], [0], [1], [0, 0, 1, 1], [], []>} : vector<16x256xbf16>, vector<256x256xbf16>, vector<16x256xf32> -> vector<16x256xf32>
    %65 = vector.broadcast %53 : vector<1x256xf32> to vector<16x256xf32>
    %66 = arith.addf %64, %65 : vector<16x256xf32>
    %cst_31 = arith.constant 0.000000e+00 : f32
    %67 = vector.broadcast %cst_31 : f32 to vector<16x256xf32>
    %68 = arith.maximumf %66, %67 : vector<16x256xf32>
    %69 = arith.mulf %34, %34 : vector<16x256xf32>
    %cst_32 = arith.constant dense<0.000000e+00> : vector<16xf32>
    %70 = vector.multi_reduction <add>, %69, %cst_32 [1] : vector<16x256xf32> to vector<16xf32>
    %71 = vector.shape_cast %70 : vector<16xf32> to vector<16x1xf32>
    %72 = math.sqrt %71 : vector<16x1xf32>
    %cst_33 = arith.constant 0.00999999977 : f32
    %73 = vector.broadcast %cst_33 : f32 to vector<16x1xf32>
    %74 = arith.addf %72, %73 : vector<16x1xf32>
    %75 = tpu.reciprocal %74 {approx = true} : vector<16x1xf32> -> vector<16x1xf32>
    %76 = vector.broadcast %75 : vector<16x1xf32> to vector<16x256xf32>
    %77 = arith.mulf %34, %76 : vector<16x256xf32>
    %78 = arith.mulf %77, %77 : vector<16x256xf32>
    %cst_34 = arith.constant dense<0.000000e+00> : vector<16xf32>
    %79 = vector.multi_reduction <add>, %78, %cst_34 [1] : vector<16x256xf32> to vector<16xf32>
    %80 = vector.shape_cast %79 : vector<16xf32> to vector<16x1xf32>
    %81 = math.sqrt %80 : vector<16x1xf32>
    %cst_35 = arith.constant 0.00999999977 : f32
    %82 = vector.broadcast %cst_35 : f32 to vector<16x1xf32>
    %83 = arith.addf %81, %82 : vector<16x1xf32>
    %84 = tpu.reciprocal %83 {approx = true} : vector<16x1xf32> -> vector<16x1xf32>
    %c0_36 = arith.constant 0 : index
    %c0_37 = arith.constant 0 : index
    %85 = vector.load %arg10[%c0_36, %c0_37] : memref<256x128xbf16, #tpu.memory_space<vmem>>, vector<256x128xbf16>
    %c0_38 = arith.constant 0 : index
    %c0_39 = arith.constant 0 : index
    %86 = vector.load %arg11[%c0_38, %c0_39] : memref<256x128xbf16, #tpu.memory_space<vmem>>, vector<256x128xbf16>
    %c0_40 = arith.constant 0 : index
    %c0_41 = arith.constant 0 : index
    %87 = vector.load %arg12[%c0_40, %c0_41] : memref<256x128xbf16, #tpu.memory_space<vmem>>, vector<256x128xbf16>
    %88 = arith.truncf %77 : vector<16x256xf32> to vector<16x256xbf16>
    %cst_42 = arith.constant dense<0.000000e+00> : vector<16x128xf32>
    %89 = tpu.matmul %88, %85, %cst_42 {dimension_numbers = #tpu.dot_dimension_numbers<[1], [0], [0], [1], [0, 0, 1, 1], [], []>} : vector<16x256xbf16>, vector<256x128xbf16>, vector<16x128xf32> -> vector<16x128xf32>
    %90 = arith.truncf %51 : vector<16x256xf32> to vector<16x256xbf16>
    %cst_43 = arith.constant dense<0.000000e+00> : vector<16x128xf32>
    %91 = tpu.matmul %90, %86, %cst_43 {dimension_numbers = #tpu.dot_dimension_numbers<[1], [0], [0], [1], [0, 0, 1, 1], [], []>} : vector<16x256xbf16>, vector<256x128xbf16>, vector<16x128xf32> -> vector<16x128xf32>
    %92 = arith.truncf %68 : vector<16x256xf32> to vector<16x256xbf16>
    %cst_44 = arith.constant dense<0.000000e+00> : vector<16x128xf32>
    %93 = tpu.matmul %92, %87, %cst_44 {dimension_numbers = #tpu.dot_dimension_numbers<[1], [0], [0], [1], [0, 0, 1, 1], [], []>} : vector<16x256xbf16>, vector<256x128xbf16>, vector<16x128xf32> -> vector<16x128xf32>
    %94 = arith.addf %91, %93 : vector<16x128xf32>
    %95 = vector.broadcast %84 : vector<16x1xf32> to vector<16x128xf32>
    %96 = arith.mulf %94, %95 : vector<16x128xf32>
    %97 = arith.addf %89, %96 : vector<16x128xf32>
    %c0_45 = arith.constant 0 : index
    %c0_46 = arith.constant 0 : index
    %98 = vector.load %arg13[%c0_45, %c0_46] : memref<1x128xf32, #tpu.memory_space<vmem>>, vector<1x128xf32>
    %99 = vector.broadcast %98 : vector<1x128xf32> to vector<16x128xf32>
    %100 = arith.addf %97, %99 : vector<16x128xf32>
    %c0_47 = arith.constant 0 : index
    %c0_48 = arith.constant 0 : index
    %101 = vector.load %arg14[%c0_47, %c0_48] : memref<16x128xf32, #tpu.memory_space<vmem>>, vector<16x128xf32>
    tpu.vector_store %arg14[%c0_47, %c0_48], %100 {strides = array<i32>} : memref<16x128xf32, #tpu.memory_space<vmem>>, vector<16x128xf32>,
    return
  }
  func.func @transform_0(%arg0: i32) -> (i32, i32) {
    %c0_i32 = arith.constant 0 : i32
    %c0_i32_0 = arith.constant 0 : i32
    return %arg0, %c0_i32 : i32, i32
  }
  func.func @transform_1(%arg0: i32) -> (i32, i32) {
    %c0_i32 = arith.constant 0 : i32
    %c0_i32_0 = arith.constant 0 : i32
    %c0_i32_1 = arith.constant 0 : i32
    return %c0_i32, %c0_i32_0 : i32, i32
  }
  func.func @transform_2(%arg0: i32) -> (i32, i32) {
    %c0_i32 = arith.constant 0 : i32
    %c0_i32_0 = arith.constant 0 : i32
    %c0_i32_1 = arith.constant 0 : i32
    return %c0_i32, %c0_i32_0 : i32, i32
  }
  func.func @transform_3(%arg0: i32) -> (i32, i32) {
    %c0_i32 = arith.constant 0 : i32
    %c0_i32_0 = arith.constant 0 : i32
    %c0_i32_1 = arith.constant 0 : i32
    return %c0_i32, %c0_i32_0 : i32, i32
  }
  func.func @transform_4(%arg0: i32) -> (i32, i32) {
    %c0_i32 = arith.constant 0 : i32
    %c0_i32_0 = arith.constant 0 : i32
    %c0_i32_1 = arith.constant 0 : i32
    return %c0_i32, %c0_i32_0 : i32, i32
  }
  func.func @transform_5(%arg0: i32) -> (i32, i32) {
    %c0_i32 = arith.constant 0 : i32
    %c0_i32_0 = arith.constant 0 : i32
    %c0_i32_1 = arith.constant 0 : i32
    return %c0_i32, %c0_i32_0 : i32, i32
  }
  func.func @transform_6(%arg0: i32) -> (i32, i32) {
    %c0_i32 = arith.constant 0 : i32
    %c0_i32_0 = arith.constant 0 : i32
    %c0_i32_1 = arith.constant 0 : i32
    return %c0_i32, %c0_i32_0 : i32, i32
  }
  func.func @transform_7(%arg0: i32) -> (i32, i32) {
    %c0_i32 = arith.constant 0 : i32
    %c0_i32_0 = arith.constant 0 : i32
    %c0_i32_1 = arith.constant 0 : i32
    return %c0_i32, %c0_i32_0 : i32, i32
  }
  func.func @transform_8(%arg0: i32) -> (i32, i32) {
    %c0_i32 = arith.constant 0 : i32
    %c0_i32_0 = arith.constant 0 : i32
    %c0_i32_1 = arith.constant 0 : i32
    return %c0_i32, %c0_i32_0 : i32, i32
  }
  func.func @transform_9(%arg0: i32) -> (i32, i32) {
    %c0_i32 = arith.constant 0 : i32
    %c0_i32_0 = arith.constant 0 : i32
    %c0_i32_1 = arith.constant 0 : i32
    return %c0_i32, %c0_i32_0 : i32, i32
  }
  func.func @transform_10(%arg0: i32) -> (i32, i32) {
    %c0_i32 = arith.constant 0 : i32
    %c0_i32_0 = arith.constant 0 : i32
    %c0_i32_1 = arith.constant 0 : i32
    return %c0_i32, %c0_i32_0 : i32, i32
  }
  func.func @transform_11(%arg0: i32) -> (i32, i32) {
    %c0_i32 = arith.constant 0 : i32
    %c0_i32_0 = arith.constant 0 : i32
    %c0_i32_1 = arith.constant 0 : i32
    return %c0_i32, %c0_i32_0 : i32, i32
  }
  func.func @transform_12(%arg0: i32) -> (i32, i32) {
    %c0_i32 = arith.constant 0 : i32
    %c0_i32_0 = arith.constant 0 : i32
    %c0_i32_1 = arith.constant 0 : i32
    return %c0_i32, %c0_i32_0 : i32, i32
  }
  func.func @transform_13(%arg0: i32) -> (i32, i32) {
    %c0_i32 = arith.constant 0 : i32
    %c0_i32_0 = arith.constant 0 : i32
    return %arg0, %c0_i32 : i32, i32
  }
}

module attributes {stable_mosaic.version = 11 : i64} {
  func.func @net_kernel(%arg0: i32, %arg1: memref<16x896xf32, #tpu.memory_space<vmem>>, %arg2: memref<896x256xbf16, #tpu.memory_space<vmem>>, %arg3: memref<1x256xf32, #tpu.memory_space<vmem>>, %arg4: memref<256x256xbf16, #tpu.memory_space<vmem>>, %arg5: memref<1x256xf32, #tpu.memory_space<vmem>>, %arg6: memref<256x256xbf16, #tpu.memory_space<vmem>>, %arg7: memref<1x256xf32, #tpu.memory_space<vmem>>, %arg8: memref<256x256xbf16, #tpu.memory_space<vmem>>, %arg9: memref<1x256xf32, #tpu.memory_space<vmem>>, %arg10: memref<256x128xbf16, #tpu.memory_space<vmem>>, %arg11: memref<256x128xbf16, #tpu.memory_space<vmem>>, %arg12: memref<256x128xbf16, #tpu.memory_space<vmem>>, %arg13: memref<1x128xf32, #tpu.memory_space<vmem>>, %arg14: memref<16x128xf32, #tpu.memory_space<vmem>>) attributes {dimension_semantics = [#tpu.dimension_semantics<parallel>], iteration_bounds = array<i64: 1>, scalar_prefetch = 0 : i64, scratch_operands = 0 : i64, tpu.core_type = #tpu.core_type<tc>, window_params = [{transform_indices = @transform_0, window_bounds = array<i64: 16, 896>}, {pipeline_mode = #tpu.pipeline_mode<synchronous>, transform_indices = @transform_1, window_bounds = array<i64: 896, 256>}, {pipeline_mode = #tpu.pipeline_mode<synchronous>, transform_indices = @transform_2, window_bounds = array<i64: 1, 256>}, {pipeline_mode = #tpu.pipeline_mode<synchronous>, transform_indices = @transform_3, window_bounds = array<i64: 256, 256>}, {pipeline_mode = #tpu.pipeline_mode<synchronous>, transform_indices = @transform_4, window_bounds = array<i64: 1, 256>}, {pipeline_mode = #tpu.pipeline_mode<synchronous>, transform_indices = @transform_5, window_bounds = array<i64: 256, 256>}, {pipeline_mode = #tpu.pipeline_mode<synchronous>, transform_indices = @transform_6, window_bounds = array<i64: 1, 256>}, {pipeline_mode = #tpu.pipeline_mode<synchronous>, transform_indices = @transform_7, window_bounds = array<i64: 256, 256>}, {pipeline_mode = #tpu.pipeline_mode<synchronous>, transform_indices = @transform_8, window_bounds = array<i64: 1, 256>}, {pipeline_mode = #tpu.pipeline_mode<synchronous>, transform_indices = @transform_9, window_bounds = array<i64: 256, 128>}, {pipeline_mode = #tpu.pipeline_mode<synchronous>, transform_indices = @transform_10, window_bounds = array<i64: 256, 128>}, {pipeline_mode = #tpu.pipeline_mode<synchronous>, transform_indices = @transform_11, window_bounds = array<i64: 256, 128>}, {pipeline_mode = #tpu.pipeline_mode<synchronous>, transform_indices = @transform_12, window_bounds = array<i64: 1, 128>}, {transform_indices = @transform_13, window_bounds = array<i64: 16, 128>}]} {
    %c0 = arith.constant 0 : index
    %c0_0 = arith.constant 0 : index
    %0 = vector.load %arg1[%c0, %c0_0] : memref<16x896xf32, #tpu.memory_space<vmem>>, vector<16x896xf32>
    %c0_1 = arith.constant 0 : index
    %c0_2 = arith.constant 0 : index
    %1 = vector.load %arg2[%c0_1, %c0_2] : memref<896x256xbf16, #tpu.memory_space<vmem>>, vector<896x256xbf16>
    %c0_3 = arith.constant 0 : index
    %c0_4 = arith.constant 0 : index
    %2 = vector.load %arg3[%c0_3, %c0_4] : memref<1x256xf32, #tpu.memory_space<vmem>>, vector<1x256xf32>
    %3 = arith.mulf %0, %0 : vector<16x896xf32>
    %cst = arith.constant dense<0.000000e+00> : vector<16xf32>
    %4 = vector.multi_reduction <add>, %3, %cst [1] : vector<16x896xf32> to vector<16xf32>
    %5 = vector.shape_cast %4 : vector<16xf32> to vector<16x1xf32>
    %6 = math.sqrt %5 : vector<16x1xf32>
    %cst_5 = arith.constant 2.000000e-02 : f32
    %7 = vector.broadcast %cst_5 : f32 to vector<16x1xf32>
    %8 = arith.addf %6, %7 : vector<16x1xf32>
    %9 = tpu.reciprocal %8 {approx = true} : vector<16x1xf32> -> vector<16x1xf32>
    %10 = vector.broadcast %9 : vector<16x1xf32> to vector<16x896xf32>
    %11 = arith.mulf %0, %10 : vector<16x896xf32>
    %12 = arith.truncf %11 : vector<16x896xf32> to vector<16x896xbf16>
    %cst_6 = arith.constant dense<0.000000e+00> : vector<16x256xf32>
    %13 = tpu.matmul %12, %1, %cst_6 {dimension_numbers = #tpu.dot_dimension_numbers<[1], [0], [0], [1], [0, 0, 1, 1], [], []>} : vector<16x896xbf16>, vector<896x256xbf16>, vector<16x256xf32> -> vector<16x256xf32>
    %14 = vector.broadcast %2 : vector<1x256xf32> to vector<16x256xf32>
    %15 = arith.addf %13, %14 : vector<16x256xf32>
    %cst_7 = arith.constant 0.000000e+00 : f32
    %16 = vector.broadcast %cst_7 : f32 to vector<16x256xf32>
    %17 = arith.maximumf %15, %16 : vector<16x256xf32>
    %c0_8 = arith.constant 0 : index
    %c0_9 = arith.constant 0 : index
    %18 = vector.load %arg4[%c0_8, %c0_9] : memref<256x256xbf16, #tpu.memory_space<vmem>>, vector<256x256xbf16>
    %c0_10 = arith.constant 0 : index
    %c0_11 = arith.constant 0 : index
    %19 = vector.load %arg5[%c0_10, %c0_11] : memref<1x256xf32, #tpu.memory_space<vmem>>, vector<1x256xf32>
    %20 = arith.mulf %17, %17 : vector<16x256xf32>
    %cst_12 = arith.constant dense<0.000000e+00> : vector<16xf32>
    %21 = vector.multi_reduction <add>, %20, %cst_12 [1] : vector<16x256xf32> to vector<16xf32>
    %22 = vector.shape_cast %21 : vector<16xf32> to vector<16x1xf32>
    %23 = math.sqrt %22 : vector<16x1xf32>
    %cst_13 = arith.constant 2.000000e-02 : f32
    %24 = vector.broadcast %cst_13 : f32 to vector<16x1xf32>
    %25 = arith.addf %23, %24 : vector<16x1xf32>
    %26 = tpu.reciprocal %25 {approx = true} : vector<16x1xf32> -> vector<16x1xf32>
    %27 = vector.broadcast %26 : vector<16x1xf32> to vector<16x256xf32>
    %28 = arith.mulf %17, %27 : vector<16x256xf32>
    %29 = arith.truncf %28 : vector<16x256xf32> to vector<16x256xbf16>
    %cst_14 = arith.constant dense<0.000000e+00> : vector<16x256xf32>
    %30 = tpu.matmul %29, %18, %cst_14 {dimension_numbers = #tpu.dot_dimension_numbers<[1], [0], [0], [1], [0, 0, 1, 1], [], []>} : vector<16x256xbf16>, vector<256x256xbf16>, vector<16x256xf32> -> vector<16x256xf32>
    %31 = vector.broadcast %19 : vector<1x256xf32> to vector<16x256xf32>
    %32 = arith.addf %30, %31 : vector<16x256xf32>
    %cst_15 = arith.constant 0.000000e+00 : f32
    %33 = vector.broadcast %cst_15 : f32 to vector<16x256xf32>
    %34 = arith.maximumf %32, %33 : vector<16x256xf32>
    %c0_16 = arith.constant 0 : index
    %c0_17 = arith.constant 0 : index
    %35 = vector.load %arg6[%c0_16, %c0_17] : memref<256x256xbf16, #tpu.memory_space<vmem>>, vector<256x256xbf16>
    %c0_18 = arith.constant 0 : index
    %c0_19 = arith.constant 0 : index
    %36 = vector.load %arg7[%c0_18, %c0_19] : memref<1x256xf32, #tpu.memory_space<vmem>>, vector<1x256xf32>
    %37 = arith.mulf %34, %34 : vector<16x256xf32>
    %cst_20 = arith.constant dense<0.000000e+00> : vector<16xf32>
    %38 = vector.multi_reduction <add>, %37, %cst_20 [1] : vector<16x256xf32> to vector<16xf32>
    %39 = vector.shape_cast %38 : vector<16xf32> to vector<16x1xf32>
    %40 = math.sqrt %39 : vector<16x1xf32>
    %cst_21 = arith.constant 2.000000e-02 : f32
    %41 = vector.broadcast %cst_21 : f32 to vector<16x1xf32>
    %42 = arith.addf %40, %41 : vector<16x1xf32>
    %43 = tpu.reciprocal %42 {approx = true} : vector<16x1xf32> -> vector<16x1xf32>
    %44 = vector.broadcast %43 : vector<16x1xf32> to vector<16x256xf32>
    %45 = arith.mulf %34, %44 : vector<16x256xf32>
    %46 = arith.truncf %45 : vector<16x256xf32> to vector<16x256xbf16>
    %cst_22 = arith.constant dense<0.000000e+00> : vector<16x256xf32>
    %47 = tpu.matmul %46, %35, %cst_22 {dimension_numbers = #tpu.dot_dimension_numbers<[1], [0], [0], [1], [0, 0, 1, 1], [], []>} : vector<16x256xbf16>, vector<256x256xbf16>, vector<16x256xf32> -> vector<16x256xf32>
    %48 = vector.broadcast %36 : vector<1x256xf32> to vector<16x256xf32>
    %49 = arith.addf %47, %48 : vector<16x256xf32>
    %cst_23 = arith.constant 0.000000e+00 : f32
    %50 = vector.broadcast %cst_23 : f32 to vector<16x256xf32>
    %51 = arith.maximumf %49, %50 : vector<16x256xf32>
    %c0_24 = arith.constant 0 : index
    %c0_25 = arith.constant 0 : index
    %52 = vector.load %arg8[%c0_24, %c0_25] : memref<256x256xbf16, #tpu.memory_space<vmem>>, vector<256x256xbf16>
    %c0_26 = arith.constant 0 : index
    %c0_27 = arith.constant 0 : index
    %53 = vector.load %arg9[%c0_26, %c0_27] : memref<1x256xf32, #tpu.memory_space<vmem>>, vector<1x256xf32>
    %54 = arith.mulf %51, %51 : vector<16x256xf32>
    %cst_28 = arith.constant dense<0.000000e+00> : vector<16xf32>
    %55 = vector.multi_reduction <add>, %54, %cst_28 [1] : vector<16x256xf32> to vector<16xf32>
    %56 = vector.shape_cast %55 : vector<16xf32> to vector<16x1xf32>
    %57 = math.sqrt %56 : vector<16x1xf32>
    %cst_29 = arith.constant 2.000000e-02 : f32
    %58 = vector.broadcast %cst_29 : f32 to vector<16x1xf32>
    %59 = arith.addf %57, %58 : vector<16x1xf32>
    %60 = tpu.reciprocal %59 {approx = true} : vector<16x1xf32> -> vector<16x1xf32>
    %61 = vector.broadcast %60 : vector<16x1xf32> to vector<16x256xf32>
    %62 = arith.mulf %51, %61 : vector<16x256xf32>
    %63 = arith.truncf %62 : vector<16x256xf32> to vector<16x256xbf16>
    %cst_30 = arith.constant dense<0.000000e+00> : vector<16x256xf32>
    %64 = tpu.matmul %63, %52, %cst_30 {dimension_numbers = #tpu.dot_dimension_numbers<[1], [0], [0], [1], [0, 0, 1, 1], [], []>} : vector<16x256xbf16>, vector<256x256xbf16>, vector<16x256xf32> -> vector<16x256xf32>
    %65 = vector.broadcast %53 : vector<1x256xf32> to vector<16x256xf32>
    %66 = arith.addf %64, %65 : vector<16x256xf32>
    %cst_31 = arith.constant 0.000000e+00 : f32
    %67 = vector.broadcast %cst_31 : f32 to vector<16x256xf32>
    %68 = arith.maximumf %66, %67 : vector<16x256xf32>
    %69 = arith.mulf %34, %34 : vector<16x256xf32>
    %cst_32 = arith.constant dense<0.000000e+00> : vector<16xf32>
    %70 = vector.multi_reduction <add>, %69, %cst_32 [1] : vector<16x256xf32> to vector<16xf32>
    %71 = vector.shape_cast %70 : vector<16xf32> to vector<16x1xf32>
    %72 = math.sqrt %71 : vector<16x1xf32>
    %cst_33 = arith.constant 0.00999999977 : f32
    %73 = vector.broadcast %cst_33 : f32 to vector<16x1xf32>
    %74 = arith.addf %72, %73 : vector<16x1xf32>
    %75 = tpu.reciprocal %74 {approx = true} : vector<16x1xf32> -> vector<16x1xf32>
    %76 = vector.broadcast %75 : vector<16x1xf32> to vector<16x256xf32>
    %77 = arith.mulf %34, %76 : vector<16x256xf32>
    %78 = arith.mulf %77, %77 : vector<16x256xf32>
    %cst_34 = arith.constant dense<0.000000e+00> : vector<16xf32>
    %79 = vector.multi_reduction <add>, %78, %cst_34 [1] : vector<16x256xf32> to vector<16xf32>
    %80 = vector.shape_cast %79 : vector<16xf32> to vector<16x1xf32>
    %81 = math.sqrt %80 : vector<16x1xf32>
    %cst_35 = arith.constant 0.00999999977 : f32
    %82 = vector.broadcast %cst_35 : f32 to vector<16x1xf32>
    %83 = arith.addf %81, %82 : vector<16x1xf32>
    %84 = tpu.reciprocal %83 {approx = true} : vector<16x1xf32> -> vector<16x1xf32>
    %c0_36 = arith.constant 0 : index
    %c0_37 = arith.constant 0 : index
    %85 = vector.load %arg10[%c0_36, %c0_37] : memref<256x128xbf16, #tpu.memory_space<vmem>>, vector<256x128xbf16>
    %c0_38 = arith.constant 0 : index
    %c0_39 = arith.constant 0 : index
    %86 = vector.load %arg11[%c0_38, %c0_39] : memref<256x128xbf16, #tpu.memory_space<vmem>>, vector<256x128xbf16>
    %c0_40 = arith.constant 0 : index
    %c0_41 = arith.constant 0 : index
    %87 = vector.load %arg12[%c0_40, %c0_41] : memref<256x128xbf16, #tpu.memory_space<vmem>>, vector<256x128xbf16>
    %88 = arith.truncf %77 : vector<16x256xf32> to vector<16x256xbf16>
    %cst_42 = arith.constant dense<0.000000e+00> : vector<16x128xf32>
    %89 = tpu.matmul %88, %85, %cst_42 {dimension_numbers = #tpu.dot_dimension_numbers<[1], [0], [0], [1], [0, 0, 1, 1], [], []>} : vector<16x256xbf16>, vector<256x128xbf16>, vector<16x128xf32> -> vector<16x128xf32>
    %90 = arith.truncf %51 : vector<16x256xf32> to vector<16x256xbf16>
    %cst_43 = arith.constant dense<0.000000e+00> : vector<16x128xf32>
    %91 = tpu.matmul %90, %86, %cst_43 {dimension_numbers = #tpu.dot_dimension_numbers<[1], [0], [0], [1], [0, 0, 1, 1], [], []>} : vector<16x256xbf16>, vector<256x128xbf16>, vector<16x128xf32> -> vector<16x128xf32>
    %92 = arith.truncf %68 : vector<16x256xf32> to vector<16x256xbf16>
    %cst_44 = arith.constant dense<0.000000e+00> : vector<16x128xf32>
    %93 = tpu.matmul %92, %87, %cst_44 {dimension_numbers = #tpu.dot_dimension_numbers<[1], [0], [0], [1], [0, 0, 1, 1], [], []>} : vector<16x256xbf16>, vector<256x128xbf16>, vector<16x128xf32> -> vector<16x128xf32>
    %94 = arith.addf %91, %93 : vector<16x128xf32>
    %95 = vector.broadcast %84 : vector<16x1xf32> to vector<16x128xf32>
    %96 = arith.mulf %94, %95 : vector<16x128xf32>
    %97 = arith.addf %89, %96 : vector<16x128xf32>
    %c0_45 = arith.constant 0 : index
    %c0_46 = arith.constant 0 : index
    %98 = vector.load %arg13[%c0_45, %c0_46] : memref<1x128xf32, #tpu.memory_space<vmem>>, vector<1x128xf32>
    %99 = vector.broadcast %98 : vector<1x128xf32> to vector<16x128xf32>
    %100 = arith.addf %97, %99 : vector<16x128xf32>
    %c0_47 = arith.constant 0 : index
    %c0_48 = arith.constant 0 : index
    %101 = vector.load %arg14[%c0_47, %c0_48] : memref<16x128xf32, #tpu.memory_space<vmem>>, vector<16x128xf32>
    tpu.vector_store %arg14[%c0_47, %c0_48], %100 {strides = array<i32>} : memref<16x128xf32, #tpu.memory_space<vmem>>, vector<16x128xf32>,
    return
  }
  func.func @transform_0(%arg0: i32) -> (i32, i32) {
    %c0_i32 = arith.constant 0 : i32
    %c0_i32_0 = arith.constant 0 : i32
    return %arg0, %c0_i32 : i32, i32
  }
  func.func @transform_1(%arg0: i32) -> (i32, i32) {
    %c0_i32 = arith.constant 0 : i32
    %c0_i32_0 = arith.constant 0 : i32
    %c0_i32_1 = arith.constant 0 : i32
    return %c0_i32, %c0_i32_0 : i32, i32
  }
  func.func @transform_2(%arg0: i32) -> (i32, i32) {
    %c0_i32 = arith.constant 0 : i32
    %c0_i32_0 = arith.constant 0 : i32
    %c0_i32_1 = arith.constant 0 : i32
    return %c0_i32, %c0_i32_0 : i32, i32
  }
  func.func @transform_3(%arg0: i32) -> (i32, i32) {
    %c0_i32 = arith.constant 0 : i32
    %c0_i32_0 = arith.constant 0 : i32
    %c0_i32_1 = arith.constant 0 : i32
    return %c0_i32, %c0_i32_0 : i32, i32
  }
  func.func @transform_4(%arg0: i32) -> (i32, i32) {
    %c0_i32 = arith.constant 0 : i32
    %c0_i32_0 = arith.constant 0 : i32
    %c0_i32_1 = arith.constant 0 : i32
    return %c0_i32, %c0_i32_0 : i32, i32
  }
  func.func @transform_5(%arg0: i32) -> (i32, i32) {
    %c0_i32 = arith.constant 0 : i32
    %c0_i32_0 = arith.constant 0 : i32
    %c0_i32_1 = arith.constant 0 : i32
    return %c0_i32, %c0_i32_0 : i32, i32
  }
  func.func @transform_6(%arg0: i32) -> (i32, i32) {
    %c0_i32 = arith.constant 0 : i32
    %c0_i32_0 = arith.constant 0 : i32
    %c0_i32_1 = arith.constant 0 : i32
    return %c0_i32, %c0_i32_0 : i32, i32
  }
  func.func @transform_7(%arg0: i32) -> (i32, i32) {
    %c0_i32 = arith.constant 0 : i32
    %c0_i32_0 = arith.constant 0 : i32
    %c0_i32_1 = arith.constant 0 : i32
    return %c0_i32, %c0_i32_0 : i32, i32
  }
  func.func @transform_8(%arg0: i32) -> (i32, i32) {
    %c0_i32 = arith.constant 0 : i32
    %c0_i32_0 = arith.constant 0 : i32
    %c0_i32_1 = arith.constant 0 : i32
    return %c0_i32, %c0_i32_0 : i32, i32
  }
  func.func @transform_9(%arg0: i32) -> (i32, i32) {
    %c0_i32 = arith.constant 0 : i32
    %c0_i32_0 = arith.constant 0 : i32
    %c0_i32_1 = arith.constant 0 : i32
    return %c0_i32, %c0_i32_0 : i32, i32
  }
  func.func @transform_10(%arg0: i32) -> (i32, i32) {
    %c0_i32 = arith.constant 0 : i32
    %c0_i32_0 = arith.constant 0 : i32
    %c0_i32_1 = arith.constant 0 : i32
    return %c0_i32, %c0_i32_0 : i32, i32
  }
  func.func @transform_11(%arg0: i32) -> (i32, i32) {
    %c0_i32 = arith.constant 0 : i32
    %c0_i32_0 = arith.constant 0 : i32
    %c0_i32_1 = arith.constant 0 : i32
    return %c0_i32, %c0_i32_0 : i32, i32
  }
  func.func @transform_12(%arg0: i32) -> (i32, i32) {
    %c0_i32 = arith.constant 0 : i32
    %c0_i32_0 = arith.constant 0 : i32
    %c0_i32_1 = arith.constant 0 : i32
    return %c0_i32, %c0_i32_0 : i32, i32
  }
  func.func @transform_13(%arg0: i32) -> (i32, i32) {
    %c0_i32 = arith.constant 0 : i32
    %c0_i32_0 = arith.constant 0 : i32
    return %arg0, %c0_i32 : i32, i32
  }
}

</mosaic_0001>

<bundles_post_ra>
// kernel: tpu_custom_call.1
= control target key start
LH: loop header
LB: loop body
LE: loop exit
PB: predicated region body
PF: predicated region fallthrough
CT: control target
= control target key end

     0   :  { %18 = vsyncpa [#allocation3], 0  ;;  %s3970_s0 = inlined_call_operand.hbm [shape: f32[16,896], index: 0, kind: input, shape index: {}]   ;;  %s3971_s1 = inlined_call_operand.hbm [shape: bf16[896,256], index: 1, kind: input, shape index: {}]   ;;  %s3972_s2 = inlined_call_operand.vmem [shape: f32[1,256], index: 2, kind: input, shape index: {}]   ;;  %s3973_s3 = inlined_call_operand.hbm [shape: bf16[256,256], index: 3, kind: input, shape index: {}]   ;;  %s3974_s4 = inlined_call_operand.vmem [shape: f32[1,256], index: 4, kind: input, shape index: {}]   ;;  %s3975_s5 = inlined_call_operand.hbm [shape: bf16[256,256], index: 5, kind: input, shape index: {}]   ;;  %s3976_s6 = inlined_call_operand.vmem [shape: f32[1,256], index: 6, kind: input, shape index: {}]   ;;  %s3977_s7 = inlined_call_operand.hbm [shape: bf16[256,256], index: 7, kind: input, shape index: {}]   ;;  %s3978_s8 = inlined_call_operand.vmem [shape: f32[1,256], index: 8, kind: input, shape index: {}]   ;;  %s3979_s9 = inlined_call_operand.hbm [shape: bf16[256,128], index: 9, kind: input, shape index: {}]   ;;  %s3980_s10 = inlined_call_operand.hbm [shape: bf16[256,128], index: 10, kind: input, shape index: {}]   ;;  %s3981_s11 = inlined_call_operand.hbm [shape: bf16[256,128], index: 11, kind: input, shape index: {}]   ;;  %s3982_s12 = inlined_call_operand.vmem [shape: f32[1,128], index: 12, kind: input, shape index: {}]   ;;  %s3983_s13 = inlined_call_operand.hbm [shape: f32[16,128], index: 13, kind: output, shape index: {}]  }
   0x1   :  { %19 = vsyncpa [#allocation6], 0 }
   0x2   :  { %20 = vsyncpa [#allocation9], 0 }
   0x3   :  { %21 = vsyncpa [#allocation12], 0 }
   0x4   :  { %22 = vsyncpa [#allocation15], 0 }
   0x5   :  { %23 = vsyncpa [#allocation4], 0  ;;  %s3505_s25 = smov [#allocation5]   ;;  %s3295_s29 = scalar_lea.hbm %s3971_s1, 14336 }
   0x6   :  { %s41_s26 = sshll.u32 %s3505_s25, 4  ;;  %p3296_p0 = scmp.ne.s32.totalorder %s3971_s1, %s3295_s29  ;;  %s42_s26 = int_to_ptr.vmem [resolvable:$true] %s41_s26 }
   0x7   :  { %p3299_p1 = scmp.lt.u32.totalorder %s3295_s29, %s3971_s1 }
   0x9   :  { %p3301_p2 = pnand %p3299_p1, %p3296_p0 }
   0xb   :  { %3304 = shalt.err (!%p3301_p2)
}
   0xc   :  { %s3305_s17 = scalar_lea.vmem %s42_s26, 14336  ;;  %p3310_p4 = scmp.lt.s32.totalorder %s42_s26, %s42_s26 }
   0xd   :  { %p3306_p3 = scmp.ne.s32.totalorder %s42_s26, %s3305_s17  ;;  %p3311_p5 = scmp.lt.s32.totalorder %s3305_s17, %s3305_s17 }
   0xf   :  { %p3312_p6 = por %p3311_p5, %p3310_p4 }
  0x11   :  { %p3313_p7 = pnand %p3312_p6, %p3306_p3 }
  0x13   :  { %3316 = shalt.err (!%p3313_p7)
}
  0x14   :  { %s3506_s18 = smov 128   ;;  %s3507_s19 = smov 8  }
  0x15   :  { %47 = dma.hbm_to_vmem [thread:$0]  %s3971_s1, 14336, %s42_s26, [#allocation6], %s3506_s18, %s3506_s18, %s3507_s19  }
  0x16   :  { %s3508_s22 = smov [#allocation8]   ;;  %s3509_s24 = smov [#allocation11]  }
  0x17   :  { %s69_s23 = sshll.u32 %s3508_s22, 4  ;;  %s97_s25 = sshll.u32 %s3509_s24, 4  ;;  %s70_s23 = int_to_ptr.vmem [resolvable:$true] %s69_s23  ;;  %s98_s25 = int_to_ptr.vmem [resolvable:$true] %s97_s25 }
  0x18   :  { %s3317_s29 = scalar_lea.hbm %s3975_s5, 4096 }
  0x19   :  { %p3318_p8 = scmp.ne.s32.totalorder %s3975_s5, %s3317_s29  ;;  %p3321_p9 = scmp.lt.u32.totalorder %s3317_s29, %s3975_s5 }
  0x1b   :  { %p3323_p10 = pnand %p3321_p9, %p3318_p8 }
  0x1d   :  { %3326 = shalt.err (!%p3323_p10)
}
  0x1e   :  { %s3327_s1 = scalar_lea.vmem %s70_s23, 4096  ;;  %p3332_p12 = scmp.lt.s32.totalorder %s70_s23, %s70_s23 }
  0x1f   :  { %p3328_p11 = scmp.ne.s32.totalorder %s70_s23, %s3327_s1  ;;  %p3333_p13 = scmp.lt.s32.totalorder %s3327_s1, %s3327_s1 }
  0x21   :  { %p3334_p0 = por %p3333_p13, %p3332_p12 }
  0x23   :  { %p3335_p1 = pnand %p3334_p0, %p3328_p11 }
  0x25   :  { %3338 = shalt.err (!%p3335_p1)
}
  0x26   :  { %75 = dma.hbm_to_vmem [thread:$0]  %s3975_s5, 4096, %s70_s23, [#allocation9], %s3506_s18, %s3506_s18, %s3507_s19  }
  0x27   :  { %s3339_s22 = scalar_lea.hbm %s3979_s9, 2048 }
  0x28   :  { %p3340_p2 = scmp.ne.s32.totalorder %s3979_s9, %s3339_s22  ;;  %p3343_p3 = scmp.lt.u32.totalorder %s3339_s22, %s3979_s9 }
  0x2a   :  { %p3345_p4 = pnand %p3343_p3, %p3340_p2 }
  0x2c   :  { %3348 = shalt.err (!%p3345_p4)
}
  0x2d   :  { %s3349_s30 = scalar_lea.vmem %s98_s25, 2048  ;;  %p3354_p6 = scmp.lt.s32.totalorder %s98_s25, %s98_s25 }
  0x2e   :  { %p3350_p5 = scmp.ne.s32.totalorder %s98_s25, %s3349_s30  ;;  %p3355_p7 = scmp.lt.s32.totalorder %s3349_s30, %s3349_s30 }
  0x30   :  { %p3356_p8 = por %p3355_p7, %p3354_p6 }
  0x32   :  { %p3357_p9 = pnand %p3356_p8, %p3350_p5 }
  0x34   :  { %3360 = shalt.err (!%p3357_p9)
}
  0x35   :  { %s3510_s5 = smov 64   ;;  %s3511_s23 = smov 4  }
  0x36   :  { %103 = dma.hbm_to_vmem [thread:$0]  %s3979_s9, 2048, %s98_s25, [#allocation12], %s3510_s5, %s3510_s5, %s3511_s23  }
  0x37   :  { %s3512_s16 = smov [#allocation2]   ;;  %s3361_s20 = scalar_lea.hbm %s3970_s0, 1792 }
  0x38   :  { %s29_s1 = sshll.u32 %s3512_s16, 4  ;;  %p3362_p10 = scmp.ne.s32.totalorder %s3970_s0, %s3361_s20  ;;  %s30_s1 = int_to_ptr.vmem [resolvable:$true] %s29_s1 }
  0x39   :  { %p3365_p11 = scmp.lt.u32.totalorder %s3361_s20, %s3970_s0 }
  0x3b   :  { %p3367_p12 = pnand %p3365_p11, %p3362_p10 }
  0x3d   :  { %3370 = shalt.err (!%p3367_p12)
}
  0x3e   :  { %s3371_s28 = scalar_lea.vmem %s30_s1, 1792  ;;  %p3376_p0 = scmp.lt.s32.totalorder %s30_s1, %s30_s1 }
  0x3f   :  { %p3372_p13 = scmp.ne.s32.totalorder %s30_s1, %s3371_s28  ;;  %p3377_p1 = scmp.lt.s32.totalorder %s3371_s28, %s3371_s28 }
  0x41   :  { %p3378_p2 = por %p3377_p1, %p3376_p0 }
  0x43   :  { %p3379_p3 = pnand %p3378_p2, %p3372_p13 }
  0x45   :  { %3382 = shalt.err (!%p3379_p3)
}
  0x46   :  { %s3513_s9 = smov 896   ;;  %s3514_s25 = smov 56  }
  0x47   :  { %35 = dma.hbm_to_vmem [thread:$0]  %s3970_s0, 1792, %s30_s1, [#allocation3], %s3513_s9, %s3513_s9, %s3514_s25  }
  0x48   :  { %s3515_s14 = smov [#allocation7]   ;;  %s3516_s16 = smov [#allocation10]  }
  0x49   :  { %s55_s15 = sshll.u32 %s3515_s14, 4  ;;  %s83_s26 = sshll.u32 %s3516_s16, 4  ;;  %s56_s15 = int_to_ptr.vmem [resolvable:$true] %s55_s15  ;;  %s3648_s26 = int_to_ptr.vmem [resolvable:$true] %s83_s26 }
  0x4a   :  { %s3383_s21 = scalar_lea.hbm %s3973_s3, 4096 }
  0x4b   :  { %p3384_p4 = scmp.ne.s32.totalorder %s3973_s3, %s3383_s21  ;;  %p3387_p5 = scmp.lt.u32.totalorder %s3383_s21, %s3973_s3 }
  0x4d   :  { %p3389_p6 = pnand %p3387_p5, %p3384_p4 }
  0x4f   :  { %3392 = shalt.err (!%p3389_p6)
}
  0x50   :  { %s3393_s0 = scalar_lea.vmem %s56_s15, 4096  ;;  %p3398_p8 = scmp.lt.s32.totalorder %s56_s15, %s56_s15 }
  0x51   :  { %p3394_p7 = scmp.ne.s32.totalorder %s56_s15, %s3393_s0  ;;  %p3399_p9 = scmp.lt.s32.totalorder %s3393_s0, %s3393_s0 }
  0x53   :  { %p3400_p10 = por %p3399_p9, %p3398_p8 }
  0x55   :  { %p3401_p11 = pnand %p3400_p10, %p3394_p7 }
  0x57   :  { %3404 = shalt.err (!%p3401_p11)
}
  0x58   :  { %61 = dma.hbm_to_vmem [thread:$0]  %s3973_s3, 4096, %s56_s15, [#allocation6], %s3506_s18, %s3506_s18, %s3507_s19  }
  0x59   :  { %s3405_s30 = scalar_lea.hbm %s3977_s7, 4096 }
  0x5a   :  { %p3406_p12 = scmp.ne.s32.totalorder %s3977_s7, %s3405_s30  ;;  %p3409_p13 = scmp.lt.u32.totalorder %s3405_s30, %s3977_s7 }
  0x5c   :  { %p3411_p0 = pnand %p3409_p13, %p3406_p12 }
  0x5e   :  { %3414 = shalt.err (!%p3411_p0)
}
  0x5f   :  { %s3415_s21 = scalar_lea.vmem %s3648_s26, 4096  ;;  %p3420_p2 = scmp.lt.s32.totalorder %s3648_s26, %s3648_s26 }
  0x60   :  { %p3416_p1 = scmp.ne.s32.totalorder %s3648_s26, %s3415_s21  ;;  %p3421_p3 = scmp.lt.s32.totalorder %s3415_s21, %s3415_s21 }
  0x62   :  { %p3422_p4 = por %p3421_p3, %p3420_p2 }
  0x64   :  { %p3423_p5 = pnand %p3422_p4, %p3416_p1 }
  0x66   :  { %3426 = shalt.err (!%p3423_p5)
}
  0x67   :  { %89 = dma.hbm_to_vmem [thread:$0]  %s3977_s7, 4096, %s3648_s26, [#allocation9], %s3506_s18, %s3506_s18, %s3507_s19  }
  0x68   :  { %s3517_s22 = smov [#allocation13]   ;;  %s3518_s27 = smov [#allocation14]  }
  0x69   :  { %s109_s24 = sshll.u32 %s3517_s22, 4  ;;  %s121_s28 = sshll.u32 %s3518_s27, 4  ;;  %s110_s24 = int_to_ptr.vmem [resolvable:$true] %s109_s24  ;;  %s3685_s28 = int_to_ptr.vmem [resolvable:$true] %s121_s28 }
  0x6a   :  { %s3427_s9 = scalar_lea.hbm %s3980_s10, 2048 }
  0x6b   :  { %p3428_p6 = scmp.ne.s32.totalorder %s3980_s10, %s3427_s9  ;;  %p3431_p7 = scmp.lt.u32.totalorder %s3427_s9, %s3980_s10 }
  0x6d   :  { %p3433_p8 = pnand %p3431_p7, %p3428_p6 }
  0x6f   :  { %3436 = shalt.err (!%p3433_p8)
}
  0x70   :  { %s3437_s7 = scalar_lea.vmem %s110_s24, 2048  ;;  %p3442_p10 = scmp.lt.s32.totalorder %s110_s24, %s110_s24 }
  0x71   :  { %p3438_p9 = scmp.ne.s32.totalorder %s110_s24, %s3437_s7  ;;  %p3443_p11 = scmp.lt.s32.totalorder %s3437_s7, %s3437_s7 }
  0x73   :  { %p3444_p12 = por %p3443_p11, %p3442_p10 }
  0x75   :  { %p3445_p13 = pnand %p3444_p12, %p3438_p9 }
  0x77   :  { %3448 = shalt.err (!%p3445_p13)
}
  0x78   :  { %115 = dma.hbm_to_vmem [thread:$0]  %s3980_s10, 2048, %s110_s24, [#allocation12], %s3510_s5, %s3510_s5, %s3511_s23  }
  0x79   :  { %s3449_s21 = scalar_lea.hbm %s3981_s11, 2048 }
  0x7a   :  { %p3450_p0 = scmp.ne.s32.totalorder %s3981_s11, %s3449_s21  ;;  %p3453_p1 = scmp.lt.u32.totalorder %s3449_s21, %s3981_s11 }
  0x7c   :  { %p3455_p2 = pnand %p3453_p1, %p3450_p0 }
  0x7e   :  { %3458 = shalt.err (!%p3455_p2)
}
  0x7f   :  { %s3459_s0 = scalar_lea.vmem %s3685_s28, 2048  ;;  %p3464_p4 = scmp.lt.s32.totalorder %s3685_s28, %s3685_s28 }
  0x80   :  { %p3460_p3 = scmp.ne.s32.totalorder %s3685_s28, %s3459_s0  ;;  %p3465_p5 = scmp.lt.s32.totalorder %s3459_s0, %s3459_s0 }
  0x82   :  { %p3466_p6 = por %p3465_p5, %p3464_p4 }
  0x84   :  { %p3467_p7 = pnand %p3466_p6, %p3460_p3 }
  0x86   :  { %3470 = shalt.err (!%p3467_p7)
}
  0x87   :  { %127 = dma.hbm_to_vmem [thread:$0]  %s3981_s11, 2048, %s3685_s28, [#allocation15], %s3510_s5, %s3510_s5, %s3511_s23  }
  0x88   :  { %3493 = dma.done.wait [#allocation3], 1792  }
  0x89   :  { %3494 = vsyncadd [#allocation3], 4294965504 }
  0x8a   :  { %3495 = dma.done.wait [#allocation6], 18432  }
  0x8b   :  { %3496 = vsyncadd [#allocation6], 4294948864 }
  0x8c   :  { %3497 = dma.done.wait [#allocation9], 8192  }
  0x8d   :  { %3498 = vsyncadd [#allocation9], 4294959104 }
  0x8e   :  { %3499 = dma.done.wait [#allocation12], 4096  }
  0x8f   :  { %3500 = vsyncadd [#allocation12], 4294963200 }
  0x90   :  { %3501 = dma.done.wait [#allocation15], 2048  }
  0x91   :  { %3502 = vsyncadd [#allocation15], 4294965248  ;;  %v3722_v0 = vld [vmem:[#allocation2] sm:$0xff]  ;;  %v3724_v1 = vld [vmem:[#allocation2 + $0x8] sm:$0xff]  ;;  %s3520_s25 = smov [#allocation16]  }
  0x92   :  { %v3726_v2 = vld [vmem:[#allocation2 + $0x10] sm:$0xff]  ;;  %v3728_v3 = vld [vmem:[#allocation2 + $0x18] sm:$0xff]  ;;  %v282_v4 = vmul.f32 %v3722_v0, %v3722_v0  ;;  %v283_v5 = vmul.f32 %v3724_v1, %v3724_v1  ;;  %v3736_v7 = vld [vmem:[#allocation2 + $0x20] sm:$0xff]  ;;  %s2520_s29 = sshll.u32 %s3520_s25, 4  ;;  %s2521_s29 = int_to_ptr.vmem [resolvable:$true] %s2520_s29 }
  0x93   :  { %v284_v6 = vmul.f32 %v3726_v2, %v3726_v2  ;;  %v3738_v8 = vld [vmem:[#allocation2 + $0x38] sm:$0xff]  ;;  %v3740_v9 = vld [vmem:[#allocation2 + $0x40] sm:$0xff]  ;;  %v3742_v10 = vld [vmem:[#allocation2 + $0x28] sm:$0xff]  ;;  %v285_v11 = vmul.f32 %v3728_v3, %v3728_v3  ;;  %v286_v21 = vmul.f32 %v3736_v7, %v3736_v7  ;;  %s3471_s30 = scalar_lea.vmem %s2521_s29, 256  ;;  %p3476_p9 = scmp.lt.s32.totalorder %s2521_s29, %s2521_s29 }
  0x94   :  { %v296_v12 = vadd.f32 %v283_v5, %v282_v4  ;;  %v3746_v13 = vld [vmem:[#allocation2 + $0x48] sm:$0xff]  ;;  %v3748_v14 = vld [vmem:[#allocation2 + $0x50] sm:$0xff]  ;;  %v289_v15 = vmul.f32 %v3738_v8, %v3738_v8  ;;  %v290_v16 = vmul.f32 %v3740_v9, %v3740_v9  ;;  %v3756_v18 = vld [vmem:[#allocation2 + $0x58] sm:$0xff]  ;;  %v287_v28 = vmul.f32 %v3742_v10, %v3742_v10  ;;  %p3472_p8 = scmp.ne.s32.totalorder %s2521_s29, %s3471_s30  ;;  %p3477_p10 = scmp.lt.s32.totalorder %s3471_s30, %s3471_s30 }
  0x95   :  { %v3754_v17 = vld [vmem:[#allocation2 + $0x30] sm:$0xff]  ;;  %v3758_v19 = vld [vmem:[#allocation2 + $0x60] sm:$0xff]  ;;  %v291_v20 = vmul.f32 %v3746_v13, %v3746_v13  ;;  %v292_v23 = vmul.f32 %v3748_v14, %v3748_v14  ;;  %v293_v30 = vmul.f32 %v3756_v18, %v3756_v18  ;;  %v3770_v32 = vld [vmem:[#allocation2 + $0x68] sm:$0xff] }
  0x96   :  { %v297_v22 = vadd.f32 %v296_v12, %v284_v6  ;;  %v304_v24 = vadd.f32 %v290_v16, %v289_v15  ;;  %v2891_v25 = vld [vmem:[#allocation5 + $0x4] ss:$8 sps:$4 sm:$0xff]   ;;  %v2893_v26 = vld [vmem:[#allocation5] ss:$8 sps:$4 sm:$0xff]   ;;  %v2894_v27 = vld [vmem:[#allocation5 + $0x14] ss:$8 sps:$4 sm:$0xff]   ;;  %v288_v34 = vmul.f32 %v3754_v17, %v3754_v17  ;;  %v294_v36 = vmul.f32 %v3758_v19, %v3758_v19  ;;  %p3478_p11 = por %p3477_p10, %p3476_p9 }
  0x97   :  { %922 = vmatprep.subr.bf16.mxu0 %v2891_v25  ;;  %v2896_v33 = vld [vmem:[#allocation5 + $0x10] ss:$8 sps:$4 sm:$0xff]   ;;  %v2897_v38 = vld [vmem:[#allocation5 + $0x24] ss:$8 sps:$4 sm:$0xff]   ;;  %v295_v40 = vmul.f32 %v3770_v32, %v3770_v32  ;;  %v2899_v42 = vld [vmem:[#allocation5 + $0x20] ss:$8 sps:$4 sm:$0xff]  }
  0x98   :  { %v298_v29 = vadd.f32 %v297_v22, %v285_v11  ;;  %v305_v31 = vadd.f32 %v304_v24, %v291_v20  ;;  %923 = vmatpush1.bf16.msra.mxu0 %v2893_v26  ;;  %v2900_v45 = vld [vmem:[#allocation5 + $0x34] ss:$8 sps:$4 sm:$0xff]   ;;  %v2902_v46 = vld [vmem:[#allocation5 + $0x30] ss:$8 sps:$4 sm:$0xff]   ;;  %v2903_v48 = vld [vmem:[#allocation5 + $0x44] ss:$8 sps:$4 sm:$0xff]   ;;  %p3479_p12 = pnand %p3478_p11, %p3472_p8 }
  0x99   :  { %924 = vmatprep.subr.bf16.mxu0 %v2894_v27  ;;  %v2905_v49 = vld [vmem:[#allocation5 + $0x40] ss:$8 sps:$4 sm:$0xff]   ;;  %v2906_v50 = vld [vmem:[#allocation5 + $0x54] ss:$8 sps:$4 sm:$0xff]   ;;  %v2908_v51 = vld [vmem:[#allocation5 + $0x50] ss:$8 sps:$4 sm:$0xff]  }
  0x9a   :  { %v299_v35 = vadd.f32 %v298_v29, %v286_v21  ;;  %v306_v37 = vadd.f32 %v305_v31, %v292_v23  ;;  %v2909_v52 = vld [vmem:[#allocation5 + $0x64] ss:$8 sps:$4 sm:$0xff]   ;;  %v2911_v53 = vld [vmem:[#allocation5 + $0x60] ss:$8 sps:$4 sm:$0xff]   ;;  %v2912_v54 = vld [vmem:[#allocation5 + $0x74] ss:$8 sps:$4 sm:$0xff]  }
  0x9b   :  { %v2914_v55 = vld [vmem:[#allocation5 + $0x70] ss:$8 sps:$4 sm:$0xff]   ;;  %v2915_v56 = vld [vmem:[#allocation5 + $0x84] ss:$8 sps:$4 sm:$0xff]   ;;  %v2917_v57 = vld [vmem:[#allocation5 + $0x80] ss:$8 sps:$4 sm:$0xff]  }
  0x9c   :  { %v300_v39 = vadd.f32 %v299_v35, %v287_v28  ;;  %v307_v41 = vadd.f32 %v306_v37, %v293_v30  ;;  %925 = vmatpush1.bf16.msra.mxu0 %v2896_v33  ;;  %v2918_v58 = vld [vmem:[#allocation5 + $0x94] ss:$8 sps:$4 sm:$0xff]   ;;  %v2920_v59 = vld [vmem:[#allocation5 + $0x90] ss:$8 sps:$4 sm:$0xff]   ;;  %v2921_v60 = vld [vmem:[#allocation5 + $0xa4] ss:$8 sps:$4 sm:$0xff]  }
  0x9d   :  { %926 = vmatprep.subr.bf16.mxu0 %v2897_v38  ;;  %v2923_v61 = vld [vmem:[#allocation5 + $0xa0] ss:$8 sps:$4 sm:$0xff]   ;;  %v2924_v62 = vld [vmem:[#allocation5 + $0xb4] ss:$8 sps:$4 sm:$0xff]   ;;  %v2926_v63 = vld [vmem:[#allocation5 + $0xb0] ss:$8 sps:$4 sm:$0xff]  }
  0x9e   :  { %v301_v43 = vadd.f32 %v300_v39, %v288_v34  ;;  %v308_v44 = vadd.f32 %v307_v41, %v294_v36  ;;  %v2927_v4 = vld [vmem:[#allocation5 + $0xc4] ss:$8 sps:$4 sm:$0xff]   ;;  %v2929_v5 = vld [vmem:[#allocation5 + $0xc0] ss:$8 sps:$4 sm:$0xff]   ;;  %v2930_v6 = vld [vmem:[#allocation5 + $0xd4] ss:$8 sps:$4 sm:$0xff]  }
  0x9f   :  { %v2932_v11 = vld [vmem:[#allocation5 + $0xd0] ss:$8 sps:$4 sm:$0xff]   ;;  %v2933_v12 = vld [vmem:[#allocation5 + $0xe4] ss:$8 sps:$4 sm:$0xff]   ;;  %v2935_v15 = vld [vmem:[#allocation5 + $0xe0] ss:$8 sps:$4 sm:$0xff]  }
  0xa0   :  { %302 = vadd.xlane.f32.xlu0 %v301_v43  ;;  %v309_v47 = vadd.f32 %v308_v44, %v295_v40  ;;  %927 = vmatpush1.bf16.msra.mxu0 %v2899_v42  ;;  %v2936_v16 = vld [vmem:[#allocation5 + $0xf4] ss:$8 sps:$4 sm:$0xff]   ;;  %v2938_v20 = vld [vmem:[#allocation5 + $0xf0] ss:$8 sps:$4 sm:$0xff]   ;;  %v2941_v21 = vld [vmem:[#allocation5 + $0x104] ss:$8 sps:$4 sm:$0xff]  }
  0xa1   :  { %928 = vmatprep.subr.bf16.mxu0 %v2900_v45 }
  0xa4   :  { %310 = vadd.xlane.f32.xlu0 %v309_v47  ;;  %929 = vmatpush1.bf16.msra.mxu0 %v2902_v46  ;;  %v2939_v47 = vld [vmem:[#allocation5 + $0x100] ss:$8 sps:$4 sm:$0xff]  }
  0xa5   :  { %930 = vmatprep.subr.bf16.mxu0 %v2903_v48  ;;  %v2944_v48 = vld [vmem:[#allocation5 + $0x114] ss:$8 sps:$4 sm:$0xff]  }
  0xa8   :  { %931 = vmatpush1.bf16.msra.mxu0 %v2905_v49  ;;  %v2942_v49 = vld [vmem:[#allocation5 + $0x110] ss:$8 sps:$4 sm:$0xff]  }
  0xa9   :  { %932 = vmatprep.subr.bf16.mxu0 %v2906_v50  ;;  %v2945_v50 = vld [vmem:[#allocation5 + $0x120] ss:$8 sps:$4 sm:$0xff]  }
  0xac   :  { %933 = vmatpush1.bf16.msra.mxu0 %v2908_v51  ;;  %v2950_v51 = vld [vmem:[#allocation5 + $0x134] ss:$8 sps:$4 sm:$0xff]  }
  0xad   :  { %934 = vmatprep.subr.bf16.mxu0 %v2909_v52  ;;  %v2948_v52 = vld [vmem:[#allocation5 + $0x130] ss:$8 sps:$4 sm:$0xff]  }
  0xb0   :  { %935 = vmatpush1.bf16.msra.mxu0 %v2911_v53  ;;  %v2953_v53 = vld [vmem:[#allocation5 + $0x144] ss:$8 sps:$4 sm:$0xff]  }
  0xb1   :  { %936 = vmatprep.subr.bf16.mxu0 %v2912_v54  ;;  %v2951_v54 = vld [vmem:[#allocation5 + $0x140] ss:$8 sps:$4 sm:$0xff]  }
  0xb4   :  { %937 = vmatpush1.bf16.msra.mxu0 %v2914_v55  ;;  %v2956_v55 = vld [vmem:[#allocation5 + $0x154] ss:$8 sps:$4 sm:$0xff]  }
  0xb5   :  { %938 = vmatprep.subr.bf16.mxu0 %v2915_v56  ;;  %v2954_v56 = vld [vmem:[#allocation5 + $0x150] ss:$8 sps:$4 sm:$0xff]  }
  0xb8   :  { %939 = vmatpush1.bf16.msra.mxu0 %v2917_v57  ;;  %v2959_v57 = vld [vmem:[#allocation5 + $0x164] ss:$8 sps:$4 sm:$0xff]  }
  0xb9   :  { %940 = vmatprep.subr.bf16.mxu0 %v2918_v58  ;;  %v2957_v58 = vld [vmem:[#allocation5 + $0x160] ss:$8 sps:$4 sm:$0xff]  }
  0xbc   :  { %941 = vmatpush1.bf16.msra.mxu0 %v2920_v59  ;;  %v2962_v59 = vld [vmem:[#allocation5 + $0x174] ss:$8 sps:$4 sm:$0xff]  }
  0xbd   :  { %942 = vmatprep.subr.bf16.mxu0 %v2921_v60  ;;  %v2960_v60 = vld [vmem:[#allocation5 + $0x170] ss:$8 sps:$4 sm:$0xff]  }
  0xc0   :  { %943 = vmatpush1.bf16.msra.mxu0 %v2923_v61  ;;  %v2965_v61 = vld [vmem:[#allocation5 + $0x184] ss:$8 sps:$4 sm:$0xff]  }
  0xc1   :  { %944 = vmatprep.subr.bf16.mxu0 %v2924_v62  ;;  %v2963_v62 = vld [vmem:[#allocation5 + $0x180] ss:$8 sps:$4 sm:$0xff]  }
  0xc4   :  { %945 = vmatpush1.bf16.msra.mxu0 %v2926_v63  ;;  %v2968_v63 = vld [vmem:[#allocation5 + $0x194] ss:$8 sps:$4 sm:$0xff]  }
  0xc5   :  { %946 = vmatprep.subr.bf16.mxu0 %v2927_v4  ;;  %v2966_v4 = vld [vmem:[#allocation5 + $0x190] ss:$8 sps:$4 sm:$0xff]  }
  0xc8   :  { %947 = vmatpush1.bf16.msra.mxu0 %v2929_v5  ;;  %v2971_v5 = vld [vmem:[#allocation5 + $0x1a4] ss:$8 sps:$4 sm:$0xff]  }
  0xc9   :  { %948 = vmatprep.subr.bf16.mxu0 %v2930_v6  ;;  %v2969_v6 = vld [vmem:[#allocation5 + $0x1a0] ss:$8 sps:$4 sm:$0xff]  }
  0xcc   :  { %949 = vmatpush1.bf16.msra.mxu0 %v2932_v11  ;;  %v2974_v11 = vld [vmem:[#allocation5 + $0x1b4] ss:$8 sps:$4 sm:$0xff]  }
  0xcd   :  { %950 = vmatprep.subr.bf16.mxu0 %v2933_v12  ;;  %v2972_v12 = vld [vmem:[#allocation5 + $0x1b0] ss:$8 sps:$4 sm:$0xff]  }
  0xd0   :  { %951 = vmatpush1.bf16.msra.mxu0 %v2935_v15  ;;  %v2977_v15 = vld [vmem:[#allocation5 + $0x1c4] ss:$8 sps:$4 sm:$0xff]  }
  0xd1   :  { %952 = vmatprep.subr.bf16.mxu0 %v2936_v16  ;;  %v2975_v16 = vld [vmem:[#allocation5 + $0x1c0] ss:$8 sps:$4 sm:$0xff]  }
  0xd4   :  { %953 = vmatpush1.bf16.msra.mxu0 %v2938_v20  ;;  %v2980_v20 = vld [vmem:[#allocation5 + $0x1d4] ss:$8 sps:$4 sm:$0xff]  }
  0xd5   :  { %965 = vmatprep.subr.bf16.mxu0 %v2941_v21  ;;  %v2978_v21 = vld [vmem:[#allocation5 + $0x1d0] ss:$8 sps:$4 sm:$0xff]  }
 0x12d   :  { %v303_v22 = vpop.xlane.xlu0 %302 }
 0x12e   :  { %3251 = vrsqrt.f32 %v303_v22  ;;  %vm314_vm0 = vcmp.eq.f32.partialorder %v303_v22, inf  ;;  %v317_v26 = vand.u32 2147483648, %v303_v22  ;;  %vm316_vm1 = vcmp.eq.f32.partialorder %v303_v22, 0.0 }
 0x131   :  { %v311_v23 = vpop.xlane.xlu0 %310 }
 0x132   :  { %3253 = vrsqrt.f32 %v311_v23  ;;  %vm321_vm2 = vcmp.eq.f32.partialorder %v311_v23, inf  ;;  %v324_v33 = vand.u32 2147483648, %v311_v23  ;;  %vm323_vm3 = vcmp.eq.f32.partialorder %v311_v23, 0.0 }
 0x138   :  { %v3252_v24 = vpop.eup %3251 }
 0x139   :  { %v313_v25 = vmul.f32 %v3252_v24, %v303_v22  ;;  %v2986_v24 = vld [vmem:[#allocation5 + $0x1f4] ss:$8 sps:$4 sm:$0xff]  }
 0x13b   :  { %v315_v27 = vsel %vm314_vm0, %v303_v22, %v313_v25  ;;  %v2983_v22 = vld [vmem:[#allocation5 + $0x1e4] ss:$8 sps:$4 sm:$0xff]   ;;  %v2984_v25 = vld [vmem:[#allocation5 + $0x1f0] ss:$8 sps:$4 sm:$0xff]  }
 0x13c   :  { %v3254_v28 = vpop.eup %3253  ;;  %v318_v29 = vsel %vm316_vm1, %v317_v26, %v315_v27  ;;  %v2989_v26 = vld [vmem:[#allocation5 + $0x204] ss:$8 sps:$4 sm:$0xff]   ;;  %v2987_v27 = vld [vmem:[#allocation5 + $0x200] ss:$8 sps:$4 sm:$0xff]  }
 0x13d   :  { %v326_v30 = vadd.f32 0.02, %v318_v29  ;;  %v320_v31 = vmul.f32 %v3254_v28, %v311_v23  ;;  %v2992_v28 = vld [vmem:[#allocation5 + $0x214] ss:$8 sps:$4 sm:$0xff]   ;;  %v2990_v29 = vld [vmem:[#allocation5 + $0x210] ss:$8 sps:$4 sm:$0xff]  }
 0x13f   :  { %3255 = vrcp.f32 %v326_v30  ;;  %v322_v34 = vsel %vm321_vm2, %v311_v23, %v320_v31  ;;  %v2981_v23 = vld [vmem:[#allocation5 + $0x1e0] ss:$8 sps:$4 sm:$0xff]   ;;  %v2995_v30 = vld [vmem:[#allocation5 + $0x224] ss:$8 sps:$4 sm:$0xff]  }
 0x140   :  { %v325_v35 = vsel %vm323_vm3, %v324_v33, %v322_v34  ;;  %v2993_v31 = vld [vmem:[#allocation5 + $0x220] ss:$8 sps:$4 sm:$0xff]   ;;  %v2998_v33 = vld [vmem:[#allocation5 + $0x234] ss:$8 sps:$4 sm:$0xff]   ;;  %v2996_v34 = vld [vmem:[#allocation5 + $0x230] ss:$8 sps:$4 sm:$0xff]  }
 0x141   :  { %v327_v36 = vadd.f32 0.02, %v325_v35  ;;  %v3001_v35 = vld [vmem:[#allocation5 + $0x244] ss:$8 sps:$4 sm:$0xff]  }
 0x143   :  { %3257 = vrcp.f32 %v327_v36  ;;  %v2999_v36 = vld [vmem:[#allocation5 + $0x240] ss:$8 sps:$4 sm:$0xff]  }
 0x149   :  { %v3256_v37 = vpop.eup %3255 }
 0x14a   :  { %v331_v38 = vmul.f32 %v3256_v37, %v3724_v1  ;;  %v330_v40 = vmul.f32 %v3256_v37, %v3722_v0  ;;  %v3781_v41 = vmul.f32 %v3256_v37, %v3726_v2  ;;  %v3784_v42 = vmul.f32 %v3256_v37, %v3742_v10 }
 0x14b   :  { %v3787_v43 = vmul.f32 %v3256_v37, %v3736_v7  ;;  %v3802_v10 = vmul.f32 %v3256_v37, %v3754_v17 }
 0x14d   :  { %v3258_v39 = vpop.eup %3257 }
 0x14e   :  { %v338_v44 = vmul.f32 %v3258_v39, %v3740_v9  ;;  %v337_v45 = vmul.f32 %v3258_v39, %v3738_v8  ;;  %v340_v46 = vmul.f32 %v3258_v39, %v3748_v14  ;;  %v3793_v1 = vmul.f32 %v3258_v39, %v3746_v13 }
 0x14f   :  { %v3796_v0 = vmul.f32 %v3258_v39, %v3758_v19  ;;  %v3799_v2 = vmul.f32 %v3258_v39, %v3756_v18  ;;  %v3805_v7 = vmul.f32 %v3258_v39, %v3770_v32  ;;  %v333_v14 = vmul.f32 %v3256_v37, %v3728_v3  ;;  %v2947_v3 = vld [vmem:[#allocation5 + $0x124] ss:$8 sps:$4 sm:$0xff]   ;;  %v3004_v37 = vld [vmem:[#allocation5 + $0x254] ss:$8 sps:$4 sm:$0xff]  }
 0x150   :  { %v345_v9 = vpack.c.bf16 %v338_v44, %v331_v38  ;;  %v344_v8 = vpack.c.bf16 %v337_v45, %v330_v40  ;;  %v346_v13 = vpack.c.bf16 %v3793_v1, %v3781_v41  ;;  %v3002_v38 = vld [vmem:[#allocation5 + $0x250] ss:$8 sps:$4 sm:$0xff]   ;;  %v3007_v39 = vld [vmem:[#allocation5 + $0x264] ss:$8 sps:$4 sm:$0xff]   ;;  %v3005_v40 = vld [vmem:[#allocation5 + $0x260] ss:$8 sps:$4 sm:$0xff]  }
 0x151   :  { %v349_v19 = vpack.c.bf16 %v3796_v0, %v3784_v42  ;;  %v348_v18 = vpack.c.bf16 %v3799_v2, %v3787_v43  ;;  %v350_v17 = vpack.c.bf16 %v3805_v7, %v3802_v10  ;;  %v347_v32 = vpack.c.bf16 %v340_v46, %v333_v14  ;;  %v3010_v41 = vld [vmem:[#allocation5 + $0x274] ss:$8 sps:$4 sm:$0xff]   ;;  %v3008_v42 = vld [vmem:[#allocation5 + $0x270] ss:$8 sps:$4 sm:$0xff]   ;;  %v3013_v44 = vld [vmem:[#allocation5 + $0x284] ss:$8 sps:$4 sm:$0xff]  }
 0x152   :  { %954 = vmatprep.mubr.bf16.mxu0 %v345_v9  ;;  %v3011_v45 = vld [vmem:[#allocation5 + $0x280] ss:$8 sps:$4 sm:$0xff]   ;;  %v3016_v46 = vld [vmem:[#allocation5 + $0x294] ss:$8 sps:$4 sm:$0xff]   ;;  %v3014_v1 = vld [vmem:[#allocation5 + $0x290] ss:$8 sps:$4 sm:$0xff]  }
 0x153   :  { %955 = vmatmul.mubr.bf16.vlgmr.msra.gmra.mrb[0].mxu0 %v344_v8  ;;  %v3019_v0 = vld [vmem:[#allocation5 + $0x2a4] ss:$8 sps:$4 sm:$0xff]   ;;  %v3017_v9 = vld [vmem:[#allocation5 + $0x2a0] ss:$8 sps:$4 sm:$0xff]   ;;  %v3020_v8 = vld [vmem:[#allocation5 + $0x2b0] ss:$8 sps:$4 sm:$0xff]  }
 0x154   :  { %966 = vmatpush1.bf16.msra.mxu0 %v2939_v47  ;;  %997 = vmatprep.mubr.bf16.mxu0 %v347_v32  ;;  %v3022_v47 = vld [vmem:[#allocation5 + $0x2b4] ss:$8 sps:$4 sm:$0xff]   ;;  %v3025_v14 = vld [vmem:[#allocation5 + $0x2c4] ss:$8 sps:$4 sm:$0xff]   ;;  %v3050_v43 = vld [vmem:[#allocation5 + $0x350] ss:$8 sps:$4 sm:$0xff]  }
 0x155   :  { %967 = vmatprep.subr.bf16.mxu0 %v2944_v48  ;;  %v3028_v48 = vld [vmem:[#allocation5 + $0x2d4] ss:$8 sps:$4 sm:$0xff]   ;;  %v3031_v32 = vld [vmem:[#allocation5 + $0x2e4] ss:$8 sps:$4 sm:$0xff]   ;;  %v3076_v7 = vld [vmem:[#allocation7 + $0x50] ss:$8 sps:$4 sm:$0xff]  }
 0x156   :  { %v3055_v2 = vld [vmem:[#allocation5 + $0x364] ss:$8 sps:$4 sm:$0xff]   ;;  %v3074_v10 = vld [vmem:[#allocation7 + $0x54] ss:$8 sps:$4 sm:$0xff]  }
 0x158   :  { %968 = vmatpush1.bf16.msra.mxu0 %v2942_v49  ;;  %v3029_v49 = vld [vmem:[#allocation5 + $0x2e0] ss:$8 sps:$4 sm:$0xff]  }
 0x159   :  { %969 = vmatprep.subr.bf16.mxu0 %v2947_v3  ;;  %v3034_v3 = vld [vmem:[#allocation5 + $0x2f4] ss:$8 sps:$4 sm:$0xff]  }
 0x15c   :  { %970 = vmatpush1.bf16.msra.mxu0 %v2945_v50  ;;  %v3032_v50 = vld [vmem:[#allocation5 + $0x2f0] ss:$8 sps:$4 sm:$0xff]  }
 0x15d   :  { %971 = vmatprep.subr.bf16.mxu0 %v2950_v51  ;;  %v3037_v51 = vld [vmem:[#allocation5 + $0x304] ss:$8 sps:$4 sm:$0xff]  }
 0x160   :  { %972 = vmatpush1.bf16.msra.mxu0 %v2948_v52  ;;  %v3035_v52 = vld [vmem:[#allocation5 + $0x300] ss:$8 sps:$4 sm:$0xff]  }
 0x161   :  { %973 = vmatprep.subr.bf16.mxu0 %v2953_v53  ;;  %v3040_v53 = vld [vmem:[#allocation5 + $0x314] ss:$8 sps:$4 sm:$0xff]  }
 0x164   :  { %974 = vmatpush1.bf16.msra.mxu0 %v2951_v54  ;;  %v3038_v54 = vld [vmem:[#allocation5 + $0x310] ss:$8 sps:$4 sm:$0xff]  }
 0x165   :  { %975 = vmatprep.subr.bf16.mxu0 %v2956_v55  ;;  %v3519_v55 = vmov 0  }
 0x168   :  { %976 = vmatpush1.bf16.msra.mxu0 %v2954_v56  ;;  %v3043_v56 = vld [vmem:[#allocation5 + $0x324] ss:$8 sps:$4 sm:$0xff]  }
 0x169   :  { %977 = vmatprep.subr.bf16.mxu0 %v2959_v57  ;;  %v3041_v57 = vld [vmem:[#allocation5 + $0x320] ss:$8 sps:$4 sm:$0xff]  }
 0x16c   :  { %978 = vmatpush1.bf16.msra.mxu0 %v2957_v58  ;;  %v3046_v58 = vld [vmem:[#allocation5 + $0x334] ss:$8 sps:$4 sm:$0xff]  }
 0x16d   :  { %979 = vmatprep.subr.bf16.mxu0 %v2962_v59  ;;  %v3044_v59 = vld [vmem:[#allocation5 + $0x330] ss:$8 sps:$4 sm:$0xff]  }
 0x170   :  { %980 = vmatpush1.bf16.msra.mxu0 %v2960_v60  ;;  %v3049_v60 = vld [vmem:[#allocation5 + $0x344] ss:$8 sps:$4 sm:$0xff]  }
 0x171   :  { %981 = vmatprep.subr.bf16.mxu0 %v2965_v61  ;;  %v3047_v61 = vld [vmem:[#allocation5 + $0x340] ss:$8 sps:$4 sm:$0xff]  }
 0x174   :  { %982 = vmatpush1.bf16.msra.mxu0 %v2963_v62  ;;  %v3052_v62 = vld [vmem:[#allocation5 + $0x354] ss:$8 sps:$4 sm:$0xff]  }
 0x175   :  { %983 = vmatprep.subr.bf16.mxu0 %v2968_v63  ;;  %v3058_v63 = vld [vmem:[#allocation5 + $0x374] ss:$8 sps:$4 sm:$0xff]  }
 0x178   :  { %984 = vmatpush1.bf16.msra.mxu0 %v2966_v4  ;;  %v3056_v4 = vld [vmem:[#allocation5 + $0x370] ss:$8 sps:$4 sm:$0xff]  }
 0x179   :  { %985 = vmatprep.subr.bf16.mxu0 %v2971_v5  ;;  %v3059_v5 = vld [vmem:[#allocation7 + $0x4] ss:$8 sps:$4 sm:$0xff]  }
 0x17a   :  { %1336 = vmatprep.subr.bf16.mxu1 %v3059_v5 }
 0x17c   :  { %986 = vmatpush1.bf16.msra.mxu0 %v2969_v6  ;;  %v3061_v6 = vld [vmem:[#allocation7] ss:$8 sps:$4 sm:$0xff]  }
 0x17d   :  { %987 = vmatprep.subr.bf16.mxu0 %v2974_v11  ;;  %v3062_v11 = vld [vmem:[#allocation7 + $0x14] ss:$8 sps:$4 sm:$0xff]   ;;  %1337 = vmatpush1.bf16.msra.mxu1 %v3061_v6 }
 0x17e   :  { %1338 = vmatprep.subr.bf16.mxu1 %v3062_v11 }
 0x180   :  { %988 = vmatpush1.bf16.msra.mxu0 %v2972_v12  ;;  %v3064_v12 = vld [vmem:[#allocation7 + $0x10] ss:$8 sps:$4 sm:$0xff]  }
 0x181   :  { %989 = vmatprep.subr.bf16.mxu0 %v2977_v15  ;;  %v3065_v15 = vld [vmem:[#allocation7 + $0x24] ss:$8 sps:$4 sm:$0xff]   ;;  %1339 = vmatpush1.bf16.msra.mxu1 %v3064_v12 }
 0x182   :  { %1340 = vmatprep.subr.bf16.mxu1 %v3065_v15 }
 0x184   :  { %990 = vmatpush1.bf16.msra.mxu0 %v2975_v16  ;;  %v3067_v16 = vld [vmem:[#allocation7 + $0x20] ss:$8 sps:$4 sm:$0xff]  }
 0x185   :  { %991 = vmatprep.subr.bf16.mxu0 %v2980_v20  ;;  %v3068_v20 = vld [vmem:[#allocation7 + $0x34] ss:$8 sps:$4 sm:$0xff]   ;;  %1341 = vmatpush1.bf16.msra.mxu1 %v3067_v16 }
 0x186   :  { %1342 = vmatprep.subr.bf16.mxu1 %v3068_v20 }
 0x188   :  { %992 = vmatpush1.bf16.msra.mxu0 %v2978_v21  ;;  %v3070_v21 = vld [vmem:[#allocation7 + $0x30] ss:$8 sps:$4 sm:$0xff]  }
 0x189   :  { %993 = vmatprep.subr.bf16.mxu0 %v2983_v22  ;;  %v3071_v22 = vld [vmem:[#allocation7 + $0x44] ss:$8 sps:$4 sm:$0xff]   ;;  %1343 = vmatpush1.bf16.msra.mxu1 %v3070_v21 }
 0x18a   :  { %1344 = vmatprep.subr.bf16.mxu1 %v3071_v22 }
 0x18c   :  { %994 = vmatpush1.bf16.msra.mxu0 %v2981_v23  ;;  %v3073_v23 = vld [vmem:[#allocation7 + $0x40] ss:$8 sps:$4 sm:$0xff]  }
 0x18d   :  { %995 = vmatprep.subr.bf16.mxu0 %v2986_v24  ;;  %1345 = vmatpush1.bf16.msra.mxu1 %v3073_v23  ;;  %v3079_v24 = vld [vmem:[#allocation7 + $0x60] ss:$8 sps:$4 sm:$0xff]  }
 0x18e   :  { %1346 = vmatprep.subr.bf16.mxu1 %v3074_v10 }
 0x190   :  { %996 = vmatpush1.bf16.msra.mxu0 %v2984_v25  ;;  %v352_v25 = vlaneseq }
 0x191   :  { %1008 = vmatprep.subr.bf16.mxu0 %v2989_v26  ;;  %1347 = vmatpush1.bf16.msra.mxu1 %v3076_v7 }
 0x192   :  { %v353_v26 = vshrl.u32 %v352_v25, 7 }
 0x193   :  { %998 = vmatmul.mubr.bf16.vlgmr.msra.gmra.mrb[0].mxu0 %v346_v13  ;;  %v3023_v13 = vld [vmem:[#allocation5 + $0x2c0] ss:$8 sps:$4 sm:$0xff]  }
 0x194   :  { %1009 = vmatpush1.bf16.msra.mxu0 %v2987_v27  ;;  %1040 = vmatprep.mubr.bf16.mxu0 %v349_v19  ;;  %v3026_v19 = vld [vmem:[#allocation5 + $0x2d0] ss:$8 sps:$4 sm:$0xff]   ;;  %v3828_v27 = vsub.s32 0, %v353_v26 }
 0x195   :  { %1010 = vmatprep.subr.bf16.mxu0 %v2992_v28  ;;  %v281_v28 = vld [vmem:[%s3972_s2] sm:$0x3] }
 0x198   :  { %1011 = vmatpush1.bf16.msra.mxu0 %v2990_v29  ;;  %v3833_v29 = vsub.s32 1, %v353_v26  ;;  %v3107_v26 = vld [vmem:[#allocation8] ss:$8 sps:$4 sm:$0xff]  }
 0x199   :  { %1012 = vmatprep.subr.bf16.mxu0 %v2995_v30  ;;  %v355_v30 = vrot.slane %v281_v28, %v3828_v27 }
 0x19c   :  { %1013 = vmatpush1.bf16.msra.mxu0 %v2993_v31  ;;  %v359_v31 = vrot.slane %v281_v28, %v3833_v29  ;;  %v3109_v28 = vld [vmem:[#allocation8 + $0x4] ss:$8 sps:$4 sm:$0xff]  }
 0x19d   :  { %1014 = vmatprep.subr.bf16.mxu0 %v2998_v33 }
 0x1a0   :  { %1015 = vmatpush1.bf16.msra.mxu0 %v2996_v34 }
 0x1a1   :  { %1016 = vmatprep.subr.bf16.mxu0 %v3001_v35 }
 0x1a4   :  { %1017 = vmatpush1.bf16.msra.mxu0 %v2999_v36 }
 0x1a5   :  { %1018 = vmatprep.subr.bf16.mxu0 %v3004_v37 }
 0x1a8   :  { %1019 = vmatpush1.bf16.msra.mxu0 %v3002_v38 }
 0x1a9   :  { %1020 = vmatprep.subr.bf16.mxu0 %v3007_v39 }
 0x1ac   :  { %1021 = vmatpush1.bf16.msra.mxu0 %v3005_v40 }
 0x1ad   :  { %1022 = vmatprep.subr.bf16.mxu0 %v3010_v41 }
 0x1b0   :  { %1023 = vmatpush1.bf16.msra.mxu0 %v3008_v42 }
 0x1b1   :  { %1024 = vmatprep.subr.bf16.mxu0 %v3013_v44 }
 0x1b4   :  { %1025 = vmatpush1.bf16.msra.mxu0 %v3011_v45 }
 0x1b5   :  { %1026 = vmatprep.subr.bf16.mxu0 %v3016_v46 }
 0x1b8   :  { %1027 = vmatpush1.bf16.msra.mxu0 %v3014_v1 }
 0x1b9   :  { %1028 = vmatprep.subr.bf16.mxu0 %v3019_v0 }
 0x1bc   :  { %1029 = vmatpush1.bf16.msra.mxu0 %v3017_v9 }
 0x1bd   :  { %1030 = vmatprep.subr.bf16.mxu0 %v3022_v47 }
 0x1c0   :  { %1031 = vmatpush1.bf16.msra.mxu0 %v3020_v8 }
 0x1c1   :  { %1032 = vmatprep.subr.bf16.mxu0 %v3025_v14  ;;  %v3080_v14 = vld [vmem:[#allocation7 + $0x74] ss:$8 sps:$4 sm:$0xff]  }
 0x1c4   :  { %1033 = vmatpush1.bf16.msra.mxu0 %v3023_v13  ;;  %v3082_v13 = vld [vmem:[#allocation7 + $0x70] ss:$8 sps:$4 sm:$0xff]  }
 0x1c5   :  { %1034 = vmatprep.subr.bf16.mxu0 %v3028_v48  ;;  %v3083_v48 = vld [vmem:[#allocation7 + $0x84] ss:$8 sps:$4 sm:$0xff]  }
 0x1c8   :  { %1035 = vmatpush1.bf16.msra.mxu0 %v3026_v19  ;;  %v3085_v19 = vld [vmem:[#allocation7 + $0x80] ss:$8 sps:$4 sm:$0xff]  }
 0x1c9   :  { %1036 = vmatprep.subr.bf16.mxu0 %v3031_v32  ;;  %v3086_v32 = vld [vmem:[#allocation7 + $0x94] ss:$8 sps:$4 sm:$0xff]  }
 0x1cc   :  { %1037 = vmatpush1.bf16.msra.mxu0 %v3029_v49  ;;  %v3088_v49 = vld [vmem:[#allocation7 + $0x90] ss:$8 sps:$4 sm:$0xff]  }
 0x1cd   :  { %1038 = vmatprep.subr.bf16.mxu0 %v3034_v3  ;;  %v3089_v3 = vld [vmem:[#allocation7 + $0xa4] ss:$8 sps:$4 sm:$0xff]  }
 0x1d0   :  { %1039 = vmatpush1.bf16.msra.mxu0 %v3032_v50  ;;  %v3091_v50 = vld [vmem:[#allocation7 + $0xa0] ss:$8 sps:$4 sm:$0xff]  }
 0x1d1   :  { %1051 = vmatprep.subr.bf16.mxu0 %v3037_v51  ;;  %v3092_v51 = vld [vmem:[#allocation7 + $0xb4] ss:$8 sps:$4 sm:$0xff]  }
 0x1d3   :  { %1041 = vmatmul.mubr.bf16.vlgmr.msra.gmra.mrb[0].mxu0 %v348_v18  ;;  %v3053_v18 = vld [vmem:[#allocation5 + $0x360] ss:$8 sps:$4 sm:$0xff]  }
 0x1d4   :  { %1052 = vmatpush1.bf16.msra.mxu0 %v3035_v52  ;;  %1083 = vmatprep.mubr.bf16.mxu0 %v3519_v55  ;;  %v3094_v52 = vld [vmem:[#allocation7 + $0xb0] ss:$8 sps:$4 sm:$0xff]   ;;  %v3098_v55 = vld [vmem:[#allocation7 + $0xd4] ss:$8 sps:$4 sm:$0xff]  }
 0x1d5   :  { %1053 = vmatprep.subr.bf16.mxu0 %v3040_v53  ;;  %v3095_v53 = vld [vmem:[#allocation7 + $0xc4] ss:$8 sps:$4 sm:$0xff]  }
 0x1d8   :  { %1054 = vmatpush1.bf16.msra.mxu0 %v3038_v54  ;;  %v3097_v54 = vld [vmem:[#allocation7 + $0xc0] ss:$8 sps:$4 sm:$0xff]  }
 0x1d9   :  { %1055 = vmatprep.subr.bf16.mxu0 %v3043_v56  ;;  %v3100_v56 = vld [vmem:[#allocation7 + $0xd0] ss:$8 sps:$4 sm:$0xff]  }
 0x1dc   :  { %1056 = vmatpush1.bf16.msra.mxu0 %v3041_v57  ;;  %v3101_v57 = vld [vmem:[#allocation7 + $0xe4] ss:$8 sps:$4 sm:$0xff]  }
 0x1dd   :  { %1057 = vmatprep.subr.bf16.mxu0 %v3046_v58  ;;  %v3103_v58 = vld [vmem:[#allocation7 + $0xe0] ss:$8 sps:$4 sm:$0xff]  }
 0x1e0   :  { %1058 = vmatpush1.bf16.msra.mxu0 %v3044_v59  ;;  %v3104_v59 = vld [vmem:[#allocation7 + $0xf4] ss:$8 sps:$4 sm:$0xff]  }
 0x1e1   :  { %1059 = vmatprep.subr.bf16.mxu0 %v3049_v60  ;;  %v3106_v60 = vld [vmem:[#allocation7 + $0xf0] ss:$8 sps:$4 sm:$0xff]  }
 0x1e4   :  { %1060 = vmatpush1.bf16.msra.mxu0 %v3047_v61 }
 0x1e5   :  { %1061 = vmatprep.subr.bf16.mxu0 %v3052_v62 }
 0x1e8   :  { %1062 = vmatpush1.bf16.msra.mxu0 %v3050_v43 }
 0x1e9   :  { %1063 = vmatprep.subr.bf16.mxu0 %v3055_v2 }
 0x1ec   :  { %1064 = vmatpush1.bf16.msra.mxu0 %v3053_v18 }
 0x1ed   :  { %1065 = vmatprep.subr.bf16.mxu0 %v3058_v63 }
 0x1f0   :  { %1066 = vmatpush1.bf16.msra.mxu0 %v3056_v4 }
 0x1f3   :  { %1084 = vmatmul.mubr.bf16.vlgmr.msra.gmra.mrb[0].mxu0 %v350_v17  ;;  %v3077_v17 = vld [vmem:[#allocation7 + $0x64] ss:$8 sps:$4 sm:$0xff]  }
 0x1f4   :  { %1348 = vmatprep.subr.bf16.mxu1 %v3077_v17 }
 0x1f5   :  { %1349 = vmatpush1.bf16.msra.mxu1 %v3079_v24 }
 0x1f6   :  { %1350 = vmatprep.subr.bf16.mxu1 %v3080_v14 }
 0x1f9   :  { %1351 = vmatpush1.bf16.msra.mxu1 %v3082_v13 }
 0x1fa   :  { %1352 = vmatprep.subr.bf16.mxu1 %v3083_v48 }
 0x1fd   :  { %1353 = vmatpush1.bf16.msra.mxu1 %v3085_v19 }
 0x1fe   :  { %1354 = vmatprep.subr.bf16.mxu1 %v3086_v32 }
 0x201   :  { %1355 = vmatpush1.bf16.msra.mxu1 %v3088_v49 }
 0x202   :  { %1356 = vmatprep.subr.bf16.mxu1 %v3089_v3 }
 0x205   :  { %1357 = vmatpush1.bf16.msra.mxu1 %v3091_v50 }
 0x206   :  { %1358 = vmatprep.subr.bf16.mxu1 %v3092_v51 }
 0x209   :  { %1359 = vmatpush1.bf16.msra.mxu1 %v3094_v52 }
 0x20a   :  { %1360 = vmatprep.subr.bf16.mxu1 %v3095_v53 }
 0x20d   :  { %1361 = vmatpush1.bf16.msra.mxu1 %v3097_v54 }
 0x20e   :  { %1362 = vmatprep.subr.bf16.mxu1 %v3098_v55 }
 0x211   :  { %1363 = vmatpush1.bf16.msra.mxu1 %v3100_v56 }
 0x212   :  { %1364 = vmatprep.subr.bf16.mxu1 %v3101_v57 }
 0x215   :  { %1365 = vmatpush1.bf16.msra.mxu1 %v3103_v58  ;;  %v3133_v58 = vld [vmem:[#allocation8 + $0x84] ss:$8 sps:$4 sm:$0xff]  }
 0x216   :  { %1366 = vmatprep.subr.bf16.mxu1 %v3104_v59  ;;  %v3131_v59 = vld [vmem:[#allocation8 + $0x80] ss:$8 sps:$4 sm:$0xff]  }
 0x219   :  { %1367 = vmatpush1.bf16.msra.mxu1 %v3106_v60  ;;  %v3136_v60 = vld [vmem:[#allocation8 + $0x94] ss:$8 sps:$4 sm:$0xff]  }
 0x21a   :  { %1621 = vmatprep.subr.bf16.mxu1 %v3109_v28  ;;  %v3165_v28 = vld [vmem:[#allocation13 + $0x68] sm:$0xff]  }
 0x2c6   :  { %v1085_v33 = vpop.f32.mrb[0].mxu0 }
 0x2c7   :  { %v2859_v34 = vadd.f32 %v1085_v33, %v355_v30  ;;  %v1087_v35 = vpop.f32.mrb[1].mxu0  ;;  %v3115_v33 = vld [vmem:[#allocation8 + $0x24] ss:$8 sps:$4 sm:$0xff]  }
 0x2c8   :  { %v2860_v36 = vadd.f32 %v1087_v35, %v359_v31  ;;  %v1089_v37 = vpop.f32.mrb[2].mxu0  ;;  %v3118_v35 = vld [vmem:[#allocation8 + $0x34] ss:$8 sps:$4 sm:$0xff]  }
 0x2c9   :  { %v3837_v38 = vmax.f32 %v2859_v34, 0.0  ;;  %v2861_v39 = vadd.f32 %v1089_v37, %v355_v30  ;;  %v1091_v40 = vpop.f32.mrb[3].mxu0  ;;  %v3112_v30 = vld [vmem:[#allocation8 + $0x14] ss:$8 sps:$4 sm:$0xff]   ;;  %v3113_v34 = vld [vmem:[#allocation8 + $0x20] ss:$8 sps:$4 sm:$0xff]  }
 0x2ca   :  { %v3839_v41 = vmax.f32 %v2860_v36, 0.0  ;;  %v2862_v42 = vadd.f32 %v1091_v40, %v359_v31  ;;  %v3110_v31 = vld [vmem:[#allocation8 + $0x10] ss:$8 sps:$4 sm:$0xff]   ;;  %v3121_v37 = vld [vmem:[#allocation8 + $0x44] ss:$8 sps:$4 sm:$0xff]  }
 0x2cb   :  { %v3841_v44 = vmax.f32 %v2861_v39, 0.0  ;;  %v1131_v45 = vmul.f32 %v3837_v38, %v3837_v38  ;;  %v3116_v36 = vld [vmem:[#allocation8 + $0x30] ss:$8 sps:$4 sm:$0xff]   ;;  %v3124_v39 = vld [vmem:[#allocation8 + $0x54] ss:$8 sps:$4 sm:$0xff]  }
 0x2cc   :  { %v3845_v46 = vmax.f32 %v2862_v42, 0.0  ;;  %v1132_v1 = vmul.f32 %v3839_v41, %v3839_v41  ;;  %v3122_v40 = vld [vmem:[#allocation8 + $0x50] ss:$8 sps:$4 sm:$0xff]   ;;  %v3125_v42 = vld [vmem:[#allocation8 + $0x60] ss:$8 sps:$4 sm:$0xff]  }
 0x2cd   :  { %v1133_v0 = vmul.f32 %v3841_v44, %v3841_v44 }
 0x2ce   :  { %v1134_v9 = vmul.f32 %v3845_v46, %v3845_v46  ;;  %v1135_v47 = vadd.f32 %v1132_v1, %v1131_v45  ;;  %v3128_v45 = vld [vmem:[#allocation8 + $0x70] ss:$8 sps:$4 sm:$0xff]  }
 0x2d0   :  { %1136 = vadd.xlane.f32.xlu1 %v1135_v47  ;;  %v1138_v8 = vadd.f32 %v1134_v9, %v1133_v0 }
 0x2d4   :  { %1139 = vadd.xlane.f32.xlu1 %v1138_v8 }
 0x35d   :  { %v1137_v61 = vpop.xlane.xlu1 %1136 }
 0x35e   :  { %3259 = vrsqrt.f32 %v1137_v61  ;;  %vm1143_vm4 = vcmp.eq.f32.partialorder %v1137_v61, inf  ;;  %v1146_v18 = vand.u32 2147483648, %v1137_v61  ;;  %vm1145_vm5 = vcmp.eq.f32.partialorder %v1137_v61, 0.0 }
 0x361   :  { %v1140_v62 = vpop.xlane.xlu1 %1139 }
 0x362   :  { %3261 = vrsqrt.f32 %v1140_v62  ;;  %vm1150_vm6 = vcmp.eq.f32.partialorder %v1140_v62, inf  ;;  %v1153_v12 = vand.u32 2147483648, %v1140_v62  ;;  %vm1152_vm7 = vcmp.eq.f32.partialorder %v1140_v62, 0.0 }
 0x368   :  { %v3260_v43 = vpop.eup %3259 }
 0x369   :  { %v1142_v2 = vmul.f32 %v3260_v43, %v1137_v61  ;;  %v3137_v43 = vld [vmem:[#allocation8 + $0xa0] ss:$8 sps:$4 sm:$0xff]  }
 0x36b   :  { %v1144_v63 = vsel %vm1143_vm4, %v1137_v61, %v1142_v2  ;;  %v3134_v61 = vld [vmem:[#allocation8 + $0x90] ss:$8 sps:$4 sm:$0xff]   ;;  %v3142_v2 = vld [vmem:[#allocation8 + $0xb4] ss:$8 sps:$4 sm:$0xff]  }
 0x36c   :  { %v3262_v4 = vpop.eup %3261  ;;  %v1147_v5 = vsel %vm1145_vm5, %v1146_v18, %v1144_v63  ;;  %v3140_v18 = vld [vmem:[#allocation8 + $0xb0] ss:$8 sps:$4 sm:$0xff]   ;;  %v3145_v63 = vld [vmem:[#allocation8 + $0xc4] ss:$8 sps:$4 sm:$0xff]  }
 0x36d   :  { %v1149_v6 = vmul.f32 %v3262_v4, %v1140_v62  ;;  %v1155_v11 = vadd.f32 0.02, %v1147_v5  ;;  %v3143_v4 = vld [vmem:[#allocation8 + $0xc0] ss:$8 sps:$4 sm:$0xff]   ;;  %v3148_v5 = vld [vmem:[#allocation8 + $0xd4] ss:$8 sps:$4 sm:$0xff]  }
 0x36f   :  { %v1151_v15 = vsel %vm1150_vm6, %v1140_v62, %v1149_v6  ;;  %3263 = vrcp.f32 %v1155_v11  ;;  %v3139_v62 = vld [vmem:[#allocation8 + $0xa4] ss:$8 sps:$4 sm:$0xff]   ;;  %v3146_v6 = vld [vmem:[#allocation8 + $0xd0] ss:$8 sps:$4 sm:$0xff]  }
 0x370   :  { %v1154_v16 = vsel %vm1152_vm7, %v1153_v12, %v1151_v15  ;;  %v3151_v11 = vld [vmem:[#allocation8 + $0xe4] ss:$8 sps:$4 sm:$0xff]   ;;  %v3149_v12 = vld [vmem:[#allocation8 + $0xe0] ss:$8 sps:$4 sm:$0xff]   ;;  %v3154_v15 = vld [vmem:[#allocation8 + $0xf4] ss:$8 sps:$4 sm:$0xff]  }
 0x371   :  { %v1156_v20 = vadd.f32 0.02, %v1154_v16  ;;  %v3152_v16 = vld [vmem:[#allocation8 + $0xf0] ss:$8 sps:$4 sm:$0xff]  }
 0x373   :  { %3265 = vrcp.f32 %v1156_v20  ;;  %v3155_v20 = vld [vmem:[#allocation13 + $0x40] sm:$0xff]  }
 0x374   :  { %2815 = vmatprep.subr.bf16.mxu0 %v3155_v20  ;;  %v3194_v20 = vld [vmem:[#allocation10 + $0x74] ss:$8 sps:$4 sm:$0xff]  }
 0x379   :  { %v3264_v21 = vpop.eup %3263 }
 0x37a   :  { %v1160_v23 = vmul.f32 %v3264_v21, %v3839_v41  ;;  %v1159_v7 = vmul.f32 %v3264_v21, %v3837_v38  ;;  %v3119_v38 = vld [vmem:[#allocation8 + $0x40] ss:$8 sps:$4 sm:$0xff]   ;;  %v3127_v41 = vld [vmem:[#allocation8 + $0x64] ss:$8 sps:$4 sm:$0xff]  }
 0x37b   :  { %v3156_v21 = vld [vmem:[#allocation13] sm:$0xff]  }
 0x37c   :  { %2816 = vmatpush3.bf16.msra.mxu0 %v3156_v21  ;;  %v3192_v21 = vld [vmem:[#allocation10 + $0x70] ss:$8 sps:$4 sm:$0xff]  }
 0x37d   :  { %v3266_v22 = vpop.eup %3265 }
 0x37e   :  { %v1162_v10 = vmul.f32 %v3266_v22, %v3845_v46  ;;  %v1161_v17 = vmul.f32 %v3266_v22, %v3841_v44  ;;  %v3130_v44 = vld [vmem:[#allocation8 + $0x74] ss:$8 sps:$4 sm:$0xff]   ;;  %v1130_v46 = vld [vmem:[%s3974_s4] sm:$0x3]  ;;  %v3157_v22 = vld [vmem:[#allocation13 + $0x48] sm:$0xff]  }
 0x37f   :  { %v1169_v1 = vrot.slane %v1130_v46, %v3828_v27  ;;  %v1173_v0 = vrot.slane %v1130_v46, %v3833_v29  ;;  %2817 = vmatprep.subr.bf16.mxu0 %v3157_v22  ;;  %v1415_v22 = vld [vmem:[%s3976_s6] sm:$0x3] }
 0x380   :  { %v1164_v24 = vpack.c.bf16 %v1162_v10, %v1160_v23  ;;  %v1163_v25 = vpack.c.bf16 %v1161_v17, %v1159_v7  ;;  %v3158_v23 = vld [vmem:[#allocation13 + $0x8] sm:$0xff]   ;;  %v3159_v10 = vld [vmem:[#allocation13 + $0x50] sm:$0xff]   ;;  %v3161_v17 = vld [vmem:[#allocation13 + $0x58] sm:$0xff]  }
 0x381   :  { %2818 = vmatpush3.bf16.msra.mxu0 %v3158_v23  ;;  %v3160_v7 = vld [vmem:[#allocation13 + $0x10] sm:$0xff]   ;;  %v1454_v23 = vrot.slane %v1415_v22, %v3828_v27 }
 0x382   :  { %1368 = vmatprep.mubr.bf16.mxu1 %v1164_v24  ;;  %2819 = vmatprep.subr.bf16.mxu0 %v3159_v10  ;;  %v3162_v24 = vld [vmem:[#allocation13 + $0x18] sm:$0xff]   ;;  %v1458_v10 = vrot.slane %v1415_v22, %v3833_v29 }
 0x383   :  { %1369 = vmatmul.mubr.bf16.vlgmr.msra.gmra.mrb[0].mxu1 %v1163_v25  ;;  %v3163_v25 = vld [vmem:[#allocation13 + $0x60] sm:$0xff]  }
 0x384   :  { %1622 = vmatpush1.bf16.msra.mxu1 %v3107_v26  ;;  %v3164_v26 = vld [vmem:[#allocation13 + $0x20] sm:$0xff]  }
 0x385   :  { %1623 = vmatprep.subr.bf16.mxu1 %v3112_v30  ;;  %2820 = vmatpush3.bf16.msra.mxu0 %v3160_v7 }
 0x386   :  { %2821 = vmatprep.subr.bf16.mxu0 %v3161_v17 }
 0x388   :  { %1624 = vmatpush1.bf16.msra.mxu1 %v3110_v31 }
 0x389   :  { %1625 = vmatprep.subr.bf16.mxu1 %v3115_v33  ;;  %2822 = vmatpush3.bf16.msra.mxu0 %v3162_v24 }
 0x38a   :  { %2823 = vmatprep.subr.bf16.mxu0 %v3163_v25 }
 0x38c   :  { %1626 = vmatpush1.bf16.msra.mxu1 %v3113_v34 }
 0x38d   :  { %1627 = vmatprep.subr.bf16.mxu1 %v3118_v35  ;;  %2824 = vmatpush3.bf16.msra.mxu0 %v3164_v26 }
 0x38e   :  { %2825 = vmatprep.subr.bf16.mxu0 %v3165_v28 }
 0x390   :  { %1628 = vmatpush1.bf16.msra.mxu1 %v3116_v36 }
 0x391   :  { %1629 = vmatprep.subr.bf16.mxu1 %v3121_v37 }
 0x394   :  { %1630 = vmatpush1.bf16.msra.mxu1 %v3119_v38 }
 0x395   :  { %1631 = vmatprep.subr.bf16.mxu1 %v3124_v39 }
 0x398   :  { %1632 = vmatpush1.bf16.msra.mxu1 %v3122_v40 }
 0x399   :  { %1633 = vmatprep.subr.bf16.mxu1 %v3127_v41 }
 0x39c   :  { %1634 = vmatpush1.bf16.msra.mxu1 %v3125_v42 }
 0x39d   :  { %1635 = vmatprep.subr.bf16.mxu1 %v3130_v44 }
 0x3a0   :  { %1636 = vmatpush1.bf16.msra.mxu1 %v3128_v45 }
 0x3a1   :  { %1637 = vmatprep.subr.bf16.mxu1 %v3133_v58 }
 0x3a4   :  { %1638 = vmatpush1.bf16.msra.mxu1 %v3131_v59  ;;  %v3168_v59 = vld [vmem:[#allocation13 + $0x30] sm:$0xff]  }
 0x3a5   :  { %1639 = vmatprep.subr.bf16.mxu1 %v3136_v60  ;;  %v3170_v60 = vld [vmem:[#allocation13 + $0x38] sm:$0xff]  }
 0x3a8   :  { %1640 = vmatpush1.bf16.msra.mxu1 %v3134_v61  ;;  %v3173_v61 = vld [vmem:[#allocation10 + $0x4] ss:$8 sps:$4 sm:$0xff]  }
 0x3a9   :  { %1641 = vmatprep.subr.bf16.mxu1 %v3139_v62  ;;  %v3176_v62 = vld [vmem:[#allocation10 + $0x14] ss:$8 sps:$4 sm:$0xff]  }
 0x3ac   :  { %1642 = vmatpush1.bf16.msra.mxu1 %v3137_v43  ;;  %v3174_v43 = vld [vmem:[#allocation10 + $0x10] ss:$8 sps:$4 sm:$0xff]  }
 0x3ad   :  { %1643 = vmatprep.subr.bf16.mxu1 %v3142_v2  ;;  %v3179_v2 = vld [vmem:[#allocation10 + $0x24] ss:$8 sps:$4 sm:$0xff]  }
 0x3b0   :  { %1644 = vmatpush1.bf16.msra.mxu1 %v3140_v18  ;;  %v3177_v18 = vld [vmem:[#allocation10 + $0x20] ss:$8 sps:$4 sm:$0xff]  }
 0x3b1   :  { %1645 = vmatprep.subr.bf16.mxu1 %v3145_v63  ;;  %v3182_v63 = vld [vmem:[#allocation10 + $0x34] ss:$8 sps:$4 sm:$0xff]  }
 0x3b4   :  { %1646 = vmatpush1.bf16.msra.mxu1 %v3143_v4  ;;  %v3180_v4 = vld [vmem:[#allocation10 + $0x30] ss:$8 sps:$4 sm:$0xff]  }
 0x3b5   :  { %1647 = vmatprep.subr.bf16.mxu1 %v3148_v5  ;;  %v3185_v5 = vld [vmem:[#allocation10 + $0x44] ss:$8 sps:$4 sm:$0xff]  }
 0x3b8   :  { %1648 = vmatpush1.bf16.msra.mxu1 %v3146_v6  ;;  %v3183_v6 = vld [vmem:[#allocation10 + $0x40] ss:$8 sps:$4 sm:$0xff]  }
 0x3b9   :  { %1649 = vmatprep.subr.bf16.mxu1 %v3151_v11  ;;  %v3188_v11 = vld [vmem:[#allocation10 + $0x54] ss:$8 sps:$4 sm:$0xff]  }
 0x3bc   :  { %1650 = vmatpush1.bf16.msra.mxu1 %v3149_v12  ;;  %v3186_v12 = vld [vmem:[#allocation10 + $0x50] ss:$8 sps:$4 sm:$0xff]  }
 0x3bd   :  { %1651 = vmatprep.subr.bf16.mxu1 %v3154_v15  ;;  %v3191_v15 = vld [vmem:[#allocation10 + $0x64] ss:$8 sps:$4 sm:$0xff]  }
 0x3c0   :  { %1652 = vmatpush1.bf16.msra.mxu1 %v3152_v16  ;;  %v3189_v16 = vld [vmem:[#allocation10 + $0x60] ss:$8 sps:$4 sm:$0xff]  }
 0x3c1   :  { %1906 = vmatprep.subr.bf16.mxu1 %v3173_v61  ;;  %v3215_v61 = vld [vmem:[#allocation10 + $0xe4] ss:$8 sps:$4 sm:$0xff]  }
 0x456   :  { %v1370_v9 = vpop.f32.mrb[0].mxu1 }
 0x457   :  { %v1371_v47 = vadd.f32 %v1370_v9, %v1169_v1  ;;  %v1372_v8 = vpop.f32.mrb[1].mxu1 }
 0x458   :  { %v1373_v14 = vadd.f32 %v1372_v8, %v1173_v0  ;;  %v1374_v13 = vpop.f32.mrb[2].mxu1 }
 0x459   :  { %v3862_v48 = vmax.f32 %v1371_v47, 0.0  ;;  %v1375_v19 = vadd.f32 %v1374_v13, %v1169_v1  ;;  %v1376_v32 = vpop.f32.mrb[3].mxu1 }
 0x45a   :  { %v3864_v49 = vmax.f32 %v1373_v14, 0.0  ;;  %v1377_v3 = vadd.f32 %v1376_v32, %v1173_v0 }
 0x45b   :  { %v3866_v50 = vmax.f32 %v1375_v19, 0.0  ;;  %v1416_v51 = vmul.f32 %v3862_v48, %v3862_v48 }
 0x45c   :  { %v3870_v52 = vmax.f32 %v1377_v3, 0.0  ;;  %v1417_v53 = vmul.f32 %v3864_v49, %v3864_v49 }
 0x45d   :  { %v1418_v54 = vmul.f32 %v3866_v50, %v3866_v50 }
 0x45e   :  { %v1420_v55 = vadd.f32 %v1417_v53, %v1416_v51  ;;  %v1419_v56 = vmul.f32 %v3870_v52, %v3870_v52 }
 0x460   :  { %1421 = vadd.xlane.f32.xlu0 %v1420_v55  ;;  %v1423_v57 = vadd.f32 %v1419_v56, %v1418_v54 }
 0x462   :  { %1424 = vadd.xlane.f32.xlu1 %v1423_v57 }
 0x4ed   :  { %v1422_v30 = vpop.xlane.xlu0 %1421 }
 0x4ee   :  { %3267 = vrsqrt.f32 %v1422_v30  ;;  %vm1428_vm8 = vcmp.eq.f32.partialorder %v1422_v30, inf  ;;  %v1431_v36 = vand.u32 2147483648, %v1422_v30  ;;  %vm1430_vm9 = vcmp.eq.f32.partialorder %v1422_v30, 0.0 }
 0x4ef   :  { %v1425_v31 = vpop.xlane.xlu1 %1424 }
 0x4f0   :  { %3269 = vrsqrt.f32 %v1425_v31  ;;  %vm1435_vm10 = vcmp.eq.f32.partialorder %v1425_v31, inf  ;;  %v1438_v40 = vand.u32 2147483648, %v1425_v31  ;;  %vm1437_vm11 = vcmp.eq.f32.partialorder %v1425_v31, 0.0 }
 0x4f8   :  { %v3268_v33 = vpop.eup %3267 }
 0x4f9   :  { %v1427_v34 = vmul.f32 %v3268_v33, %v1422_v30 }
 0x4fa   :  { %v3270_v35 = vpop.eup %3269 }
 0x4fb   :  { %v1429_v37 = vsel %vm1428_vm8, %v1422_v30, %v1427_v34  ;;  %v1434_v38 = vmul.f32 %v3270_v35, %v1425_v31 }
 0x4fc   :  { %v1432_v39 = vsel %vm1430_vm9, %v1431_v36, %v1429_v37 }
 0x4fd   :  { %v1440_v41 = vadd.f32 0.02, %v1432_v39  ;;  %v1953_v42 = vadd.f32 0.01, %v1432_v39  ;;  %v1436_v44 = vsel %vm1435_vm10, %v1425_v31, %v1434_v38 }
 0x4fe   :  { %v1439_v45 = vsel %vm1437_vm11, %v1438_v40, %v1436_v44 }
 0x4ff   :  { %3271 = vrcp.f32 %v1440_v41  ;;  %v1441_v46 = vadd.f32 0.02, %v1439_v45  ;;  %v1954_v1 = vadd.f32 0.01, %v1439_v45 }
 0x500   :  { %3273 = vrcp.f32 %v1953_v42 }
 0x501   :  { %3275 = vrcp.f32 %v1441_v46 }
 0x502   :  { %3277 = vrcp.f32 %v1954_v1 }
 0x509   :  { %v3272_v0 = vpop.eup %3271 }
 0x50a   :  { %v3274_v9 = vpop.eup %3273  ;;  %v1445_v14 = vmul.f32 %v3272_v0, %v3864_v49  ;;  %v1444_v19 = vmul.f32 %v3272_v0, %v3862_v48 }
 0x50b   :  { %v3276_v47 = vpop.eup %3275  ;;  %v3883_v3 = vmul.f32 %v3274_v9, %v3864_v49  ;;  %v3892_v56 = vmul.f32 %v3274_v9, %v3862_v48  ;;  %v3166_v49 = vld [vmem:[#allocation13 + $0x28] sm:$0xff]  }
 0x50c   :  { %v3278_v8 = vpop.eup %3277  ;;  %v1447_v13 = vmul.f32 %v3276_v47, %v3870_v52  ;;  %v1446_v32 = vmul.f32 %v3276_v47, %v3866_v50  ;;  %2826 = vmatpush3.bf16.msra.mxu0 %v3166_v49  ;;  %v3171_v48 = vld [vmem:[#allocation10] ss:$8 sps:$4 sm:$0xff]   ;;  %v3206_v49 = vld [vmem:[#allocation10 + $0xb4] ss:$8 sps:$4 sm:$0xff]  }
 0x50d   :  { %v3886_v51 = vmul.f32 %v3278_v8, %v3866_v50  ;;  %v3889_v53 = vmul.f32 %v3278_v8, %v3870_v52  ;;  %v3167_v50 = vld [vmem:[#allocation13 + $0x70] sm:$0xff]   ;;  %v3169_v52 = vld [vmem:[#allocation13 + $0x78] sm:$0xff]   ;;  %v1961_v40 = vmul.f32 %v3892_v56, %v3892_v56  ;;  %v1962_v45 = vmul.f32 %v3883_v3, %v3883_v3 }
 0x50e   :  { %v1449_v54 = vpack.c.bf16 %v1447_v13, %v1445_v14  ;;  %v1448_v55 = vpack.c.bf16 %v1446_v32, %v1444_v19  ;;  %2827 = vmatprep.subr.bf16.mxu0 %v3167_v50  ;;  %v3197_v14 = vld [vmem:[#allocation10 + $0x84] ss:$8 sps:$4 sm:$0xff]   ;;  %v3195_v13 = vld [vmem:[#allocation10 + $0x80] ss:$8 sps:$4 sm:$0xff]   ;;  %v3200_v19 = vld [vmem:[#allocation10 + $0x94] ss:$8 sps:$4 sm:$0xff]  }
 0x50f   :  { %v2086_v57 = vpack.c.bf16 %v3889_v53, %v3883_v3  ;;  %v2085_v58 = vpack.c.bf16 %v3886_v51, %v3892_v56  ;;  %v1963_v0 = vmul.f32 %v3886_v51, %v3886_v51  ;;  %v1964_v9 = vmul.f32 %v3889_v53, %v3889_v53  ;;  %v3198_v32 = vld [vmem:[#allocation10 + $0x90] ss:$8 sps:$4 sm:$0xff]  }
 0x510   :  { %1653 = vmatprep.mubr.bf16.mxu1 %v1449_v54  ;;  %2828 = vmatpush3.bf16.msra.mxu0 %v3168_v59  ;;  %v1965_v47 = vadd.f32 %v1962_v45, %v1961_v40  ;;  %v3203_v54 = vld [vmem:[#allocation10 + $0xa4] ss:$8 sps:$4 sm:$0xff]   ;;  %v3204_v50 = vld [vmem:[#allocation10 + $0xb0] ss:$8 sps:$4 sm:$0xff]  }
 0x511   :  { %1654 = vmatmul.mubr.bf16.vlgmr.msra.gmra.mrb[4].mxu1 %v1448_v55  ;;  %2829 = vmatprep.subr.bf16.mxu0 %v3169_v52  ;;  %v1968_v8 = vadd.f32 %v1964_v9, %v1963_v0  ;;  %v3201_v55 = vld [vmem:[#allocation10 + $0xa0] ss:$8 sps:$4 sm:$0xff]   ;;  %v3209_v59 = vld [vmem:[#allocation10 + $0xc4] ss:$8 sps:$4 sm:$0xff]   ;;  %v3247_v3 = vld [vmem:[#allocation11 + $0x70] sm:$0xff]  }
 0x512   :  { %1907 = vmatpush1.bf16.msra.mxu1 %v3171_v48  ;;  %v3207_v52 = vld [vmem:[#allocation10 + $0xc0] ss:$8 sps:$4 sm:$0xff]   ;;  %v3210_v48 = vld [vmem:[#allocation10 + $0xd0] ss:$8 sps:$4 sm:$0xff]  }
 0x513   :  { %1908 = vmatprep.subr.bf16.mxu1 %v3176_v62  ;;  %v3213_v62 = vld [vmem:[#allocation10 + $0xe0] ss:$8 sps:$4 sm:$0xff]   ;;  %v3248_v53 = vld [vmem:[#allocation11 + $0x30] sm:$0xff]  }
 0x514   :  { %2830 = vmatpush3.bf16.msra.mxu0 %v3170_v60  ;;  %v3212_v60 = vld [vmem:[#allocation10 + $0xd4] ss:$8 sps:$4 sm:$0xff]   ;;  %v3222_v40 = vld [vmem:[#allocation14 + $0x8] sm:$0xff]  }
 0x515   :  { %v3230_v45 = vld [vmem:[#allocation14 + $0x28] sm:$0xff]  }
 0x516   :  { %1909 = vmatpush1.bf16.msra.mxu1 %v3174_v43  ;;  %v3218_v43 = vld [vmem:[#allocation10 + $0xf4] ss:$8 sps:$4 sm:$0xff]  }
 0x517   :  { %1910 = vmatprep.subr.bf16.mxu1 %v3179_v2  ;;  %v3216_v2 = vld [vmem:[#allocation10 + $0xf0] ss:$8 sps:$4 sm:$0xff]  }
 0x51a   :  { %1911 = vmatpush1.bf16.msra.mxu1 %v3177_v18  ;;  %v3219_v18 = vld [vmem:[#allocation14 + $0x40] sm:$0xff]  }
 0x51b   :  { %1912 = vmatprep.subr.bf16.mxu1 %v3182_v63 }
 0x51e   :  { %1913 = vmatpush1.bf16.msra.mxu1 %v3180_v4 }
 0x51f   :  { %1914 = vmatprep.subr.bf16.mxu1 %v3185_v5 }
 0x522   :  { %1915 = vmatpush1.bf16.msra.mxu1 %v3183_v6 }
 0x523   :  { %1916 = vmatprep.subr.bf16.mxu1 %v3188_v11 }
 0x526   :  { %1917 = vmatpush1.bf16.msra.mxu1 %v3186_v12 }
 0x527   :  { %1918 = vmatprep.subr.bf16.mxu1 %v3191_v15 }
 0x52a   :  { %1919 = vmatpush1.bf16.msra.mxu1 %v3189_v16 }
 0x52b   :  { %1920 = vmatprep.subr.bf16.mxu1 %v3194_v20 }
 0x52e   :  { %1921 = vmatpush1.bf16.msra.mxu1 %v3192_v21 }
 0x52f   :  { %1922 = vmatprep.subr.bf16.mxu1 %v3197_v14  ;;  %v3231_v14 = vld [vmem:[#allocation14 + $0x70] sm:$0xff]  }
 0x532   :  { %1923 = vmatpush1.bf16.msra.mxu1 %v3195_v13  ;;  %v3232_v13 = vld [vmem:[#allocation14 + $0x30] sm:$0xff]  }
 0x533   :  { %1924 = vmatprep.subr.bf16.mxu1 %v3200_v19  ;;  %v3233_v19 = vld [vmem:[#allocation14 + $0x78] sm:$0xff]  }
 0x536   :  { %1925 = vmatpush1.bf16.msra.mxu1 %v3198_v32  ;;  %v3234_v32 = vld [vmem:[#allocation14 + $0x38] sm:$0xff]  }
 0x537   :  { %1926 = vmatprep.subr.bf16.mxu1 %v3203_v54  ;;  %v3235_v54 = vld [vmem:[#allocation11 + $0x40] sm:$0xff]  }
 0x53a   :  { %1927 = vmatpush1.bf16.msra.mxu1 %v3201_v55  ;;  %v1700_v55 = vld [vmem:[%s3978_s8] sm:$0x3] }
 0x53b   :  { %1928 = vmatprep.subr.bf16.mxu1 %v3206_v49  ;;  %v1739_v49 = vrot.slane %v1700_v55, %v3828_v27  ;;  %v3238_v27 = vld [vmem:[#allocation11 + $0x8] sm:$0xff]  }
 0x53e   :  { %1929 = vmatpush1.bf16.msra.mxu1 %v3204_v50  ;;  %v1743_v50 = vrot.slane %v1700_v55, %v3833_v29  ;;  %v3239_v29 = vld [vmem:[#allocation11 + $0x50] sm:$0xff]  }
 0x53f   :  { %1930 = vmatprep.subr.bf16.mxu1 %v3209_v59 }
 0x542   :  { %1931 = vmatpush1.bf16.msra.mxu1 %v3207_v52 }
 0x543   :  { %1932 = vmatprep.subr.bf16.mxu1 %v3212_v60 }
 0x546   :  { %1933 = vmatpush1.bf16.msra.mxu1 %v3210_v48 }
 0x547   :  { %1934 = vmatprep.subr.bf16.mxu1 %v3215_v61 }
 0x54a   :  { %1935 = vmatpush1.bf16.msra.mxu1 %v3213_v62 }
 0x54b   :  { %1936 = vmatprep.subr.bf16.mxu1 %v3218_v43 }
 0x54e   :  { %1937 = vmatpush1.bf16.msra.mxu1 %v3216_v2 }
 0x54f   :  { %2793 = vmatprep.subr.bf16.mxu1 %v3219_v18 }
 0x5e4   :  { %v1655_v7 = vpop.f32.mrb[4].mxu1 }
 0x5e5   :  { %v1656_v17 = vadd.f32 %v1655_v7, %v1454_v23  ;;  %v1657_v24 = vpop.f32.mrb[5].mxu1 }
 0x5e6   :  { %v1658_v25 = vadd.f32 %v1657_v24, %v1458_v10  ;;  %v1659_v26 = vpop.f32.mrb[6].mxu1 }
 0x5e7   :  { %v3903_v28 = vmax.f32 %v1656_v17, 0.0  ;;  %v1660_v30 = vadd.f32 %v1659_v26, %v1454_v23  ;;  %v1661_v31 = vpop.f32.mrb[7].mxu1 }
 0x5e8   :  { %v3905_v33 = vmax.f32 %v1658_v25, 0.0  ;;  %v1662_v34 = vadd.f32 %v1661_v31, %v1458_v10 }
 0x5e9   :  { %v3907_v35 = vmax.f32 %v1660_v30, 0.0  ;;  %v1701_v36 = vmul.f32 %v3903_v28, %v3903_v28 }
 0x5ea   :  { %v3911_v37 = vmax.f32 %v1662_v34, 0.0  ;;  %v1702_v38 = vmul.f32 %v3905_v33, %v3905_v33 }
 0x5eb   :  { %v1703_v39 = vmul.f32 %v3907_v35, %v3907_v35  ;;  %v2087_v46 = vpack.c.bf16 %v3907_v35, %v3903_v28 }
 0x5ec   :  { %v2088_v41 = vpack.c.bf16 %v3911_v37, %v3905_v33  ;;  %v1705_v42 = vadd.f32 %v1702_v38, %v1701_v36  ;;  %v1704_v44 = vmul.f32 %v3911_v37, %v3911_v37  ;;  %v3220_v38 = vld [vmem:[#allocation14] sm:$0xff]  }
 0x5ee   :  { %2356 = vmatprep.mubr.bf16.mxu0 %v2088_v41  ;;  %1706 = vadd.xlane.f32.xlu0 %v1705_v42  ;;  %v1708_v1 = vadd.f32 %v1704_v44, %v1703_v39  ;;  %v3221_v39 = vld [vmem:[#allocation14 + $0x48] sm:$0xff]   ;;  %v3223_v41 = vld [vmem:[#allocation14 + $0x50] sm:$0xff]  }
 0x5ef   :  { %2357 = vmatmul.mubr.bf16.vlgmr.msra.gmra.mrb[4].mxu0 %v2087_v46  ;;  %v3224_v42 = vld [vmem:[#allocation14 + $0x10] sm:$0xff]   ;;  %v3229_v44 = vld [vmem:[#allocation14 + $0x68] sm:$0xff]  }
 0x5f0   :  { %1709 = vadd.xlane.f32.xlu1 %v1708_v1 }
 0x5f2   :  { %1966 = vadd.xlane.f32.xlu0 %v1965_v47 }
 0x5f4   :  { %1969 = vadd.xlane.f32.xlu1 %v1968_v8 }
 0x67b   :  { %v1707_v63 = vpop.xlane.xlu0 %1706 }
 0x67c   :  { %3279 = vrsqrt.f32 %v1707_v63  ;;  %vm1713_vm12 = vcmp.eq.f32.partialorder %v1707_v63, inf  ;;  %v1716_v12 = vand.u32 2147483648, %v1707_v63  ;;  %vm1715_vm13 = vcmp.eq.f32.partialorder %v1707_v63, 0.0 }
 0x67d   :  { %v1710_v4 = vpop.xlane.xlu1 %1709 }
 0x67e   :  { %3281 = vrsqrt.f32 %v1710_v4  ;;  %vm1720_vm14 = vcmp.eq.f32.partialorder %v1710_v4, inf  ;;  %v1723_v21 = vand.u32 2147483648, %v1710_v4  ;;  %vm1722_vm15 = vcmp.eq.f32.partialorder %v1710_v4, 0.0 }
 0x686   :  { %v3280_v5 = vpop.eup %3279 }
 0x687   :  { %v1712_v6 = vmul.f32 %v3280_v5, %v1707_v63 }
 0x688   :  { %v3282_v11 = vpop.eup %3281 }
 0x689   :  { %v1714_v15 = vsel %vm1713_vm12, %v1707_v63, %v1712_v6  ;;  %v1719_v16 = vmul.f32 %v3282_v11, %v1710_v4 }
 0x68a   :  { %v1717_v20 = vsel %vm1715_vm13, %v1716_v12, %v1714_v15  ;;  %v3236_v12 = vld [vmem:[#allocation11] sm:$0xff]   ;;  %v3237_v15 = vld [vmem:[#allocation11 + $0x48] sm:$0xff]  }
 0x68b   :  { %v1725_v22 = vadd.f32 0.02, %v1717_v20  ;;  %v1721_v23 = vsel %vm1720_vm14, %v1710_v4, %v1719_v16  ;;  %v3240_v16 = vld [vmem:[#allocation11 + $0x10] sm:$0xff]   ;;  %v3241_v20 = vld [vmem:[#allocation11 + $0x58] sm:$0xff]  }
 0x68c   :  { %v1724_v10 = vsel %vm1722_vm15, %v1723_v21, %v1721_v23  ;;  %v3242_v21 = vld [vmem:[#allocation11 + $0x18] sm:$0xff]   ;;  %v3244_v23 = vld [vmem:[#allocation11 + $0x20] sm:$0xff]  }
 0x68d   :  { %3283 = vrcp.f32 %v1725_v22  ;;  %v1726_v7 = vadd.f32 0.02, %v1724_v10  ;;  %v3243_v22 = vld [vmem:[#allocation11 + $0x60] sm:$0xff]   ;;  %v3245_v10 = vld [vmem:[#allocation11 + $0x68] sm:$0xff]  }
 0x68f   :  { %3285 = vrcp.f32 %v1726_v7  ;;  %v3246_v7 = vld [vmem:[#allocation11 + $0x28] sm:$0xff]  }
 0x697   :  { %v3284_v17 = vpop.eup %3283 }
 0x698   :  { %v1730_v25 = vmul.f32 %v3284_v17, %v3905_v33  ;;  %v1729_v30 = vmul.f32 %v3284_v17, %v3903_v28  ;;  %v3225_v33 = vld [vmem:[#allocation14 + $0x58] sm:$0xff]   ;;  %v3227_v28 = vld [vmem:[#allocation14 + $0x60] sm:$0xff]  }
 0x699   :  { %v3286_v24 = vpop.eup %3285  ;;  %v3250_v17 = vld [vmem:[#allocation11 + $0x38] sm:$0xff]  }
 0x69a   :  { %v1732_v26 = vmul.f32 %v3286_v24, %v3911_v37  ;;  %v1731_v31 = vmul.f32 %v3286_v24, %v3907_v35  ;;  %v3226_v37 = vld [vmem:[#allocation14 + $0x18] sm:$0xff]   ;;  %v3228_v35 = vld [vmem:[#allocation14 + $0x20] sm:$0xff]   ;;  %v1967_v24 = vpop.xlane.xlu0 %1966 }
 0x69b   :  { %3287 = vrsqrt.f32 %v1967_v24  ;;  %vm1973_vm0 = vcmp.eq.f32.partialorder %v1967_v24, inf  ;;  %v1976_v56 = vand.u32 2147483648, %v1967_v24  ;;  %vm1975_vm2 = vcmp.eq.f32.partialorder %v1967_v24, 0.0 }
 0x69c   :  { %v1734_v34 = vpack.c.bf16 %v1732_v26, %v1730_v25  ;;  %v1733_v36 = vpack.c.bf16 %v1731_v31, %v1729_v30  ;;  %v1970_v25 = vpop.xlane.xlu1 %1969 }
 0x69d   :  { %3289 = vrsqrt.f32 %v1970_v25  ;;  %vm1980_vm1 = vcmp.eq.f32.partialorder %v1970_v25, inf  ;;  %vm1982_vm3 = vcmp.eq.f32.partialorder %v1970_v25, 0.0 }
 0x69e   :  { %1938 = vmatprep.mubr.bf16.mxu1 %v1734_v34 }
 0x69f   :  { %1939 = vmatmul.mubr.bf16.vlgmr.msra.gmra.mrb[8].mxu1 %v1733_v36 }
 0x6a0   :  { %2794 = vmatpush3.bf16.msra.mxu1 %v3220_v38 }
 0x6a1   :  { %2795 = vmatprep.subr.bf16.mxu1 %v3221_v39 }
 0x6a4   :  { %2796 = vmatpush3.bf16.msra.mxu1 %v3222_v40 }
 0x6a5   :  { %2797 = vmatprep.subr.bf16.mxu1 %v3223_v41  ;;  %v3288_v40 = vpop.eup %3287 }
 0x6a8   :  { %2798 = vmatpush3.bf16.msra.mxu1 %v3224_v42  ;;  %v3290_v42 = vpop.eup %3289 }
 0x6a9   :  { %2799 = vmatprep.subr.bf16.mxu1 %v3225_v33  ;;  %v1972_v33 = vmul.f32 %v3288_v40, %v1967_v24 }
 0x6ab   :  { %v1974_v51 = vsel %vm1973_vm0, %v1967_v24, %v1972_v33 }
 0x6ac   :  { %2800 = vmatpush3.bf16.msra.mxu1 %v3226_v37  ;;  %v1979_v37 = vmul.f32 %v3290_v42, %v1970_v25 }
 0x6ad   :  { %2801 = vmatprep.subr.bf16.mxu1 %v3227_v28  ;;  %v1977_v28 = vsel %vm1975_vm2, %v1976_v56, %v1974_v51 }
 0x6b0   :  { %2802 = vmatpush3.bf16.msra.mxu1 %v3228_v35  ;;  %v1983_v35 = vand.u32 2147483648, %v1970_v25 }
 0x6b1   :  { %2803 = vmatprep.subr.bf16.mxu1 %v3229_v44 }
 0x6b4   :  { %2804 = vmatpush3.bf16.msra.mxu1 %v3230_v45  ;;  %v1985_v45 = vadd.f32 0.01, %v1977_v28 }
 0x6b5   :  { %2805 = vmatprep.subr.bf16.mxu1 %v3231_v14 }
 0x6b6   :  { %3291 = vrcp.f32 %v1985_v45 }
 0x6b8   :  { %2806 = vmatpush3.bf16.msra.mxu1 %v3232_v13 }
 0x6b9   :  { %2807 = vmatprep.subr.bf16.mxu1 %v3233_v19  ;;  %v2792_v19 = vld [vmem:[%s3982_s12] ss:$0 sm:$0xff] }
 0x6bc   :  { %2808 = vmatpush3.bf16.msra.mxu1 %v3234_v32 }
 0x6bd   :  { %2837 = vmatprep.subr.bf16.mxu1 %v3235_v54 }
 0x6c2   :  { %v2831_v46 = vpop.f32.mrb[4].mxu0 }
 0x6c3   :  { %v2832_v1 = vpop.f32.mrb[5].mxu0 }
 0x6c4   :  { %v3935_v0 = vadd.f32 %v2832_v1, %v2831_v46  ;;  %v2834_v9 = vpop.f32.mrb[6].mxu0 }
 0x6c5   :  { %v2835_v47 = vpop.f32.mrb[7].mxu0 }
 0x6c6   :  { %v3937_v8 = vadd.f32 %v2835_v47, %v2834_v9 }
 0x772   :  { %v1940_v59 = vpop.f32.mrb[8].mxu1 }
 0x773   :  { %v1941_v52 = vadd.f32 %v1940_v59, %v1739_v49  ;;  %v1942_v60 = vpop.f32.mrb[9].mxu1 }
 0x774   :  { %v1943_v48 = vadd.f32 %v1942_v60, %v1743_v50  ;;  %v1944_v61 = vpop.f32.mrb[10].mxu1 }
 0x775   :  { %v1945_v62 = vadd.f32 %v1944_v61, %v1739_v49  ;;  %v1946_v43 = vpop.f32.mrb[11].mxu1  ;;  %v1949_v18 = vmax.f32 %v1941_v52, 0.0 }
 0x776   :  { %v1947_v2 = vadd.f32 %v1946_v43, %v1743_v50  ;;  %v1950_v4 = vmax.f32 %v1943_v48, 0.0 }
 0x777   :  { %v1951_v63 = vmax.f32 %v1945_v62, 0.0 }
 0x778   :  { %v1952_v5 = vmax.f32 %v1947_v2, 0.0 }
 0x779   :  { %v2089_v6 = vpack.c.bf16 %v1951_v63, %v1949_v18 }
 0x77a   :  { %v2090_v11 = vpack.c.bf16 %v1952_v5, %v1950_v4 }
 0x77c   :  { %2219 = vmatprep.mubr.bf16.mxu1 %v2090_v11 }
 0x77d   :  { %2220 = vmatmul.mubr.bf16.vlgmr.msra.gmra.mrb[12].mxu1 %v2089_v6 }
 0x77e   :  { %2838 = vmatpush3.bf16.msra.mxu1 %v3236_v12  ;;  %2495 = vmatprep.mubr.bf16.mxu1 %v2086_v57  ;;  %v3249_v57 = vld [vmem:[#allocation11 + $0x78] sm:$0xff]  }
 0x77f   :  { %2839 = vmatprep.subr.bf16.mxu1 %v3237_v15 }
 0x782   :  { %2840 = vmatpush3.bf16.msra.mxu1 %v3238_v27 }
 0x783   :  { %2841 = vmatprep.subr.bf16.mxu1 %v3239_v29 }
 0x786   :  { %2842 = vmatpush3.bf16.msra.mxu1 %v3240_v16 }
 0x787   :  { %2843 = vmatprep.subr.bf16.mxu1 %v3241_v20 }
 0x78a   :  { %2844 = vmatpush3.bf16.msra.mxu1 %v3242_v21 }
 0x78b   :  { %2845 = vmatprep.subr.bf16.mxu1 %v3243_v22 }
 0x78e   :  { %2846 = vmatpush3.bf16.msra.mxu1 %v3244_v23 }
 0x78f   :  { %2847 = vmatprep.subr.bf16.mxu1 %v3245_v10 }
 0x792   :  { %2848 = vmatpush3.bf16.msra.mxu1 %v3246_v7 }
 0x793   :  { %2849 = vmatprep.subr.bf16.mxu1 %v3247_v3 }
 0x796   :  { %2850 = vmatpush3.bf16.msra.mxu1 %v3248_v53 }
 0x797   :  { %2851 = vmatprep.subr.bf16.mxu1 %v3249_v57 }
 0x79a   :  { %2852 = vmatpush3.bf16.msra.mxu1 %v3250_v17 }
 0x79d   :  { %2496 = vmatmul.mubr.bf16.vlgmr.msra.gmra.mrb[16].mxu1 %v2085_v58  ;;  %v1981_v58 = vsel %vm1980_vm1, %v1970_v25, %v1979_v37 }
 0x79e   :  { %v1984_v44 = vsel %vm1982_vm3, %v1983_v35, %v1981_v58 }
 0x79f   :  { %v1986_v46 = vadd.f32 0.01, %v1984_v44 }
 0x7a1   :  { %3293 = vrcp.f32 %v1986_v46 }
 0x850   :  { %v2809_v26 = vpop.f32.mrb[12].mxu1 }
 0x851   :  { %v2810_v30 = vpop.f32.mrb[13].mxu1 }
 0x852   :  { %v2811_v31 = vadd.f32 %v2810_v30, %v2809_v26  ;;  %v2812_v34 = vpop.f32.mrb[14].mxu1 }
 0x853   :  { %v2813_v36 = vpop.f32.mrb[15].mxu1 }
 0x854   :  { %v2359_v38 = vadd.f32 %v3935_v0, %v2811_v31  ;;  %v2814_v39 = vadd.f32 %v2813_v36, %v2812_v34  ;;  %v3292_v0 = vpop.eup %3291 }
 0x855   :  { %v3294_v13 = vpop.eup %3293 }
 0x856   :  { %v2362_v41 = vadd.f32 %v3937_v8, %v2814_v39  ;;  %v2365_v47 = vmul.f32 %v3292_v0, %v2359_v38 }
 0x858   :  { %v2366_v55 = vmul.f32 %v3294_v13, %v2362_v41 }
 0x870   :  { %v2853_v1 = vpop.f32.mrb[16].mxu1 }
 0x871   :  { %v2854_v9 = vpop.f32.mrb[17].mxu1 }
 0x872   :  { %v2855_v8 = vadd.f32 %v2854_v9, %v2853_v1  ;;  %v2856_v14 = vpop.f32.mrb[18].mxu1 }
 0x873   :  { %v2857_v32 = vpop.f32.mrb[19].mxu1 }
 0x874   :  { %v2498_v54 = vadd.f32 %v2855_v8, %v2365_v47  ;;  %v2858_v49 = vadd.f32 %v2857_v32, %v2856_v14 }
 0x876   :  { %v2511_v50 = vadd.f32 %v2792_v19, %v2498_v54  ;;  %v2501_v59 = vadd.f32 %v2858_v49, %v2366_v55 }
 0x878   :  { %2513 = vst [vmem:[#allocation16] sm:$0xff] %v2511_v50  ;;  %v2512_v52 = vadd.f32 %v2792_v19, %v2501_v59 }
 0x87a   :  { %2514 = vst [vmem:[#allocation16 + $0x8] sm:$0xff] %v2512_v52 }
 0x87b   :  { %3482 = shalt.err (!%p3479_p12)
}
 0x87c   :  { %s3483_s7 = scalar_lea.hbm %s3983_s13, 256 }
 0x87d   :  { %p3484_p13 = scmp.ne.s32.totalorder %s3983_s13, %s3483_s7  ;;  %p3487_p0 = scmp.lt.u32.totalorder %s3483_s7, %s3983_s13 }
 0x87f   :  { %p3489_p1 = pnand %p3487_p0, %p3484_p13 }
 0x881   :  { %3492 = shalt.err (!%p3489_p1)
}
 0x882   :  { %2526 = dma.vmem_to_hbm [thread:$0]  %s2521_s29, 256, %s3983_s13, [#allocation4], %s3506_s18, %s3506_s18, %s3507_s19  }
 0x883   :  { %3503 = dma.done.wait [#allocation4], 256  }
 0x884   :  { %3504 = vsyncadd [#allocation4], 4294967040 }
 0x885   :  { %2530 = vsyncpa [#allocation3], 1 }
 0x886   :  { %2531 = vsyncpa [#allocation6], 1 }
 0x887   :  { %2532 = vsyncpa [#allocation9], 1 }
 0x888   :  { %2533 = vsyncpa [#allocation12], 1 }
 0x889   :  { %2534 = vsyncpa [#allocation15], 1 }
 0x88a   :  { %2535 = vsyncpa [#allocation4], 1 }

// kernel: tpu_custom_call.1
= control target key start
LH: loop header
LB: loop body
LE: loop exit
PB: predicated region body
PF: predicated region fallthrough
CT: control target
= control target key end

     0   :  { %18 = vsyncpa [#allocation3], 0  ;;  %s3970_s0 = inlined_call_operand.hbm [shape: f32[16,896], index: 0, kind: input, shape index: {}]   ;;  %s3971_s1 = inlined_call_operand.hbm [shape: bf16[896,256], index: 1, kind: input, shape index: {}]   ;;  %s3972_s2 = inlined_call_operand.vmem [shape: f32[1,256], index: 2, kind: input, shape index: {}]   ;;  %s3973_s3 = inlined_call_operand.hbm [shape: bf16[256,256], index: 3, kind: input, shape index: {}]   ;;  %s3974_s4 = inlined_call_operand.vmem [shape: f32[1,256], index: 4, kind: input, shape index: {}]   ;;  %s3975_s5 = inlined_call_operand.hbm [shape: bf16[256,256], index: 5, kind: input, shape index: {}]   ;;  %s3976_s6 = inlined_call_operand.vmem [shape: f32[1,256], index: 6, kind: input, shape index: {}]   ;;  %s3977_s7 = inlined_call_operand.hbm [shape: bf16[256,256], index: 7, kind: input, shape index: {}]   ;;  %s3978_s8 = inlined_call_operand.vmem [shape: f32[1,256], index: 8, kind: input, shape index: {}]   ;;  %s3979_s9 = inlined_call_operand.hbm [shape: bf16[256,128], index: 9, kind: input, shape index: {}]   ;;  %s3980_s10 = inlined_call_operand.hbm [shape: bf16[256,128], index: 10, kind: input, shape index: {}]   ;;  %s3981_s11 = inlined_call_operand.hbm [shape: bf16[256,128], index: 11, kind: input, shape index: {}]   ;;  %s3982_s12 = inlined_call_operand.vmem [shape: f32[1,128], index: 12, kind: input, shape index: {}]   ;;  %s3983_s13 = inlined_call_operand.hbm [shape: f32[16,128], index: 13, kind: output, shape index: {}]  }
   0x1   :  { %19 = vsyncpa [#allocation6], 0 }
   0x2   :  { %20 = vsyncpa [#allocation9], 0 }
   0x3   :  { %21 = vsyncpa [#allocation12], 0 }
   0x4   :  { %22 = vsyncpa [#allocation15], 0 }
   0x5   :  { %23 = vsyncpa [#allocation4], 0  ;;  %s3505_s25 = smov [#allocation5]   ;;  %s3295_s29 = scalar_lea.hbm %s3971_s1, 14336 }
   0x6   :  { %s41_s26 = sshll.u32 %s3505_s25, 4  ;;  %p3296_p0 = scmp.ne.s32.totalorder %s3971_s1, %s3295_s29  ;;  %s42_s26 = int_to_ptr.vmem [resolvable:$true] %s41_s26 }
   0x7   :  { %p3299_p1 = scmp.lt.u32.totalorder %s3295_s29, %s3971_s1 }
   0x9   :  { %p3301_p2 = pnand %p3299_p1, %p3296_p0 }
   0xb   :  { %3304 = shalt.err (!%p3301_p2)
}
   0xc   :  { %s3305_s17 = scalar_lea.vmem %s42_s26, 14336  ;;  %p3310_p4 = scmp.lt.s32.totalorder %s42_s26, %s42_s26 }
   0xd   :  { %p3306_p3 = scmp.ne.s32.totalorder %s42_s26, %s3305_s17  ;;  %p3311_p5 = scmp.lt.s32.totalorder %s3305_s17, %s3305_s17 }
   0xf   :  { %p3312_p6 = por %p3311_p5, %p3310_p4 }
  0x11   :  { %p3313_p7 = pnand %p3312_p6, %p3306_p3 }
  0x13   :  { %3316 = shalt.err (!%p3313_p7)
}
  0x14   :  { %s3506_s18 = smov 128   ;;  %s3507_s19 = smov 8  }
  0x15   :  { %47 = dma.hbm_to_vmem [thread:$0]  %s3971_s1, 14336, %s42_s26, [#allocation6], %s3506_s18, %s3506_s18, %s3507_s19  }
  0x16   :  { %s3508_s22 = smov [#allocation8]   ;;  %s3509_s24 = smov [#allocation11]  }
  0x17   :  { %s69_s23 = sshll.u32 %s3508_s22, 4  ;;  %s97_s25 = sshll.u32 %s3509_s24, 4  ;;  %s70_s23 = int_to_ptr.vmem [resolvable:$true] %s69_s23  ;;  %s98_s25 = int_to_ptr.vmem [resolvable:$true] %s97_s25 }
  0x18   :  { %s3317_s29 = scalar_lea.hbm %s3975_s5, 4096 }
  0x19   :  { %p3318_p8 = scmp.ne.s32.totalorder %s3975_s5, %s3317_s29  ;;  %p3321_p9 = scmp.lt.u32.totalorder %s3317_s29, %s3975_s5 }
  0x1b   :  { %p3323_p10 = pnand %p3321_p9, %p3318_p8 }
  0x1d   :  { %3326 = shalt.err (!%p3323_p10)
}
  0x1e   :  { %s3327_s1 = scalar_lea.vmem %s70_s23, 4096  ;;  %p3332_p12 = scmp.lt.s32.totalorder %s70_s23, %s70_s23 }
  0x1f   :  { %p3328_p11 = scmp.ne.s32.totalorder %s70_s23, %s3327_s1  ;;  %p3333_p13 = scmp.lt.s32.totalorder %s3327_s1, %s3327_s1 }
  0x21   :  { %p3334_p0 = por %p3333_p13, %p3332_p12 }
  0x23   :  { %p3335_p1 = pnand %p3334_p0, %p3328_p11 }
  0x25   :  { %3338 = shalt.err (!%p3335_p1)
}
  0x26   :  { %75 = dma.hbm_to_vmem [thread:$0]  %s3975_s5, 4096, %s70_s23, [#allocation9], %s3506_s18, %s3506_s18, %s3507_s19  }
  0x27   :  { %s3339_s22 = scalar_lea.hbm %s3979_s9, 2048 }
  0x28   :  { %p3340_p2 = scmp.ne.s32.totalorder %s3979_s9, %s3339_s22  ;;  %p3343_p3 = scmp.lt.u32.totalorder %s3339_s22, %s3979_s9 }
  0x2a   :  { %p3345_p4 = pnand %p3343_p3, %p3340_p2 }
  0x2c   :  { %3348 = shalt.err (!%p3345_p4)
}
  0x2d   :  { %s3349_s30 = scalar_lea.vmem %s98_s25, 2048  ;;  %p3354_p6 = scmp.lt.s32.totalorder %s98_s25, %s98_s25 }
  0x2e   :  { %p3350_p5 = scmp.ne.s32.totalorder %s98_s25, %s3349_s30  ;;  %p3355_p7 = scmp.lt.s32.totalorder %s3349_s30, %s3349_s30 }
  0x30   :  { %p3356_p8 = por %p3355_p7, %p3354_p6 }
  0x32   :  { %p3357_p9 = pnand %p3356_p8, %p3350_p5 }
  0x34   :  { %3360 = shalt.err (!%p3357_p9)
}
  0x35   :  { %s3510_s5 = smov 64   ;;  %s3511_s23 = smov 4  }
  0x36   :  { %103 = dma.hbm_to_vmem [thread:$0]  %s3979_s9, 2048, %s98_s25, [#allocation12], %s3510_s5, %s3510_s5, %s3511_s23  }
  0x37   :  { %s3512_s16 = smov [#allocation2]   ;;  %s3361_s20 = scalar_lea.hbm %s3970_s0, 1792 }
  0x38   :  { %s29_s1 = sshll.u32 %s3512_s16, 4  ;;  %p3362_p10 = scmp.ne.s32.totalorder %s3970_s0, %s3361_s20  ;;  %s30_s1 = int_to_ptr.vmem [resolvable:$true] %s29_s1 }
  0x39   :  { %p3365_p11 = scmp.lt.u32.totalorder %s3361_s20, %s3970_s0 }
  0x3b   :  { %p3367_p12 = pnand %p3365_p11, %p3362_p10 }
  0x3d   :  { %3370 = shalt.err (!%p3367_p12)
}
  0x3e   :  { %s3371_s28 = scalar_lea.vmem %s30_s1, 1792  ;;  %p3376_p0 = scmp.lt.s32.totalorder %s30_s1, %s30_s1 }
  0x3f   :  { %p3372_p13 = scmp.ne.s32.totalorder %s30_s1, %s3371_s28  ;;  %p3377_p1 = scmp.lt.s32.totalorder %s3371_s28, %s3371_s28 }
  0x41   :  { %p3378_p2 = por %p3377_p1, %p3376_p0 }
  0x43   :  { %p3379_p3 = pnand %p3378_p2, %p3372_p13 }
  0x45   :  { %3382 = shalt.err (!%p3379_p3)
}
  0x46   :  { %s3513_s9 = smov 896   ;;  %s3514_s25 = smov 56  }
  0x47   :  { %35 = dma.hbm_to_vmem [thread:$0]  %s3970_s0, 1792, %s30_s1, [#allocation3], %s3513_s9, %s3513_s9, %s3514_s25  }
  0x48   :  { %s3515_s14 = smov [#allocation7]   ;;  %s3516_s16 = smov [#allocation10]  }
  0x49   :  { %s55_s15 = sshll.u32 %s3515_s14, 4  ;;  %s83_s26 = sshll.u32 %s3516_s16, 4  ;;  %s56_s15 = int_to_ptr.vmem [resolvable:$true] %s55_s15  ;;  %s3648_s26 = int_to_ptr.vmem [resolvable:$true] %s83_s26 }
  0x4a   :  { %s3383_s21 = scalar_lea.hbm %s3973_s3, 4096 }
  0x4b   :  { %p3384_p4 = scmp.ne.s32.totalorder %s3973_s3, %s3383_s21  ;;  %p3387_p5 = scmp.lt.u32.totalorder %s3383_s21, %s3973_s3 }
  0x4d   :  { %p3389_p6 = pnand %p3387_p5, %p3384_p4 }
  0x4f   :  { %3392 = shalt.err (!%p3389_p6)
}
  0x50   :  { %s3393_s0 = scalar_lea.vmem %s56_s15, 4096  ;;  %p3398_p8 = scmp.lt.s32.totalorder %s56_s15, %s56_s15 }
  0x51   :  { %p3394_p7 = scmp.ne.s32.totalorder %s56_s15, %s3393_s0  ;;  %p3399_p9 = scmp.lt.s32.totalorder %s3393_s0, %s3393_s0 }
  0x53   :  { %p3400_p10 = por %p3399_p9, %p3398_p8 }
  0x55   :  { %p3401_p11 = pnand %p3400_p10, %p3394_p7 }
  0x57   :  { %3404 = shalt.err (!%p3401_p11)
}
  0x58   :  { %61 = dma.hbm_to_vmem [thread:$0]  %s3973_s3, 4096, %s56_s15, [#allocation6], %s3506_s18, %s3506_s18, %s3507_s19  }
  0x59   :  { %s3405_s30 = scalar_lea.hbm %s3977_s7, 4096 }
  0x5a   :  { %p3406_p12 = scmp.ne.s32.totalorder %s3977_s7, %s3405_s30  ;;  %p3409_p13 = scmp.lt.u32.totalorder %s3405_s30, %s3977_s7 }
  0x5c   :  { %p3411_p0 = pnand %p3409_p13, %p3406_p12 }
  0x5e   :  { %3414 = shalt.err (!%p3411_p0)
}
  0x5f   :  { %s3415_s21 = scalar_lea.vmem %s3648_s26, 4096  ;;  %p3420_p2 = scmp.lt.s32.totalorder %s3648_s26, %s3648_s26 }
  0x60   :  { %p3416_p1 = scmp.ne.s32.totalorder %s3648_s26, %s3415_s21  ;;  %p3421_p3 = scmp.lt.s32.totalorder %s3415_s21, %s3415_s21 }
  0x62   :  { %p3422_p4 = por %p3421_p3, %p3420_p2 }
  0x64   :  { %p3423_p5 = pnand %p3422_p4, %p3416_p1 }
  0x66   :  { %3426 = shalt.err (!%p3423_p5)
}
  0x67   :  { %89 = dma.hbm_to_vmem [thread:$0]  %s3977_s7, 4096, %s3648_s26, [#allocation9], %s3506_s18, %s3506_s18, %s3507_s19  }
  0x68   :  { %s3517_s22 = smov [#allocation13]   ;;  %s3518_s27 = smov [#allocation14]  }
  0x69   :  { %s109_s24 = sshll.u32 %s3517_s22, 4  ;;  %s121_s28 = sshll.u32 %s3518_s27, 4  ;;  %s110_s24 = int_to_ptr.vmem [resolvable:$true] %s109_s24  ;;  %s3685_s28 = int_to_ptr.vmem [resolvable:$true] %s121_s28 }
  0x6a   :  { %s3427_s9 = scalar_lea.hbm %s3980_s10, 2048 }
  0x6b   :  { %p3428_p6 = scmp.ne.s32.totalorder %s3980_s10, %s3427_s9  ;;  %p3431_p7 = scmp.lt.u32.totalorder %s3427_s9, %s3980_s10 }
  0x6d   :  { %p3433_p8 = pnand %p3431_p7, %p3428_p6 }
  0x6f   :  { %3436 = shalt.err (!%p3433_p8)
}
  0x70   :  { %s3437_s7 = scalar_lea.vmem %s110_s24, 2048  ;;  %p3442_p10 = scmp.lt.s32.totalorder %s110_s24, %s110_s24 }
  0x71   :  { %p3438_p9 = scmp.ne.s32.totalorder %s110_s24, %s3437_s7  ;;  %p3443_p11 = scmp.lt.s32.totalorder %s3437_s7, %s3437_s7 }
  0x73   :  { %p3444_p12 = por %p3443_p11, %p3442_p10 }
  0x75   :  { %p3445_p13 = pnand %p3444_p12, %p3438_p9 }
  0x77   :  { %3448 = shalt.err (!%p3445_p13)
}
  0x78   :  { %115 = dma.hbm_to_vmem [thread:$0]  %s3980_s10, 2048, %s110_s24, [#allocation12], %s3510_s5, %s3510_s5, %s3511_s23  }
  0x79   :  { %s3449_s21 = scalar_lea.hbm %s3981_s11, 2048 }
  0x7a   :  { %p3450_p0 = scmp.ne.s32.totalorder %s3981_s11, %s3449_s21  ;;  %p3453_p1 = scmp.lt.u32.totalorder %s3449_s21, %s3981_s11 }
  0x7c   :  { %p3455_p2 = pnand %p3453_p1, %p3450_p0 }
  0x7e   :  { %3458 = shalt.err (!%p3455_p2)
}
  0x7f   :  { %s3459_s0 = scalar_lea.vmem %s3685_s28, 2048  ;;  %p3464_p4 = scmp.lt.s32.totalorder %s3685_s28, %s3685_s28 }
  0x80   :  { %p3460_p3 = scmp.ne.s32.totalorder %s3685_s28, %s3459_s0  ;;  %p3465_p5 = scmp.lt.s32.totalorder %s3459_s0, %s3459_s0 }
  0x82   :  { %p3466_p6 = por %p3465_p5, %p3464_p4 }
  0x84   :  { %p3467_p7 = pnand %p3466_p6, %p3460_p3 }
  0x86   :  { %3470 = shalt.err (!%p3467_p7)
}
  0x87   :  { %127 = dma.hbm_to_vmem [thread:$0]  %s3981_s11, 2048, %s3685_s28, [#allocation15], %s3510_s5, %s3510_s5, %s3511_s23  }
  0x88   :  { %3493 = dma.done.wait [#allocation3], 1792  }
  0x89   :  { %3494 = vsyncadd [#allocation3], 4294965504 }
  0x8a   :  { %3495 = dma.done.wait [#allocation6], 18432  }
  0x8b   :  { %3496 = vsyncadd [#allocation6], 4294948864 }
  0x8c   :  { %3497 = dma.done.wait [#allocation9], 8192  }
  0x8d   :  { %3498 = vsyncadd [#allocation9], 4294959104 }
  0x8e   :  { %3499 = dma.done.wait [#allocation12], 4096  }
  0x8f   :  { %3500 = vsyncadd [#allocation12], 4294963200 }
  0x90   :  { %3501 = dma.done.wait [#allocation15], 2048  }
  0x91   :  { %3502 = vsyncadd [#allocation15], 4294965248  ;;  %v3722_v0 = vld [vmem:[#allocation2] sm:$0xff]  ;;  %v3724_v1 = vld [vmem:[#allocation2 + $0x8] sm:$0xff]  ;;  %s3520_s25 = smov [#allocation16]  }
  0x92   :  { %v3726_v2 = vld [vmem:[#allocation2 + $0x10] sm:$0xff]  ;;  %v3728_v3 = vld [vmem:[#allocation2 + $0x18] sm:$0xff]  ;;  %v282_v4 = vmul.f32 %v3722_v0, %v3722_v0  ;;  %v283_v5 = vmul.f32 %v3724_v1, %v3724_v1  ;;  %v3736_v7 = vld [vmem:[#allocation2 + $0x20] sm:$0xff]  ;;  %s2520_s29 = sshll.u32 %s3520_s25, 4  ;;  %s2521_s29 = int_to_ptr.vmem [resolvable:$true] %s2520_s29 }
  0x93   :  { %v284_v6 = vmul.f32 %v3726_v2, %v3726_v2  ;;  %v3738_v8 = vld [vmem:[#allocation2 + $0x38] sm:$0xff]  ;;  %v3740_v9 = vld [vmem:[#allocation2 + $0x40] sm:$0xff]  ;;  %v3742_v10 = vld [vmem:[#allocation2 + $0x28] sm:$0xff]  ;;  %v285_v11 = vmul.f32 %v3728_v3, %v3728_v3  ;;  %v286_v21 = vmul.f32 %v3736_v7, %v3736_v7  ;;  %s3471_s30 = scalar_lea.vmem %s2521_s29, 256  ;;  %p3476_p9 = scmp.lt.s32.totalorder %s2521_s29, %s2521_s29 }
  0x94   :  { %v296_v12 = vadd.f32 %v283_v5, %v282_v4  ;;  %v3746_v13 = vld [vmem:[#allocation2 + $0x48] sm:$0xff]  ;;  %v3748_v14 = vld [vmem:[#allocation2 + $0x50] sm:$0xff]  ;;  %v289_v15 = vmul.f32 %v3738_v8, %v3738_v8  ;;  %v290_v16 = vmul.f32 %v3740_v9, %v3740_v9  ;;  %v3756_v18 = vld [vmem:[#allocation2 + $0x58] sm:$0xff]  ;;  %v287_v28 = vmul.f32 %v3742_v10, %v3742_v10  ;;  %p3472_p8 = scmp.ne.s32.totalorder %s2521_s29, %s3471_s30  ;;  %p3477_p10 = scmp.lt.s32.totalorder %s3471_s30, %s3471_s30 }
  0x95   :  { %v3754_v17 = vld [vmem:[#allocation2 + $0x30] sm:$0xff]  ;;  %v3758_v19 = vld [vmem:[#allocation2 + $0x60] sm:$0xff]  ;;  %v291_v20 = vmul.f32 %v3746_v13, %v3746_v13  ;;  %v292_v23 = vmul.f32 %v3748_v14, %v3748_v14  ;;  %v293_v30 = vmul.f32 %v3756_v18, %v3756_v18  ;;  %v3770_v32 = vld [vmem:[#allocation2 + $0x68] sm:$0xff] }
  0x96   :  { %v297_v22 = vadd.f32 %v296_v12, %v284_v6  ;;  %v304_v24 = vadd.f32 %v290_v16, %v289_v15  ;;  %v2891_v25 = vld [vmem:[#allocation5 + $0x4] ss:$8 sps:$4 sm:$0xff]   ;;  %v2893_v26 = vld [vmem:[#allocation5] ss:$8 sps:$4 sm:$0xff]   ;;  %v2894_v27 = vld [vmem:[#allocation5 + $0x14] ss:$8 sps:$4 sm:$0xff]   ;;  %v288_v34 = vmul.f32 %v3754_v17, %v3754_v17  ;;  %v294_v36 = vmul.f32 %v3758_v19, %v3758_v19  ;;  %p3478_p11 = por %p3477_p10, %p3476_p9 }
  0x97   :  { %922 = vmatprep.subr.bf16.mxu0 %v2891_v25  ;;  %v2896_v33 = vld [vmem:[#allocation5 + $0x10] ss:$8 sps:$4 sm:$0xff]   ;;  %v2897_v38 = vld [vmem:[#allocation5 + $0x24] ss:$8 sps:$4 sm:$0xff]   ;;  %v295_v40 = vmul.f32 %v3770_v32, %v3770_v32  ;;  %v2899_v42 = vld [vmem:[#allocation5 + $0x20] ss:$8 sps:$4 sm:$0xff]  }
  0x98   :  { %v298_v29 = vadd.f32 %v297_v22, %v285_v11  ;;  %v305_v31 = vadd.f32 %v304_v24, %v291_v20  ;;  %923 = vmatpush1.bf16.msra.mxu0 %v2893_v26  ;;  %v2900_v45 = vld [vmem:[#allocation5 + $0x34] ss:$8 sps:$4 sm:$0xff]   ;;  %v2902_v46 = vld [vmem:[#allocation5 + $0x30] ss:$8 sps:$4 sm:$0xff]   ;;  %v2903_v48 = vld [vmem:[#allocation5 + $0x44] ss:$8 sps:$4 sm:$0xff]   ;;  %p3479_p12 = pnand %p3478_p11, %p3472_p8 }
  0x99   :  { %924 = vmatprep.subr.bf16.mxu0 %v2894_v27  ;;  %v2905_v49 = vld [vmem:[#allocation5 + $0x40] ss:$8 sps:$4 sm:$0xff]   ;;  %v2906_v50 = vld [vmem:[#allocation5 + $0x54] ss:$8 sps:$4 sm:$0xff]   ;;  %v2908_v51 = vld [vmem:[#allocation5 + $0x50] ss:$8 sps:$4 sm:$0xff]  }
  0x9a   :  { %v299_v35 = vadd.f32 %v298_v29, %v286_v21  ;;  %v306_v37 = vadd.f32 %v305_v31, %v292_v23  ;;  %v2909_v52 = vld [vmem:[#allocation5 + $0x64] ss:$8 sps:$4 sm:$0xff]   ;;  %v2911_v53 = vld [vmem:[#allocation5 + $0x60] ss:$8 sps:$4 sm:$0xff]   ;;  %v2912_v54 = vld [vmem:[#allocation5 + $0x74] ss:$8 sps:$4 sm:$0xff]  }
  0x9b   :  { %v2914_v55 = vld [vmem:[#allocation5 + $0x70] ss:$8 sps:$4 sm:$0xff]   ;;  %v2915_v56 = vld [vmem:[#allocation5 + $0x84] ss:$8 sps:$4 sm:$0xff]   ;;  %v2917_v57 = vld [vmem:[#allocation5 + $0x80] ss:$8 sps:$4 sm:$0xff]  }
  0x9c   :  { %v300_v39 = vadd.f32 %v299_v35, %v287_v28  ;;  %v307_v41 = vadd.f32 %v306_v37, %v293_v30  ;;  %925 = vmatpush1.bf16.msra.mxu0 %v2896_v33  ;;  %v2918_v58 = vld [vmem:[#allocation5 + $0x94] ss:$8 sps:$4 sm:$0xff]   ;;  %v2920_v59 = vld [vmem:[#allocation5 + $0x90] ss:$8 sps:$4 sm:$0xff]   ;;  %v2921_v60 = vld [vmem:[#allocation5 + $0xa4] ss:$8 sps:$4 sm:$0xff]  }
  0x9d   :  { %926 = vmatprep.subr.bf16.mxu0 %v2897_v38  ;;  %v2923_v61 = vld [vmem:[#allocation5 + $0xa0] ss:$8 sps:$4 sm:$0xff]   ;;  %v2924_v62 = vld [vmem:[#allocation5 + $0xb4] ss:$8 sps:$4 sm:$0xff]   ;;  %v2926_v63 = vld [vmem:[#allocation5 + $0xb0] ss:$8 sps:$4 sm:$0xff]  }
  0x9e   :  { %v301_v43 = vadd.f32 %v300_v39, %v288_v34  ;;  %v308_v44 = vadd.f32 %v307_v41, %v294_v36  ;;  %v2927_v4 = vld [vmem:[#allocation5 + $0xc4] ss:$8 sps:$4 sm:$0xff]   ;;  %v2929_v5 = vld [vmem:[#allocation5 + $0xc0] ss:$8 sps:$4 sm:$0xff]   ;;  %v2930_v6 = vld [vmem:[#allocation5 + $0xd4] ss:$8 sps:$4 sm:$0xff]  }
  0x9f   :  { %v2932_v11 = vld [vmem:[#allocation5 + $0xd0] ss:$8 sps:$4 sm:$0xff]   ;;  %v2933_v12 = vld [vmem:[#allocation5 + $0xe4] ss:$8 sps:$4 sm:$0xff]   ;;  %v2935_v15 = vld [vmem:[#allocation5 + $0xe0] ss:$8 sps:$4 sm:$0xff]  }
  0xa0   :  { %302 = vadd.xlane.f32.xlu0 %v301_v43  ;;  %v309_v47 = vadd.f32 %v308_v44, %v295_v40  ;;  %927 = vmatpush1.bf16.msra.mxu0 %v2899_v42  ;;  %v2936_v16 = vld [vmem:[#allocation5 + $0xf4] ss:$8 sps:$4 sm:$0xff]   ;;  %v2938_v20 = vld [vmem:[#allocation5 + $0xf0] ss:$8 sps:$4 sm:$0xff]   ;;  %v2941_v21 = vld [vmem:[#allocation5 + $0x104] ss:$8 sps:$4 sm:$0xff]  }
  0xa1   :  { %928 = vmatprep.subr.bf16.mxu0 %v2900_v45 }
  0xa4   :  { %310 = vadd.xlane.f32.xlu0 %v309_v47  ;;  %929 = vmatpush1.bf16.msra.mxu0 %v2902_v46  ;;  %v2939_v47 = vld [vmem:[#allocation5 + $0x100] ss:$8 sps:$4 sm:$0xff]  }
  0xa5   :  { %930 = vmatprep.subr.bf16.mxu0 %v2903_v48  ;;  %v2944_v48 = vld [vmem:[#allocation5 + $0x114] ss:$8 sps:$4 sm:$0xff]  }
  0xa8   :  { %931 = vmatpush1.bf16.msra.mxu0 %v2905_v49  ;;  %v2942_v49 = vld [vmem:[#allocation5 + $0x110] ss:$8 sps:$4 sm:$0xff]  }
  0xa9   :  { %932 = vmatprep.subr.bf16.mxu0 %v2906_v50  ;;  %v2945_v50 = vld [vmem:[#allocation5 + $0x120] ss:$8 sps:$4 sm:$0xff]  }
  0xac   :  { %933 = vmatpush1.bf16.msra.mxu0 %v2908_v51  ;;  %v2950_v51 = vld [vmem:[#allocation5 + $0x134] ss:$8 sps:$4 sm:$0xff]  }
  0xad   :  { %934 = vmatprep.subr.bf16.mxu0 %v2909_v52  ;;  %v2948_v52 = vld [vmem:[#allocation5 + $0x130] ss:$8 sps:$4 sm:$0xff]  }
  0xb0   :  { %935 = vmatpush1.bf16.msra.mxu0 %v2911_v53  ;;  %v2953_v53 = vld [vmem:[#allocation5 + $0x144] ss:$8 sps:$4 sm:$0xff]  }
  0xb1   :  { %936 = vmatprep.subr.bf16.mxu0 %v2912_v54  ;;  %v2951_v54 = vld [vmem:[#allocation5 + $0x140] ss:$8 sps:$4 sm:$0xff]  }
  0xb4   :  { %937 = vmatpush1.bf16.msra.mxu0 %v2914_v55  ;;  %v2956_v55 = vld [vmem:[#allocation5 + $0x154] ss:$8 sps:$4 sm:$0xff]  }
  0xb5   :  { %938 = vmatprep.subr.bf16.mxu0 %v2915_v56  ;;  %v2954_v56 = vld [vmem:[#allocation5 + $0x150] ss:$8 sps:$4 sm:$0xff]  }
  0xb8   :  { %939 = vmatpush1.bf16.msra.mxu0 %v2917_v57  ;;  %v2959_v57 = vld [vmem:[#allocation5 + $0x164] ss:$8 sps:$4 sm:$0xff]  }
  0xb9   :  { %940 = vmatprep.subr.bf16.mxu0 %v2918_v58  ;;  %v2957_v58 = vld [vmem:[#allocation5 + $0x160] ss:$8 sps:$4 sm:$0xff]  }
  0xbc   :  { %941 = vmatpush1.bf16.msra.mxu0 %v2920_v59  ;;  %v2962_v59 = vld [vmem:[#allocation5 + $0x174] ss:$8 sps:$4 sm:$0xff]  }
  0xbd   :  { %942 = vmatprep.subr.bf16.mxu0 %v2921_v60  ;;  %v2960_v60 = vld [vmem:[#allocation5 + $0x170] ss:$8 sps:$4 sm:$0xff]  }
  0xc0   :  { %943 = vmatpush1.bf16.msra.mxu0 %v2923_v61  ;;  %v2965_v61 = vld [vmem:[#allocation5 + $0x184] ss:$8 sps:$4 sm:$0xff]  }
  0xc1   :  { %944 = vmatprep.subr.bf16.mxu0 %v2924_v62  ;;  %v2963_v62 = vld [vmem:[#allocation5 + $0x180] ss:$8 sps:$4 sm:$0xff]  }
  0xc4   :  { %945 = vmatpush1.bf16.msra.mxu0 %v2926_v63  ;;  %v2968_v63 = vld [vmem:[#allocation5 + $0x194] ss:$8 sps:$4 sm:$0xff]  }
  0xc5   :  { %946 = vmatprep.subr.bf16.mxu0 %v2927_v4  ;;  %v2966_v4 = vld [vmem:[#allocation5 + $0x190] ss:$8 sps:$4 sm:$0xff]  }
  0xc8   :  { %947 = vmatpush1.bf16.msra.mxu0 %v2929_v5  ;;  %v2971_v5 = vld [vmem:[#allocation5 + $0x1a4] ss:$8 sps:$4 sm:$0xff]  }
  0xc9   :  { %948 = vmatprep.subr.bf16.mxu0 %v2930_v6  ;;  %v2969_v6 = vld [vmem:[#allocation5 + $0x1a0] ss:$8 sps:$4 sm:$0xff]  }
  0xcc   :  { %949 = vmatpush1.bf16.msra.mxu0 %v2932_v11  ;;  %v2974_v11 = vld [vmem:[#allocation5 + $0x1b4] ss:$8 sps:$4 sm:$0xff]  }
  0xcd   :  { %950 = vmatprep.subr.bf16.mxu0 %v2933_v12  ;;  %v2972_v12 = vld [vmem:[#allocation5 + $0x1b0] ss:$8 sps:$4 sm:$0xff]  }
  0xd0   :  { %951 = vmatpush1.bf16.msra.mxu0 %v2935_v15  ;;  %v2977_v15 = vld [vmem:[#allocation5 + $0x1c4] ss:$8 sps:$4 sm:$0xff]  }
  0xd1   :  { %952 = vmatprep.subr.bf16.mxu0 %v2936_v16  ;;  %v2975_v16 = vld [vmem:[#allocation5 + $0x1c0] ss:$8 sps:$4 sm:$0xff]  }
  0xd4   :  { %953 = vmatpush1.bf16.msra.mxu0 %v2938_v20  ;;  %v2980_v20 = vld [vmem:[#allocation5 + $0x1d4] ss:$8 sps:$4 sm:$0xff]  }
  0xd5   :  { %965 = vmatprep.subr.bf16.mxu0 %v2941_v21  ;;  %v2978_v21 = vld [vmem:[#allocation5 + $0x1d0] ss:$8 sps:$4 sm:$0xff]  }
 0x12d   :  { %v303_v22 = vpop.xlane.xlu0 %302 }
 0x12e   :  { %3251 = vrsqrt.f32 %v303_v22  ;;  %vm314_vm0 = vcmp.eq.f32.partialorder %v303_v22, inf  ;;  %v317_v26 = vand.u32 2147483648, %v303_v22  ;;  %vm316_vm1 = vcmp.eq.f32.partialorder %v303_v22, 0.0 }
 0x131   :  { %v311_v23 = vpop.xlane.xlu0 %310 }
 0x132   :  { %3253 = vrsqrt.f32 %v311_v23  ;;  %vm321_vm2 = vcmp.eq.f32.partialorder %v311_v23, inf  ;;  %v324_v33 = vand.u32 2147483648, %v311_v23  ;;  %vm323_vm3 = vcmp.eq.f32.partialorder %v311_v23, 0.0 }
 0x138   :  { %v3252_v24 = vpop.eup %3251 }
 0x139   :  { %v313_v25 = vmul.f32 %v3252_v24, %v303_v22  ;;  %v2986_v24 = vld [vmem:[#allocation5 + $0x1f4] ss:$8 sps:$4 sm:$0xff]  }
 0x13b   :  { %v315_v27 = vsel %vm314_vm0, %v303_v22, %v313_v25  ;;  %v2983_v22 = vld [vmem:[#allocation5 + $0x1e4] ss:$8 sps:$4 sm:$0xff]   ;;  %v2984_v25 = vld [vmem:[#allocation5 + $0x1f0] ss:$8 sps:$4 sm:$0xff]  }
 0x13c   :  { %v3254_v28 = vpop.eup %3253  ;;  %v318_v29 = vsel %vm316_vm1, %v317_v26, %v315_v27  ;;  %v2989_v26 = vld [vmem:[#allocation5 + $0x204] ss:$8 sps:$4 sm:$0xff]   ;;  %v2987_v27 = vld [vmem:[#allocation5 + $0x200] ss:$8 sps:$4 sm:$0xff]  }
 0x13d   :  { %v326_v30 = vadd.f32 0.02, %v318_v29  ;;  %v320_v31 = vmul.f32 %v3254_v28, %v311_v23  ;;  %v2992_v28 = vld [vmem:[#allocation5 + $0x214] ss:$8 sps:$4 sm:$0xff]   ;;  %v2990_v29 = vld [vmem:[#allocation5 + $0x210] ss:$8 sps:$4 sm:$0xff]  }
 0x13f   :  { %3255 = vrcp.f32 %v326_v30  ;;  %v322_v34 = vsel %vm321_vm2, %v311_v23, %v320_v31  ;;  %v2981_v23 = vld [vmem:[#allocation5 + $0x1e0] ss:$8 sps:$4 sm:$0xff]   ;;  %v2995_v30 = vld [vmem:[#allocation5 + $0x224] ss:$8 sps:$4 sm:$0xff]  }
 0x140   :  { %v325_v35 = vsel %vm323_vm3, %v324_v33, %v322_v34  ;;  %v2993_v31 = vld [vmem:[#allocation5 + $0x220] ss:$8 sps:$4 sm:$0xff]   ;;  %v2998_v33 = vld [vmem:[#allocation5 + $0x234] ss:$8 sps:$4 sm:$0xff]   ;;  %v2996_v34 = vld [vmem:[#allocation5 + $0x230] ss:$8 sps:$4 sm:$0xff]  }
 0x141   :  { %v327_v36 = vadd.f32 0.02, %v325_v35  ;;  %v3001_v35 = vld [vmem:[#allocation5 + $0x244] ss:$8 sps:$4 sm:$0xff]  }
 0x143   :  { %3257 = vrcp.f32 %v327_v36  ;;  %v2999_v36 = vld [vmem:[#allocation5 + $0x240] ss:$8 sps:$4 sm:$0xff]  }
 0x149   :  { %v3256_v37 = vpop.eup %3255 }
 0x14a   :  { %v331_v38 = vmul.f32 %v3256_v37, %v3724_v1  ;;  %v330_v40 = vmul.f32 %v3256_v37, %v3722_v0  ;;  %v3781_v41 = vmul.f32 %v3256_v37, %v3726_v2  ;;  %v3784_v42 = vmul.f32 %v3256_v37, %v3742_v10 }
 0x14b   :  { %v3787_v43 = vmul.f32 %v3256_v37, %v3736_v7  ;;  %v3802_v10 = vmul.f32 %v3256_v37, %v3754_v17 }
 0x14d   :  { %v3258_v39 = vpop.eup %3257 }
 0x14e   :  { %v338_v44 = vmul.f32 %v3258_v39, %v3740_v9  ;;  %v337_v45 = vmul.f32 %v3258_v39, %v3738_v8  ;;  %v340_v46 = vmul.f32 %v3258_v39, %v3748_v14  ;;  %v3793_v1 = vmul.f32 %v3258_v39, %v3746_v13 }
 0x14f   :  { %v3796_v0 = vmul.f32 %v3258_v39, %v3758_v19  ;;  %v3799_v2 = vmul.f32 %v3258_v39, %v3756_v18  ;;  %v3805_v7 = vmul.f32 %v3258_v39, %v3770_v32  ;;  %v333_v14 = vmul.f32 %v3256_v37, %v3728_v3  ;;  %v2947_v3 = vld [vmem:[#allocation5 + $0x124] ss:$8 sps:$4 sm:$0xff]   ;;  %v3004_v37 = vld [vmem:[#allocation5 + $0x254] ss:$8 sps:$4 sm:$0xff]  }
 0x150   :  { %v345_v9 = vpack.c.bf16 %v338_v44, %v331_v38  ;;  %v344_v8 = vpack.c.bf16 %v337_v45, %v330_v40  ;;  %v346_v13 = vpack.c.bf16 %v3793_v1, %v3781_v41  ;;  %v3002_v38 = vld [vmem:[#allocation5 + $0x250] ss:$8 sps:$4 sm:$0xff]   ;;  %v3007_v39 = vld [vmem:[#allocation5 + $0x264] ss:$8 sps:$4 sm:$0xff]   ;;  %v3005_v40 = vld [vmem:[#allocation5 + $0x260] ss:$8 sps:$4 sm:$0xff]  }
 0x151   :  { %v349_v19 = vpack.c.bf16 %v3796_v0, %v3784_v42  ;;  %v348_v18 = vpack.c.bf16 %v3799_v2, %v3787_v43  ;;  %v350_v17 = vpack.c.bf16 %v3805_v7, %v3802_v10  ;;  %v347_v32 = vpack.c.bf16 %v340_v46, %v333_v14  ;;  %v3010_v41 = vld [vmem:[#allocation5 + $0x274] ss:$8 sps:$4 sm:$0xff]   ;;  %v3008_v42 = vld [vmem:[#allocation5 + $0x270] ss:$8 sps:$4 sm:$0xff]   ;;  %v3013_v44 = vld [vmem:[#allocation5 + $0x284] ss:$8 sps:$4 sm:$0xff]  }
 0x152   :  { %954 = vmatprep.mubr.bf16.mxu0 %v345_v9  ;;  %v3011_v45 = vld [vmem:[#allocation5 + $0x280] ss:$8 sps:$4 sm:$0xff]   ;;  %v3016_v46 = vld [vmem:[#allocation5 + $0x294] ss:$8 sps:$4 sm:$0xff]   ;;  %v3014_v1 = vld [vmem:[#allocation5 + $0x290] ss:$8 sps:$4 sm:$0xff]  }
 0x153   :  { %955 = vmatmul.mubr.bf16.vlgmr.msra.gmra.mrb[0].mxu0 %v344_v8  ;;  %v3019_v0 = vld [vmem:[#allocation5 + $0x2a4] ss:$8 sps:$4 sm:$0xff]   ;;  %v3017_v9 = vld [vmem:[#allocation5 + $0x2a0] ss:$8 sps:$4 sm:$0xff]   ;;  %v3020_v8 = vld [vmem:[#allocation5 + $0x2b0] ss:$8 sps:$4 sm:$0xff]  }
 0x154   :  { %966 = vmatpush1.bf16.msra.mxu0 %v2939_v47  ;;  %997 = vmatprep.mubr.bf16.mxu0 %v347_v32  ;;  %v3022_v47 = vld [vmem:[#allocation5 + $0x2b4] ss:$8 sps:$4 sm:$0xff]   ;;  %v3025_v14 = vld [vmem:[#allocation5 + $0x2c4] ss:$8 sps:$4 sm:$0xff]   ;;  %v3050_v43 = vld [vmem:[#allocation5 + $0x350] ss:$8 sps:$4 sm:$0xff]  }
 0x155   :  { %967 = vmatprep.subr.bf16.mxu0 %v2944_v48  ;;  %v3028_v48 = vld [vmem:[#allocation5 + $0x2d4] ss:$8 sps:$4 sm:$0xff]   ;;  %v3031_v32 = vld [vmem:[#allocation5 + $0x2e4] ss:$8 sps:$4 sm:$0xff]   ;;  %v3076_v7 = vld [vmem:[#allocation7 + $0x50] ss:$8 sps:$4 sm:$0xff]  }
 0x156   :  { %v3055_v2 = vld [vmem:[#allocation5 + $0x364] ss:$8 sps:$4 sm:$0xff]   ;;  %v3074_v10 = vld [vmem:[#allocation7 + $0x54] ss:$8 sps:$4 sm:$0xff]  }
 0x158   :  { %968 = vmatpush1.bf16.msra.mxu0 %v2942_v49  ;;  %v3029_v49 = vld [vmem:[#allocation5 + $0x2e0] ss:$8 sps:$4 sm:$0xff]  }
 0x159   :  { %969 = vmatprep.subr.bf16.mxu0 %v2947_v3  ;;  %v3034_v3 = vld [vmem:[#allocation5 + $0x2f4] ss:$8 sps:$4 sm:$0xff]  }
 0x15c   :  { %970 = vmatpush1.bf16.msra.mxu0 %v2945_v50  ;;  %v3032_v50 = vld [vmem:[#allocation5 + $0x2f0] ss:$8 sps:$4 sm:$0xff]  }
 0x15d   :  { %971 = vmatprep.subr.bf16.mxu0 %v2950_v51  ;;  %v3037_v51 = vld [vmem:[#allocation5 + $0x304] ss:$8 sps:$4 sm:$0xff]  }
 0x160   :  { %972 = vmatpush1.bf16.msra.mxu0 %v2948_v52  ;;  %v3035_v52 = vld [vmem:[#allocation5 + $0x300] ss:$8 sps:$4 sm:$0xff]  }
 0x161   :  { %973 = vmatprep.subr.bf16.mxu0 %v2953_v53  ;;  %v3040_v53 = vld [vmem:[#allocation5 + $0x314] ss:$8 sps:$4 sm:$0xff]  }
 0x164   :  { %974 = vmatpush1.bf16.msra.mxu0 %v2951_v54  ;;  %v3038_v54 = vld [vmem:[#allocation5 + $0x310] ss:$8 sps:$4 sm:$0xff]  }
 0x165   :  { %975 = vmatprep.subr.bf16.mxu0 %v2956_v55  ;;  %v3519_v55 = vmov 0  }
 0x168   :  { %976 = vmatpush1.bf16.msra.mxu0 %v2954_v56  ;;  %v3043_v56 = vld [vmem:[#allocation5 + $0x324] ss:$8 sps:$4 sm:$0xff]  }
 0x169   :  { %977 = vmatprep.subr.bf16.mxu0 %v2959_v57  ;;  %v3041_v57 = vld [vmem:[#allocation5 + $0x320] ss:$8 sps:$4 sm:$0xff]  }
 0x16c   :  { %978 = vmatpush1.bf16.msra.mxu0 %v2957_v58  ;;  %v3046_v58 = vld [vmem:[#allocation5 + $0x334] ss:$8 sps:$4 sm:$0xff]  }
 0x16d   :  { %979 = vmatprep.subr.bf16.mxu0 %v2962_v59  ;;  %v3044_v59 = vld [vmem:[#allocation5 + $0x330] ss:$8 sps:$4 sm:$0xff]  }
 0x170   :  { %980 = vmatpush1.bf16.msra.mxu0 %v2960_v60  ;;  %v3049_v60 = vld [vmem:[#allocation5 + $0x344] ss:$8 sps:$4 sm:$0xff]  }
 0x171   :  { %981 = vmatprep.subr.bf16.mxu0 %v2965_v61  ;;  %v3047_v61 = vld [vmem:[#allocation5 + $0x340] ss:$8 sps:$4 sm:$0xff]  }
 0x174   :  { %982 = vmatpush1.bf16.msra.mxu0 %v2963_v62  ;;  %v3052_v62 = vld [vmem:[#allocation5 + $0x354] ss:$8 sps:$4 sm:$0xff]  }
 0x175   :  { %983 = vmatprep.subr.bf16.mxu0 %v2968_v63  ;;  %v3058_v63 = vld [vmem:[#allocation5 + $0x374] ss:$8 sps:$4 sm:$0xff]  }
 0x178   :  { %984 = vmatpush1.bf16.msra.mxu0 %v2966_v4  ;;  %v3056_v4 = vld [vmem:[#allocation5 + $0x370] ss:$8 sps:$4 sm:$0xff]  }
 0x179   :  { %985 = vmatprep.subr.bf16.mxu0 %v2971_v5  ;;  %v3059_v5 = vld [vmem:[#allocation7 + $0x4] ss:$8 sps:$4 sm:$0xff]  }
 0x17a   :  { %1336 = vmatprep.subr.bf16.mxu1 %v3059_v5 }
 0x17c   :  { %986 = vmatpush1.bf16.msra.mxu0 %v2969_v6  ;;  %v3061_v6 = vld [vmem:[#allocation7] ss:$8 sps:$4 sm:$0xff]  }
 0x17d   :  { %987 = vmatprep.subr.bf16.mxu0 %v2974_v11  ;;  %v3062_v11 = vld [vmem:[#allocation7 + $0x14] ss:$8 sps:$4 sm:$0xff]   ;;  %1337 = vmatpush1.bf16.msra.mxu1 %v3061_v6 }
 0x17e   :  { %1338 = vmatprep.subr.bf16.mxu1 %v3062_v11 }
 0x180   :  { %988 = vmatpush1.bf16.msra.mxu0 %v2972_v12  ;;  %v3064_v12 = vld [vmem:[#allocation7 + $0x10] ss:$8 sps:$4 sm:$0xff]  }
 0x181   :  { %989 = vmatprep.subr.bf16.mxu0 %v2977_v15  ;;  %v3065_v15 = vld [vmem:[#allocation7 + $0x24] ss:$8 sps:$4 sm:$0xff]   ;;  %1339 = vmatpush1.bf16.msra.mxu1 %v3064_v12 }
 0x182   :  { %1340 = vmatprep.subr.bf16.mxu1 %v3065_v15 }
 0x184   :  { %990 = vmatpush1.bf16.msra.mxu0 %v2975_v16  ;;  %v3067_v16 = vld [vmem:[#allocation7 + $0x20] ss:$8 sps:$4 sm:$0xff]  }
 0x185   :  { %991 = vmatprep.subr.bf16.mxu0 %v2980_v20  ;;  %v3068_v20 = vld [vmem:[#allocation7 + $0x34] ss:$8 sps:$4 sm:$0xff]   ;;  %1341 = vmatpush1.bf16.msra.mxu1 %v3067_v16 }
 0x186   :  { %1342 = vmatprep.subr.bf16.mxu1 %v3068_v20 }
 0x188   :  { %992 = vmatpush1.bf16.msra.mxu0 %v2978_v21  ;;  %v3070_v21 = vld [vmem:[#allocation7 + $0x30] ss:$8 sps:$4 sm:$0xff]  }
 0x189   :  { %993 = vmatprep.subr.bf16.mxu0 %v2983_v22  ;;  %v3071_v22 = vld [vmem:[#allocation7 + $0x44] ss:$8 sps:$4 sm:$0xff]   ;;  %1343 = vmatpush1.bf16.msra.mxu1 %v3070_v21 }
 0x18a   :  { %1344 = vmatprep.subr.bf16.mxu1 %v3071_v22 }
 0x18c   :  { %994 = vmatpush1.bf16.msra.mxu0 %v2981_v23  ;;  %v3073_v23 = vld [vmem:[#allocation7 + $0x40] ss:$8 sps:$4 sm:$0xff]  }
 0x18d   :  { %995 = vmatprep.subr.bf16.mxu0 %v2986_v24  ;;  %1345 = vmatpush1.bf16.msra.mxu1 %v3073_v23  ;;  %v3079_v24 = vld [vmem:[#allocation7 + $0x60] ss:$8 sps:$4 sm:$0xff]  }
 0x18e   :  { %1346 = vmatprep.subr.bf16.mxu1 %v3074_v10 }
 0x190   :  { %996 = vmatpush1.bf16.msra.mxu0 %v2984_v25  ;;  %v352_v25 = vlaneseq }
 0x191   :  { %1008 = vmatprep.subr.bf16.mxu0 %v2989_v26  ;;  %1347 = vmatpush1.bf16.msra.mxu1 %v3076_v7 }
 0x192   :  { %v353_v26 = vshrl.u32 %v352_v25, 7 }
 0x193   :  { %998 = vmatmul.mubr.bf16.vlgmr.msra.gmra.mrb[0].mxu0 %v346_v13  ;;  %v3023_v13 = vld [vmem:[#allocation5 + $0x2c0] ss:$8 sps:$4 sm:$0xff]  }
 0x194   :  { %1009 = vmatpush1.bf16.msra.mxu0 %v2987_v27  ;;  %1040 = vmatprep.mubr.bf16.mxu0 %v349_v19  ;;  %v3026_v19 = vld [vmem:[#allocation5 + $0x2d0] ss:$8 sps:$4 sm:$0xff]   ;;  %v3828_v27 = vsub.s32 0, %v353_v26 }
 0x195   :  { %1010 = vmatprep.subr.bf16.mxu0 %v2992_v28  ;;  %v281_v28 = vld [vmem:[%s3972_s2] sm:$0x3] }
 0x198   :  { %1011 = vmatpush1.bf16.msra.mxu0 %v2990_v29  ;;  %v3833_v29 = vsub.s32 1, %v353_v26  ;;  %v3107_v26 = vld [vmem:[#allocation8] ss:$8 sps:$4 sm:$0xff]  }
 0x199   :  { %1012 = vmatprep.subr.bf16.mxu0 %v2995_v30  ;;  %v355_v30 = vrot.slane %v281_v28, %v3828_v27 }
 0x19c   :  { %1013 = vmatpush1.bf16.msra.mxu0 %v2993_v31  ;;  %v359_v31 = vrot.slane %v281_v28, %v3833_v29  ;;  %v3109_v28 = vld [vmem:[#allocation8 + $0x4] ss:$8 sps:$4 sm:$0xff]  }
 0x19d   :  { %1014 = vmatprep.subr.bf16.mxu0 %v2998_v33 }
 0x1a0   :  { %1015 = vmatpush1.bf16.msra.mxu0 %v2996_v34 }
 0x1a1   :  { %1016 = vmatprep.subr.bf16.mxu0 %v3001_v35 }
 0x1a4   :  { %1017 = vmatpush1.bf16.msra.mxu0 %v2999_v36 }
 0x1a5   :  { %1018 = vmatprep.subr.bf16.mxu0 %v3004_v37 }
 0x1a8   :  { %1019 = vmatpush1.bf16.msra.mxu0 %v3002_v38 }
 0x1a9   :  { %1020 = vmatprep.subr.bf16.mxu0 %v3007_v39 }
 0x1ac   :  { %1021 = vmatpush1.bf16.msra.mxu0 %v3005_v40 }
 0x1ad   :  { %1022 = vmatprep.subr.bf16.mxu0 %v3010_v41 }
 0x1b0   :  { %1023 = vmatpush1.bf16.msra.mxu0 %v3008_v42 }
 0x1b1   :  { %1024 = vmatprep.subr.bf16.mxu0 %v3013_v44 }
 0x1b4   :  { %1025 = vmatpush1.bf16.msra.mxu0 %v3011_v45 }
 0x1b5   :  { %1026 = vmatprep.subr.bf16.mxu0 %v3016_v46 }
 0x1b8   :  { %1027 = vmatpush1.bf16.msra.mxu0 %v3014_v1 }
 0x1b9   :  { %1028 = vmatprep.subr.bf16.mxu0 %v3019_v0 }
 0x1bc   :  { %1029 = vmatpush1.bf16.msra.mxu0 %v3017_v9 }
 0x1bd   :  { %1030 = vmatprep.subr.bf16.mxu0 %v3022_v47 }
 0x1c0   :  { %1031 = vmatpush1.bf16.msra.mxu0 %v3020_v8 }
 0x1c1   :  { %1032 = vmatprep.subr.bf16.mxu0 %v3025_v14  ;;  %v3080_v14 = vld [vmem:[#allocation7 + $0x74] ss:$8 sps:$4 sm:$0xff]  }
 0x1c4   :  { %1033 = vmatpush1.bf16.msra.mxu0 %v3023_v13  ;;  %v3082_v13 = vld [vmem:[#allocation7 + $0x70] ss:$8 sps:$4 sm:$0xff]  }
 0x1c5   :  { %1034 = vmatprep.subr.bf16.mxu0 %v3028_v48  ;;  %v3083_v48 = vld [vmem:[#allocation7 + $0x84] ss:$8 sps:$4 sm:$0xff]  }
 0x1c8   :  { %1035 = vmatpush1.bf16.msra.mxu0 %v3026_v19  ;;  %v3085_v19 = vld [vmem:[#allocation7 + $0x80] ss:$8 sps:$4 sm:$0xff]  }
 0x1c9   :  { %1036 = vmatprep.subr.bf16.mxu0 %v3031_v32  ;;  %v3086_v32 = vld [vmem:[#allocation7 + $0x94] ss:$8 sps:$4 sm:$0xff]  }
 0x1cc   :  { %1037 = vmatpush1.bf16.msra.mxu0 %v3029_v49  ;;  %v3088_v49 = vld [vmem:[#allocation7 + $0x90] ss:$8 sps:$4 sm:$0xff]  }
 0x1cd   :  { %1038 = vmatprep.subr.bf16.mxu0 %v3034_v3  ;;  %v3089_v3 = vld [vmem:[#allocation7 + $0xa4] ss:$8 sps:$4 sm:$0xff]  }
 0x1d0   :  { %1039 = vmatpush1.bf16.msra.mxu0 %v3032_v50  ;;  %v3091_v50 = vld [vmem:[#allocation7 + $0xa0] ss:$8 sps:$4 sm:$0xff]  }
 0x1d1   :  { %1051 = vmatprep.subr.bf16.mxu0 %v3037_v51  ;;  %v3092_v51 = vld [vmem:[#allocation7 + $0xb4] ss:$8 sps:$4 sm:$0xff]  }
 0x1d3   :  { %1041 = vmatmul.mubr.bf16.vlgmr.msra.gmra.mrb[0].mxu0 %v348_v18  ;;  %v3053_v18 = vld [vmem:[#allocation5 + $0x360] ss:$8 sps:$4 sm:$0xff]  }
 0x1d4   :  { %1052 = vmatpush1.bf16.msra.mxu0 %v3035_v52  ;;  %1083 = vmatprep.mubr.bf16.mxu0 %v3519_v55  ;;  %v3094_v52 = vld [vmem:[#allocation7 + $0xb0] ss:$8 sps:$4 sm:$0xff]   ;;  %v3098_v55 = vld [vmem:[#allocation7 + $0xd4] ss:$8 sps:$4 sm:$0xff]  }
 0x1d5   :  { %1053 = vmatprep.subr.bf16.mxu0 %v3040_v53  ;;  %v3095_v53 = vld [vmem:[#allocation7 + $0xc4] ss:$8 sps:$4 sm:$0xff]  }
 0x1d8   :  { %1054 = vmatpush1.bf16.msra.mxu0 %v3038_v54  ;;  %v3097_v54 = vld [vmem:[#allocation7 + $0xc0] ss:$8 sps:$4 sm:$0xff]  }
 0x1d9   :  { %1055 = vmatprep.subr.bf16.mxu0 %v3043_v56  ;;  %v3100_v56 = vld [vmem:[#allocation7 + $0xd0] ss:$8 sps:$4 sm:$0xff]  }
 0x1dc   :  { %1056 = vmatpush1.bf16.msra.mxu0 %v3041_v57  ;;  %v3101_v57 = vld [vmem:[#allocation7 + $0xe4] ss:$8 sps:$4 sm:$0xff]  }
 0x1dd   :  { %1057 = vmatprep.subr.bf16.mxu0 %v3046_v58  ;;  %v3103_v58 = vld [vmem:[#allocation7 + $0xe0] ss:$8 sps:$4 sm:$0xff]  }
 0x1e0   :  { %1058 = vmatpush1.bf16.msra.mxu0 %v3044_v59  ;;  %v3104_v59 = vld [vmem:[#allocation7 + $0xf4] ss:$8 sps:$4 sm:$0xff]  }
 0x1e1   :  { %1059 = vmatprep.subr.bf16.mxu0 %v3049_v60  ;;  %v3106_v60 = vld [vmem:[#allocation7 + $0xf0] ss:$8 sps:$4 sm:$0xff]  }
 0x1e4   :  { %1060 = vmatpush1.bf16.msra.mxu0 %v3047_v61 }
 0x1e5   :  { %1061 = vmatprep.subr.bf16.mxu0 %v3052_v62 }
 0x1e8   :  { %1062 = vmatpush1.bf16.msra.mxu0 %v3050_v43 }
 0x1e9   :  { %1063 = vmatprep.subr.bf16.mxu0 %v3055_v2 }
 0x1ec   :  { %1064 = vmatpush1.bf16.msra.mxu0 %v3053_v18 }
 0x1ed   :  { %1065 = vmatprep.subr.bf16.mxu0 %v3058_v63 }
 0x1f0   :  { %1066 = vmatpush1.bf16.msra.mxu0 %v3056_v4 }
 0x1f3   :  { %1084 = vmatmul.mubr.bf16.vlgmr.msra.gmra.mrb[0].mxu0 %v350_v17  ;;  %v3077_v17 = vld [vmem:[#allocation7 + $0x64] ss:$8 sps:$4 sm:$0xff]  }
 0x1f4   :  { %1348 = vmatprep.subr.bf16.mxu1 %v3077_v17 }
 0x1f5   :  { %1349 = vmatpush1.bf16.msra.mxu1 %v3079_v24 }
 0x1f6   :  { %1350 = vmatprep.subr.bf16.mxu1 %v3080_v14 }
 0x1f9   :  { %1351 = vmatpush1.bf16.msra.mxu1 %v3082_v13 }
 0x1fa   :  { %1352 = vmatprep.subr.bf16.mxu1 %v3083_v48 }
 0x1fd   :  { %1353 = vmatpush1.bf16.msra.mxu1 %v3085_v19 }
 0x1fe   :  { %1354 = vmatprep.subr.bf16.mxu1 %v3086_v32 }
 0x201   :  { %1355 = vmatpush1.bf16.msra.mxu1 %v3088_v49 }
 0x202   :  { %1356 = vmatprep.subr.bf16.mxu1 %v3089_v3 }
 0x205   :  { %1357 = vmatpush1.bf16.msra.mxu1 %v3091_v50 }
 0x206   :  { %1358 = vmatprep.subr.bf16.mxu1 %v3092_v51 }
 0x209   :  { %1359 = vmatpush1.bf16.msra.mxu1 %v3094_v52 }
 0x20a   :  { %1360 = vmatprep.subr.bf16.mxu1 %v3095_v53 }
 0x20d   :  { %1361 = vmatpush1.bf16.msra.mxu1 %v3097_v54 }
 0x20e   :  { %1362 = vmatprep.subr.bf16.mxu1 %v3098_v55 }
 0x211   :  { %1363 = vmatpush1.bf16.msra.mxu1 %v3100_v56 }
 0x212   :  { %1364 = vmatprep.subr.bf16.mxu1 %v3101_v57 }
 0x215   :  { %1365 = vmatpush1.bf16.msra.mxu1 %v3103_v58  ;;  %v3133_v58 = vld [vmem:[#allocation8 + $0x84] ss:$8 sps:$4 sm:$0xff]  }
 0x216   :  { %1366 = vmatprep.subr.bf16.mxu1 %v3104_v59  ;;  %v3131_v59 = vld [vmem:[#allocation8 + $0x80] ss:$8 sps:$4 sm:$0xff]  }
 0x219   :  { %1367 = vmatpush1.bf16.msra.mxu1 %v3106_v60  ;;  %v3136_v60 = vld [vmem:[#allocation8 + $0x94] ss:$8 sps:$4 sm:$0xff]  }
 0x21a   :  { %1621 = vmatprep.subr.bf16.mxu1 %v3109_v28  ;;  %v3165_v28 = vld [vmem:[#allocation13 + $0x68] sm:$0xff]  }
 0x2c6   :  { %v1085_v33 = vpop.f32.mrb[0].mxu0 }
 0x2c7   :  { %v2859_v34 = vadd.f32 %v1085_v33, %v355_v30  ;;  %v1087_v35 = vpop.f32.mrb[1].mxu0  ;;  %v3115_v33 = vld [vmem:[#allocation8 + $0x24] ss:$8 sps:$4 sm:$0xff]  }
 0x2c8   :  { %v2860_v36 = vadd.f32 %v1087_v35, %v359_v31  ;;  %v1089_v37 = vpop.f32.mrb[2].mxu0  ;;  %v3118_v35 = vld [vmem:[#allocation8 + $0x34] ss:$8 sps:$4 sm:$0xff]  }
 0x2c9   :  { %v3837_v38 = vmax.f32 %v2859_v34, 0.0  ;;  %v2861_v39 = vadd.f32 %v1089_v37, %v355_v30  ;;  %v1091_v40 = vpop.f32.mrb[3].mxu0  ;;  %v3112_v30 = vld [vmem:[#allocation8 + $0x14] ss:$8 sps:$4 sm:$0xff]   ;;  %v3113_v34 = vld [vmem:[#allocation8 + $0x20] ss:$8 sps:$4 sm:$0xff]  }
 0x2ca   :  { %v3839_v41 = vmax.f32 %v2860_v36, 0.0  ;;  %v2862_v42 = vadd.f32 %v1091_v40, %v359_v31  ;;  %v3110_v31 = vld [vmem:[#allocation8 + $0x10] ss:$8 sps:$4 sm:$0xff]   ;;  %v3121_v37 = vld [vmem:[#allocation8 + $0x44] ss:$8 sps:$4 sm:$0xff]  }
 0x2cb   :  { %v3841_v44 = vmax.f32 %v2861_v39, 0.0  ;;  %v1131_v45 = vmul.f32 %v3837_v38, %v3837_v38  ;;  %v3116_v36 = vld [vmem:[#allocation8 + $0x30] ss:$8 sps:$4 sm:$0xff]   ;;  %v3124_v39 = vld [vmem:[#allocation8 + $0x54] ss:$8 sps:$4 sm:$0xff]  }
 0x2cc   :  { %v3845_v46 = vmax.f32 %v2862_v42, 0.0  ;;  %v1132_v1 = vmul.f32 %v3839_v41, %v3839_v41  ;;  %v3122_v40 = vld [vmem:[#allocation8 + $0x50] ss:$8 sps:$4 sm:$0xff]   ;;  %v3125_v42 = vld [vmem:[#allocation8 + $0x60] ss:$8 sps:$4 sm:$0xff]  }
 0x2cd   :  { %v1133_v0 = vmul.f32 %v3841_v44, %v3841_v44 }
 0x2ce   :  { %v1134_v9 = vmul.f32 %v3845_v46, %v3845_v46  ;;  %v1135_v47 = vadd.f32 %v1132_v1, %v1131_v45  ;;  %v3128_v45 = vld [vmem:[#allocation8 + $0x70] ss:$8 sps:$4 sm:$0xff]  }
 0x2d0   :  { %1136 = vadd.xlane.f32.xlu1 %v1135_v47  ;;  %v1138_v8 = vadd.f32 %v1134_v9, %v1133_v0 }
 0x2d4   :  { %1139 = vadd.xlane.f32.xlu1 %v1138_v8 }
 0x35d   :  { %v1137_v61 = vpop.xlane.xlu1 %1136 }
 0x35e   :  { %3259 = vrsqrt.f32 %v1137_v61  ;;  %vm1143_vm4 = vcmp.eq.f32.partialorder %v1137_v61, inf  ;;  %v1146_v18 = vand.u32 2147483648, %v1137_v61  ;;  %vm1145_vm5 = vcmp.eq.f32.partialorder %v1137_v61, 0.0 }
 0x361   :  { %v1140_v62 = vpop.xlane.xlu1 %1139 }
 0x362   :  { %3261 = vrsqrt.f32 %v1140_v62  ;;  %vm1150_vm6 = vcmp.eq.f32.partialorder %v1140_v62, inf  ;;  %v1153_v12 = vand.u32 2147483648, %v1140_v62  ;;  %vm1152_vm7 = vcmp.eq.f32.partialorder %v1140_v62, 0.0 }
 0x368   :  { %v3260_v43 = vpop.eup %3259 }
 0x369   :  { %v1142_v2 = vmul.f32 %v3260_v43, %v1137_v61  ;;  %v3137_v43 = vld [vmem:[#allocation8 + $0xa0] ss:$8 sps:$4 sm:$0xff]  }
 0x36b   :  { %v1144_v63 = vsel %vm1143_vm4, %v1137_v61, %v1142_v2  ;;  %v3134_v61 = vld [vmem:[#allocation8 + $0x90] ss:$8 sps:$4 sm:$0xff]   ;;  %v3142_v2 = vld [vmem:[#allocation8 + $0xb4] ss:$8 sps:$4 sm:$0xff]  }
 0x36c   :  { %v3262_v4 = vpop.eup %3261  ;;  %v1147_v5 = vsel %vm1145_vm5, %v1146_v18, %v1144_v63  ;;  %v3140_v18 = vld [vmem:[#allocation8 + $0xb0] ss:$8 sps:$4 sm:$0xff]   ;;  %v3145_v63 = vld [vmem:[#allocation8 + $0xc4] ss:$8 sps:$4 sm:$0xff]  }
 0x36d   :  { %v1149_v6 = vmul.f32 %v3262_v4, %v1140_v62  ;;  %v1155_v11 = vadd.f32 0.02, %v1147_v5  ;;  %v3143_v4 = vld [vmem:[#allocation8 + $0xc0] ss:$8 sps:$4 sm:$0xff]   ;;  %v3148_v5 = vld [vmem:[#allocation8 + $0xd4] ss:$8 sps:$4 sm:$0xff]  }
 0x36f   :  { %v1151_v15 = vsel %vm1150_vm6, %v1140_v62, %v1149_v6  ;;  %3263 = vrcp.f32 %v1155_v11  ;;  %v3139_v62 = vld [vmem:[#allocation8 + $0xa4] ss:$8 sps:$4 sm:$0xff]   ;;  %v3146_v6 = vld [vmem:[#allocation8 + $0xd0] ss:$8 sps:$4 sm:$0xff]  }
 0x370   :  { %v1154_v16 = vsel %vm1152_vm7, %v1153_v12, %v1151_v15  ;;  %v3151_v11 = vld [vmem:[#allocation8 + $0xe4] ss:$8 sps:$4 sm:$0xff]   ;;  %v3149_v12 = vld [vmem:[#allocation8 + $0xe0] ss:$8 sps:$4 sm:$0xff]   ;;  %v3154_v15 = vld [vmem:[#allocation8 + $0xf4] ss:$8 sps:$4 sm:$0xff]  }
 0x371   :  { %v1156_v20 = vadd.f32 0.02, %v1154_v16  ;;  %v3152_v16 = vld [vmem:[#allocation8 + $0xf0] ss:$8 sps:$4 sm:$0xff]  }
 0x373   :  { %3265 = vrcp.f32 %v1156_v20  ;;  %v3155_v20 = vld [vmem:[#allocation13 + $0x40] sm:$0xff]  }
 0x374   :  { %2815 = vmatprep.subr.bf16.mxu0 %v3155_v20  ;;  %v3194_v20 = vld [vmem:[#allocation10 + $0x74] ss:$8 sps:$4 sm:$0xff]  }
 0x379   :  { %v3264_v21 = vpop.eup %3263 }
 0x37a   :  { %v1160_v23 = vmul.f32 %v3264_v21, %v3839_v41  ;;  %v1159_v7 = vmul.f32 %v3264_v21, %v3837_v38  ;;  %v3119_v38 = vld [vmem:[#allocation8 + $0x40] ss:$8 sps:$4 sm:$0xff]   ;;  %v3127_v41 = vld [vmem:[#allocation8 + $0x64] ss:$8 sps:$4 sm:$0xff]  }
 0x37b   :  { %v3156_v21 = vld [vmem:[#allocation13] sm:$0xff]  }
 0x37c   :  { %2816 = vmatpush3.bf16.msra.mxu0 %v3156_v21  ;;  %v3192_v21 = vld [vmem:[#allocation10 + $0x70] ss:$8 sps:$4 sm:$0xff]  }
 0x37d   :  { %v3266_v22 = vpop.eup %3265 }
 0x37e   :  { %v1162_v10 = vmul.f32 %v3266_v22, %v3845_v46  ;;  %v1161_v17 = vmul.f32 %v3266_v22, %v3841_v44  ;;  %v3130_v44 = vld [vmem:[#allocation8 + $0x74] ss:$8 sps:$4 sm:$0xff]   ;;  %v1130_v46 = vld [vmem:[%s3974_s4] sm:$0x3]  ;;  %v3157_v22 = vld [vmem:[#allocation13 + $0x48] sm:$0xff]  }
 0x37f   :  { %v1169_v1 = vrot.slane %v1130_v46, %v3828_v27  ;;  %v1173_v0 = vrot.slane %v1130_v46, %v3833_v29  ;;  %2817 = vmatprep.subr.bf16.mxu0 %v3157_v22  ;;  %v1415_v22 = vld [vmem:[%s3976_s6] sm:$0x3] }
 0x380   :  { %v1164_v24 = vpack.c.bf16 %v1162_v10, %v1160_v23  ;;  %v1163_v25 = vpack.c.bf16 %v1161_v17, %v1159_v7  ;;  %v3158_v23 = vld [vmem:[#allocation13 + $0x8] sm:$0xff]   ;;  %v3159_v10 = vld [vmem:[#allocation13 + $0x50] sm:$0xff]   ;;  %v3161_v17 = vld [vmem:[#allocation13 + $0x58] sm:$0xff]  }
 0x381   :  { %2818 = vmatpush3.bf16.msra.mxu0 %v3158_v23  ;;  %v3160_v7 = vld [vmem:[#allocation13 + $0x10] sm:$0xff]   ;;  %v1454_v23 = vrot.slane %v1415_v22, %v3828_v27 }
 0x382   :  { %1368 = vmatprep.mubr.bf16.mxu1 %v1164_v24  ;;  %2819 = vmatprep.subr.bf16.mxu0 %v3159_v10  ;;  %v3162_v24 = vld [vmem:[#allocation13 + $0x18] sm:$0xff]   ;;  %v1458_v10 = vrot.slane %v1415_v22, %v3833_v29 }
 0x383   :  { %1369 = vmatmul.mubr.bf16.vlgmr.msra.gmra.mrb[0].mxu1 %v1163_v25  ;;  %v3163_v25 = vld [vmem:[#allocation13 + $0x60] sm:$0xff]  }
 0x384   :  { %1622 = vmatpush1.bf16.msra.mxu1 %v3107_v26  ;;  %v3164_v26 = vld [vmem:[#allocation13 + $0x20] sm:$0xff]  }
 0x385   :  { %1623 = vmatprep.subr.bf16.mxu1 %v3112_v30  ;;  %2820 = vmatpush3.bf16.msra.mxu0 %v3160_v7 }
 0x386   :  { %2821 = vmatprep.subr.bf16.mxu0 %v3161_v17 }
 0x388   :  { %1624 = vmatpush1.bf16.msra.mxu1 %v3110_v31 }
 0x389   :  { %1625 = vmatprep.subr.bf16.mxu1 %v3115_v33  ;;  %2822 = vmatpush3.bf16.msra.mxu0 %v3162_v24 }
 0x38a   :  { %2823 = vmatprep.subr.bf16.mxu0 %v3163_v25 }
 0x38c   :  { %1626 = vmatpush1.bf16.msra.mxu1 %v3113_v34 }
 0x38d   :  { %1627 = vmatprep.subr.bf16.mxu1 %v3118_v35  ;;  %2824 = vmatpush3.bf16.msra.mxu0 %v3164_v26 }
 0x38e   :  { %2825 = vmatprep.subr.bf16.mxu0 %v3165_v28 }
 0x390   :  { %1628 = vmatpush1.bf16.msra.mxu1 %v3116_v36 }
 0x391   :  { %1629 = vmatprep.subr.bf16.mxu1 %v3121_v37 }
 0x394   :  { %1630 = vmatpush1.bf16.msra.mxu1 %v3119_v38 }
 0x395   :  { %1631 = vmatprep.subr.bf16.mxu1 %v3124_v39 }
 0x398   :  { %1632 = vmatpush1.bf16.msra.mxu1 %v3122_v40 }
 0x399   :  { %1633 = vmatprep.subr.bf16.mxu1 %v3127_v41 }
 0x39c   :  { %1634 = vmatpush1.bf16.msra.mxu1 %v3125_v42 }
 0x39d   :  { %1635 = vmatprep.subr.bf16.mxu1 %v3130_v44 }
 0x3a0   :  { %1636 = vmatpush1.bf16.msra.mxu1 %v3128_v45 }
 0x3a1   :  { %1637 = vmatprep.subr.bf16.mxu1 %v3133_v58 }
 0x3a4   :  { %1638 = vmatpush1.bf16.msra.mxu1 %v3131_v59  ;;  %v3168_v59 = vld [vmem:[#allocation13 + $0x30] sm:$0xff]  }
 0x3a5   :  { %1639 = vmatprep.subr.bf16.mxu1 %v3136_v60  ;;  %v3170_v60 = vld [vmem:[#allocation13 + $0x38] sm:$0xff]  }
 0x3a8   :  { %1640 = vmatpush1.bf16.msra.mxu1 %v3134_v61  ;;  %v3173_v61 = vld [vmem:[#allocation10 + $0x4] ss:$8 sps:$4 sm:$0xff]  }
 0x3a9   :  { %1641 = vmatprep.subr.bf16.mxu1 %v3139_v62  ;;  %v3176_v62 = vld [vmem:[#allocation10 + $0x14] ss:$8 sps:$4 sm:$0xff]  }
 0x3ac   :  { %1642 = vmatpush1.bf16.msra.mxu1 %v3137_v43  ;;  %v3174_v43 = vld [vmem:[#allocation10 + $0x10] ss:$8 sps:$4 sm:$0xff]  }
 0x3ad   :  { %1643 = vmatprep.subr.bf16.mxu1 %v3142_v2  ;;  %v3179_v2 = vld [vmem:[#allocation10 + $0x24] ss:$8 sps:$4 sm:$0xff]  }
 0x3b0   :  { %1644 = vmatpush1.bf16.msra.mxu1 %v3140_v18  ;;  %v3177_v18 = vld [vmem:[#allocation10 + $0x20] ss:$8 sps:$4 sm:$0xff]  }
 0x3b1   :  { %1645 = vmatprep.subr.bf16.mxu1 %v3145_v63  ;;  %v3182_v63 = vld [vmem:[#allocation10 + $0x34] ss:$8 sps:$4 sm:$0xff]  }
 0x3b4   :  { %1646 = vmatpush1.bf16.msra.mxu1 %v3143_v4  ;;  %v3180_v4 = vld [vmem:[#allocation10 + $0x30] ss:$8 sps:$4 sm:$0xff]  }
 0x3b5   :  { %1647 = vmatprep.subr.bf16.mxu1 %v3148_v5  ;;  %v3185_v5 = vld [vmem:[#allocation10 + $0x44] ss:$8 sps:$4 sm:$0xff]  }
 0x3b8   :  { %1648 = vmatpush1.bf16.msra.mxu1 %v3146_v6  ;;  %v3183_v6 = vld [vmem:[#allocation10 + $0x40] ss:$8 sps:$4 sm:$0xff]  }
 0x3b9   :  { %1649 = vmatprep.subr.bf16.mxu1 %v3151_v11  ;;  %v3188_v11 = vld [vmem:[#allocation10 + $0x54] ss:$8 sps:$4 sm:$0xff]  }
 0x3bc   :  { %1650 = vmatpush1.bf16.msra.mxu1 %v3149_v12  ;;  %v3186_v12 = vld [vmem:[#allocation10 + $0x50] ss:$8 sps:$4 sm:$0xff]  }
 0x3bd   :  { %1651 = vmatprep.subr.bf16.mxu1 %v3154_v15  ;;  %v3191_v15 = vld [vmem:[#allocation10 + $0x64] ss:$8 sps:$4 sm:$0xff]  }
 0x3c0   :  { %1652 = vmatpush1.bf16.msra.mxu1 %v3152_v16  ;;  %v3189_v16 = vld [vmem:[#allocation10 + $0x60] ss:$8 sps:$4 sm:$0xff]  }
 0x3c1   :  { %1906 = vmatprep.subr.bf16.mxu1 %v3173_v61  ;;  %v3215_v61 = vld [vmem:[#allocation10 + $0xe4] ss:$8 sps:$4 sm:$0xff]  }
 0x456   :  { %v1370_v9 = vpop.f32.mrb[0].mxu1 }
 0x457   :  { %v1371_v47 = vadd.f32 %v1370_v9, %v1169_v1  ;;  %v1372_v8 = vpop.f32.mrb[1].mxu1 }
 0x458   :  { %v1373_v14 = vadd.f32 %v1372_v8, %v1173_v0  ;;  %v1374_v13 = vpop.f32.mrb[2].mxu1 }
 0x459   :  { %v3862_v48 = vmax.f32 %v1371_v47, 0.0  ;;  %v1375_v19 = vadd.f32 %v1374_v13, %v1169_v1  ;;  %v1376_v32 = vpop.f32.mrb[3].mxu1 }
 0x45a   :  { %v3864_v49 = vmax.f32 %v1373_v14, 0.0  ;;  %v1377_v3 = vadd.f32 %v1376_v32, %v1173_v0 }
 0x45b   :  { %v3866_v50 = vmax.f32 %v1375_v19, 0.0  ;;  %v1416_v51 = vmul.f32 %v3862_v48, %v3862_v48 }
 0x45c   :  { %v3870_v52 = vmax.f32 %v1377_v3, 0.0  ;;  %v1417_v53 = vmul.f32 %v3864_v49, %v3864_v49 }
 0x45d   :  { %v1418_v54 = vmul.f32 %v3866_v50, %v3866_v50 }
 0x45e   :  { %v1420_v55 = vadd.f32 %v1417_v53, %v1416_v51  ;;  %v1419_v56 = vmul.f32 %v3870_v52, %v3870_v52 }
 0x460   :  { %1421 = vadd.xlane.f32.xlu0 %v1420_v55  ;;  %v1423_v57 = vadd.f32 %v1419_v56, %v1418_v54 }
 0x462   :  { %1424 = vadd.xlane.f32.xlu1 %v1423_v57 }
 0x4ed   :  { %v1422_v30 = vpop.xlane.xlu0 %1421 }
 0x4ee   :  { %3267 = vrsqrt.f32 %v1422_v30  ;;  %vm1428_vm8 = vcmp.eq.f32.partialorder %v1422_v30, inf  ;;  %v1431_v36 = vand.u32 2147483648, %v1422_v30  ;;  %vm1430_vm9 = vcmp.eq.f32.partialorder %v1422_v30, 0.0 }
 0x4ef   :  { %v1425_v31 = vpop.xlane.xlu1 %1424 }
 0x4f0   :  { %3269 = vrsqrt.f32 %v1425_v31  ;;  %vm1435_vm10 = vcmp.eq.f32.partialorder %v1425_v31, inf  ;;  %v1438_v40 = vand.u32 2147483648, %v1425_v31  ;;  %vm1437_vm11 = vcmp.eq.f32.partialorder %v1425_v31, 0.0 }
 0x4f8   :  { %v3268_v33 = vpop.eup %3267 }
 0x4f9   :  { %v1427_v34 = vmul.f32 %v3268_v33, %v1422_v30 }
 0x4fa   :  { %v3270_v35 = vpop.eup %3269 }
 0x4fb   :  { %v1429_v37 = vsel %vm1428_vm8, %v1422_v30, %v1427_v34  ;;  %v1434_v38 = vmul.f32 %v3270_v35, %v1425_v31 }
 0x4fc   :  { %v1432_v39 = vsel %vm1430_vm9, %v1431_v36, %v1429_v37 }
 0x4fd   :  { %v1440_v41 = vadd.f32 0.02, %v1432_v39  ;;  %v1953_v42 = vadd.f32 0.01, %v1432_v39  ;;  %v1436_v44 = vsel %vm1435_vm10, %v1425_v31, %v1434_v38 }
 0x4fe   :  { %v1439_v45 = vsel %vm1437_vm11, %v1438_v40, %v1436_v44 }
 0x4ff   :  { %3271 = vrcp.f32 %v1440_v41  ;;  %v1441_v46 = vadd.f32 0.02, %v1439_v45  ;;  %v1954_v1 = vadd.f32 0.01, %v1439_v45 }
 0x500   :  { %3273 = vrcp.f32 %v1953_v42 }
 0x501   :  { %3275 = vrcp.f32 %v1441_v46 }
 0x502   :  { %3277 = vrcp.f32 %v1954_v1 }
 0x509   :  { %v3272_v0 = vpop.eup %3271 }
 0x50a   :  { %v3274_v9 = vpop.eup %3273  ;;  %v1445_v14 = vmul.f32 %v3272_v0, %v3864_v49  ;;  %v1444_v19 = vmul.f32 %v3272_v0, %v3862_v48 }
 0x50b   :  { %v3276_v47 = vpop.eup %3275  ;;  %v3883_v3 = vmul.f32 %v3274_v9, %v3864_v49  ;;  %v3892_v56 = vmul.f32 %v3274_v9, %v3862_v48  ;;  %v3166_v49 = vld [vmem:[#allocation13 + $0x28] sm:$0xff]  }
 0x50c   :  { %v3278_v8 = vpop.eup %3277  ;;  %v1447_v13 = vmul.f32 %v3276_v47, %v3870_v52  ;;  %v1446_v32 = vmul.f32 %v3276_v47, %v3866_v50  ;;  %2826 = vmatpush3.bf16.msra.mxu0 %v3166_v49  ;;  %v3171_v48 = vld [vmem:[#allocation10] ss:$8 sps:$4 sm:$0xff]   ;;  %v3206_v49 = vld [vmem:[#allocation10 + $0xb4] ss:$8 sps:$4 sm:$0xff]  }
 0x50d   :  { %v3886_v51 = vmul.f32 %v3278_v8, %v3866_v50  ;;  %v3889_v53 = vmul.f32 %v3278_v8, %v3870_v52  ;;  %v3167_v50 = vld [vmem:[#allocation13 + $0x70] sm:$0xff]   ;;  %v3169_v52 = vld [vmem:[#allocation13 + $0x78] sm:$0xff]   ;;  %v1961_v40 = vmul.f32 %v3892_v56, %v3892_v56  ;;  %v1962_v45 = vmul.f32 %v3883_v3, %v3883_v3 }
 0x50e   :  { %v1449_v54 = vpack.c.bf16 %v1447_v13, %v1445_v14  ;;  %v1448_v55 = vpack.c.bf16 %v1446_v32, %v1444_v19  ;;  %2827 = vmatprep.subr.bf16.mxu0 %v3167_v50  ;;  %v3197_v14 = vld [vmem:[#allocation10 + $0x84] ss:$8 sps:$4 sm:$0xff]   ;;  %v3195_v13 = vld [vmem:[#allocation10 + $0x80] ss:$8 sps:$4 sm:$0xff]   ;;  %v3200_v19 = vld [vmem:[#allocation10 + $0x94] ss:$8 sps:$4 sm:$0xff]  }
 0x50f   :  { %v2086_v57 = vpack.c.bf16 %v3889_v53, %v3883_v3  ;;  %v2085_v58 = vpack.c.bf16 %v3886_v51, %v3892_v56  ;;  %v1963_v0 = vmul.f32 %v3886_v51, %v3886_v51  ;;  %v1964_v9 = vmul.f32 %v3889_v53, %v3889_v53  ;;  %v3198_v32 = vld [vmem:[#allocation10 + $0x90] ss:$8 sps:$4 sm:$0xff]  }
 0x510   :  { %1653 = vmatprep.mubr.bf16.mxu1 %v1449_v54  ;;  %2828 = vmatpush3.bf16.msra.mxu0 %v3168_v59  ;;  %v1965_v47 = vadd.f32 %v1962_v45, %v1961_v40  ;;  %v3203_v54 = vld [vmem:[#allocation10 + $0xa4] ss:$8 sps:$4 sm:$0xff]   ;;  %v3204_v50 = vld [vmem:[#allocation10 + $0xb0] ss:$8 sps:$4 sm:$0xff]  }
 0x511   :  { %1654 = vmatmul.mubr.bf16.vlgmr.msra.gmra.mrb[4].mxu1 %v1448_v55  ;;  %2829 = vmatprep.subr.bf16.mxu0 %v3169_v52  ;;  %v1968_v8 = vadd.f32 %v1964_v9, %v1963_v0  ;;  %v3201_v55 = vld [vmem:[#allocation10 + $0xa0] ss:$8 sps:$4 sm:$0xff]   ;;  %v3209_v59 = vld [vmem:[#allocation10 + $0xc4] ss:$8 sps:$4 sm:$0xff]   ;;  %v3247_v3 = vld [vmem:[#allocation11 + $0x70] sm:$0xff]  }
 0x512   :  { %1907 = vmatpush1.bf16.msra.mxu1 %v3171_v48  ;;  %v3207_v52 = vld [vmem:[#allocation10 + $0xc0] ss:$8 sps:$4 sm:$0xff]   ;;  %v3210_v48 = vld [vmem:[#allocation10 + $0xd0] ss:$8 sps:$4 sm:$0xff]  }
 0x513   :  { %1908 = vmatprep.subr.bf16.mxu1 %v3176_v62  ;;  %v3213_v62 = vld [vmem:[#allocation10 + $0xe0] ss:$8 sps:$4 sm:$0xff]   ;;  %v3248_v53 = vld [vmem:[#allocation11 + $0x30] sm:$0xff]  }
 0x514   :  { %2830 = vmatpush3.bf16.msra.mxu0 %v3170_v60  ;;  %v3212_v60 = vld [vmem:[#allocation10 + $0xd4] ss:$8 sps:$4 sm:$0xff]   ;;  %v3222_v40 = vld [vmem:[#allocation14 + $0x8] sm:$0xff]  }
 0x515   :  { %v3230_v45 = vld [vmem:[#allocation14 + $0x28] sm:$0xff]  }
 0x516   :  { %1909 = vmatpush1.bf16.msra.mxu1 %v3174_v43  ;;  %v3218_v43 = vld [vmem:[#allocation10 + $0xf4] ss:$8 sps:$4 sm:$0xff]  }
 0x517   :  { %1910 = vmatprep.subr.bf16.mxu1 %v3179_v2  ;;  %v3216_v2 = vld [vmem:[#allocation10 + $0xf0] ss:$8 sps:$4 sm:$0xff]  }
 0x51a   :  { %1911 = vmatpush1.bf16.msra.mxu1 %v3177_v18  ;;  %v3219_v18 = vld [vmem:[#allocation14 + $0x40] sm:$0xff]  }
 0x51b   :  { %1912 = vmatprep.subr.bf16.mxu1 %v3182_v63 }
 0x51e   :  { %1913 = vmatpush1.bf16.msra.mxu1 %v3180_v4 }
 0x51f   :  { %1914 = vmatprep.subr.bf16.mxu1 %v3185_v5 }
 0x522   :  { %1915 = vmatpush1.bf16.msra.mxu1 %v3183_v6 }
 0x523   :  { %1916 = vmatprep.subr.bf16.mxu1 %v3188_v11 }
 0x526   :  { %1917 = vmatpush1.bf16.msra.mxu1 %v3186_v12 }
 0x527   :  { %1918 = vmatprep.subr.bf16.mxu1 %v3191_v15 }
 0x52a   :  { %1919 = vmatpush1.bf16.msra.mxu1 %v3189_v16 }
 0x52b   :  { %1920 = vmatprep.subr.bf16.mxu1 %v3194_v20 }
 0x52e   :  { %1921 = vmatpush1.bf16.msra.mxu1 %v3192_v21 }
 0x52f   :  { %1922 = vmatprep.subr.bf16.mxu1 %v3197_v14  ;;  %v3231_v14 = vld [vmem:[#allocation14 + $0x70] sm:$0xff]  }
 0x532   :  { %1923 = vmatpush1.bf16.msra.mxu1 %v3195_v13  ;;  %v3232_v13 = vld [vmem:[#allocation14 + $0x30] sm:$0xff]  }
 0x533   :  { %1924 = vmatprep.subr.bf16.mxu1 %v3200_v19  ;;  %v3233_v19 = vld [vmem:[#allocation14 + $0x78] sm:$0xff]  }
 0x536   :  { %1925 = vmatpush1.bf16.msra.mxu1 %v3198_v32  ;;  %v3234_v32 = vld [vmem:[#allocation14 + $0x38] sm:$0xff]  }
 0x537   :  { %1926 = vmatprep.subr.bf16.mxu1 %v3203_v54  ;;  %v3235_v54 = vld [vmem:[#allocation11 + $0x40] sm:$0xff]  }
 0x53a   :  { %1927 = vmatpush1.bf16.msra.mxu1 %v3201_v55  ;;  %v1700_v55 = vld [vmem:[%s3978_s8] sm:$0x3] }
 0x53b   :  { %1928 = vmatprep.subr.bf16.mxu1 %v3206_v49  ;;  %v1739_v49 = vrot.slane %v1700_v55, %v3828_v27  ;;  %v3238_v27 = vld [vmem:[#allocation11 + $0x8] sm:$0xff]  }
 0x53e   :  { %1929 = vmatpush1.bf16.msra.mxu1 %v3204_v50  ;;  %v1743_v50 = vrot.slane %v1700_v55, %v3833_v29  ;;  %v3239_v29 = vld [vmem:[#allocation11 + $0x50] sm:$0xff]  }
 0x53f   :  { %1930 = vmatprep.subr.bf16.mxu1 %v3209_v59 }
 0x542   :  { %1931 = vmatpush1.bf16.msra.mxu1 %v3207_v52 }
 0x543   :  { %1932 = vmatprep.subr.bf16.mxu1 %v3212_v60 }
 0x546   :  { %1933 = vmatpush1.bf16.msra.mxu1 %v3210_v48 }
 0x547   :  { %1934 = vmatprep.subr.bf16.mxu1 %v3215_v61 }
 0x54a   :  { %1935 = vmatpush1.bf16.msra.mxu1 %v3213_v62 }
 0x54b   :  { %1936 = vmatprep.subr.bf16.mxu1 %v3218_v43 }
 0x54e   :  { %1937 = vmatpush1.bf16.msra.mxu1 %v3216_v2 }
 0x54f   :  { %2793 = vmatprep.subr.bf16.mxu1 %v3219_v18 }
 0x5e4   :  { %v1655_v7 = vpop.f32.mrb[4].mxu1 }
 0x5e5   :  { %v1656_v17 = vadd.f32 %v1655_v7, %v1454_v23  ;;  %v1657_v24 = vpop.f32.mrb[5].mxu1 }
 0x5e6   :  { %v1658_v25 = vadd.f32 %v1657_v24, %v1458_v10  ;;  %v1659_v26 = vpop.f32.mrb[6].mxu1 }
 0x5e7   :  { %v3903_v28 = vmax.f32 %v1656_v17, 0.0  ;;  %v1660_v30 = vadd.f32 %v1659_v26, %v1454_v23  ;;  %v1661_v31 = vpop.f32.mrb[7].mxu1 }
 0x5e8   :  { %v3905_v33 = vmax.f32 %v1658_v25, 0.0  ;;  %v1662_v34 = vadd.f32 %v1661_v31, %v1458_v10 }
 0x5e9   :  { %v3907_v35 = vmax.f32 %v1660_v30, 0.0  ;;  %v1701_v36 = vmul.f32 %v3903_v28, %v3903_v28 }
 0x5ea   :  { %v3911_v37 = vmax.f32 %v1662_v34, 0.0  ;;  %v1702_v38 = vmul.f32 %v3905_v33, %v3905_v33 }
 0x5eb   :  { %v1703_v39 = vmul.f32 %v3907_v35, %v3907_v35  ;;  %v2087_v46 = vpack.c.bf16 %v3907_v35, %v3903_v28 }
 0x5ec   :  { %v2088_v41 = vpack.c.bf16 %v3911_v37, %v3905_v33  ;;  %v1705_v42 = vadd.f32 %v1702_v38, %v1701_v36  ;;  %v1704_v44 = vmul.f32 %v3911_v37, %v3911_v37  ;;  %v3220_v38 = vld [vmem:[#allocation14] sm:$0xff]  }
 0x5ee   :  { %2356 = vmatprep.mubr.bf16.mxu0 %v2088_v41  ;;  %1706 = vadd.xlane.f32.xlu0 %v1705_v42  ;;  %v1708_v1 = vadd.f32 %v1704_v44, %v1703_v39  ;;  %v3221_v39 = vld [vmem:[#allocation14 + $0x48] sm:$0xff]   ;;  %v3223_v41 = vld [vmem:[#allocation14 + $0x50] sm:$0xff]  }
 0x5ef   :  { %2357 = vmatmul.mubr.bf16.vlgmr.msra.gmra.mrb[4].mxu0 %v2087_v46  ;;  %v3224_v42 = vld [vmem:[#allocation14 + $0x10] sm:$0xff]   ;;  %v3229_v44 = vld [vmem:[#allocation14 + $0x68] sm:$0xff]  }
 0x5f0   :  { %1709 = vadd.xlane.f32.xlu1 %v1708_v1 }
 0x5f2   :  { %1966 = vadd.xlane.f32.xlu0 %v1965_v47 }
 0x5f4   :  { %1969 = vadd.xlane.f32.xlu1 %v1968_v8 }
 0x67b   :  { %v1707_v63 = vpop.xlane.xlu0 %1706 }
 0x67c   :  { %3279 = vrsqrt.f32 %v1707_v63  ;;  %vm1713_vm12 = vcmp.eq.f32.partialorder %v1707_v63, inf  ;;  %v1716_v12 = vand.u32 2147483648, %v1707_v63  ;;  %vm1715_vm13 = vcmp.eq.f32.partialorder %v1707_v63, 0.0 }
 0x67d   :  { %v1710_v4 = vpop.xlane.xlu1 %1709 }
 0x67e   :  { %3281 = vrsqrt.f32 %v1710_v4  ;;  %vm1720_vm14 = vcmp.eq.f32.partialorder %v1710_v4, inf  ;;  %v1723_v21 = vand.u32 2147483648, %v1710_v4  ;;  %vm1722_vm15 = vcmp.eq.f32.partialorder %v1710_v4, 0.0 }
 0x686   :  { %v3280_v5 = vpop.eup %3279 }
 0x687   :  { %v1712_v6 = vmul.f32 %v3280_v5, %v1707_v63 }
 0x688   :  { %v3282_v11 = vpop.eup %3281 }
 0x689   :  { %v1714_v15 = vsel %vm1713_vm12, %v1707_v63, %v1712_v6  ;;  %v1719_v16 = vmul.f32 %v3282_v11, %v1710_v4 }
 0x68a   :  { %v1717_v20 = vsel %vm1715_vm13, %v1716_v12, %v1714_v15  ;;  %v3236_v12 = vld [vmem:[#allocation11] sm:$0xff]   ;;  %v3237_v15 = vld [vmem:[#allocation11 + $0x48] sm:$0xff]  }
 0x68b   :  { %v1725_v22 = vadd.f32 0.02, %v1717_v20  ;;  %v1721_v23 = vsel %vm1720_vm14, %v1710_v4, %v1719_v16  ;;  %v3240_v16 = vld [vmem:[#allocation11 + $0x10] sm:$0xff]   ;;  %v3241_v20 = vld [vmem:[#allocation11 + $0x58] sm:$0xff]  }
 0x68c   :  { %v1724_v10 = vsel %vm1722_vm15, %v1723_v21, %v1721_v23  ;;  %v3242_v21 = vld [vmem:[#allocation11 + $0x18] sm:$0xff]   ;;  %v3244_v23 = vld [vmem:[#allocation11 + $0x20] sm:$0xff]  }
 0x68d   :  { %3283 = vrcp.f32 %v1725_v22  ;;  %v1726_v7 = vadd.f32 0.02, %v1724_v10  ;;  %v3243_v22 = vld [vmem:[#allocation11 + $0x60] sm:$0xff]   ;;  %v3245_v10 = vld [vmem:[#allocation11 + $0x68] sm:$0xff]  }
 0x68f   :  { %3285 = vrcp.f32 %v1726_v7  ;;  %v3246_v7 = vld [vmem:[#allocation11 + $0x28] sm:$0xff]  }
 0x697   :  { %v3284_v17 = vpop.eup %3283 }
 0x698   :  { %v1730_v25 = vmul.f32 %v3284_v17, %v3905_v33  ;;  %v1729_v30 = vmul.f32 %v3284_v17, %v3903_v28  ;;  %v3225_v33 = vld [vmem:[#allocation14 + $0x58] sm:$0xff]   ;;  %v3227_v28 = vld [vmem:[#allocation14 + $0x60] sm:$0xff]  }
 0x699   :  { %v3286_v24 = vpop.eup %3285  ;;  %v3250_v17 = vld [vmem:[#allocation11 + $0x38] sm:$0xff]  }
 0x69a   :  { %v1732_v26 = vmul.f32 %v3286_v24, %v3911_v37  ;;  %v1731_v31 = vmul.f32 %v3286_v24, %v3907_v35  ;;  %v3226_v37 = vld [vmem:[#allocation14 + $0x18] sm:$0xff]   ;;  %v3228_v35 = vld [vmem:[#allocation14 + $0x20] sm:$0xff]   ;;  %v1967_v24 = vpop.xlane.xlu0 %1966 }
 0x69b   :  { %3287 = vrsqrt.f32 %v1967_v24  ;;  %vm1973_vm0 = vcmp.eq.f32.partialorder %v1967_v24, inf  ;;  %v1976_v56 = vand.u32 2147483648, %v1967_v24  ;;  %vm1975_vm2 = vcmp.eq.f32.partialorder %v1967_v24, 0.0 }
 0x69c   :  { %v1734_v34 = vpack.c.bf16 %v1732_v26, %v1730_v25  ;;  %v1733_v36 = vpack.c.bf16 %v1731_v31, %v1729_v30  ;;  %v1970_v25 = vpop.xlane.xlu1 %1969 }
 0x69d   :  { %3289 = vrsqrt.f32 %v1970_v25  ;;  %vm1980_vm1 = vcmp.eq.f32.partialorder %v1970_v25, inf  ;;  %vm1982_vm3 = vcmp.eq.f32.partialorder %v1970_v25, 0.0 }
 0x69e   :  { %1938 = vmatprep.mubr.bf16.mxu1 %v1734_v34 }
 0x69f   :  { %1939 = vmatmul.mubr.bf16.vlgmr.msra.gmra.mrb[8].mxu1 %v1733_v36 }
 0x6a0   :  { %2794 = vmatpush3.bf16.msra.mxu1 %v3220_v38 }
 0x6a1   :  { %2795 = vmatprep.subr.bf16.mxu1 %v3221_v39 }
 0x6a4   :  { %2796 = vmatpush3.bf16.msra.mxu1 %v3222_v40 }
 0x6a5   :  { %2797 = vmatprep.subr.bf16.mxu1 %v3223_v41  ;;  %v3288_v40 = vpop.eup %3287 }
 0x6a8   :  { %2798 = vmatpush3.bf16.msra.mxu1 %v3224_v42  ;;  %v3290_v42 = vpop.eup %3289 }
 0x6a9   :  { %2799 = vmatprep.subr.bf16.mxu1 %v3225_v33  ;;  %v1972_v33 = vmul.f32 %v3288_v40, %v1967_v24 }
 0x6ab   :  { %v1974_v51 = vsel %vm1973_vm0, %v1967_v24, %v1972_v33 }
 0x6ac   :  { %2800 = vmatpush3.bf16.msra.mxu1 %v3226_v37  ;;  %v1979_v37 = vmul.f32 %v3290_v42, %v1970_v25 }
 0x6ad   :  { %2801 = vmatprep.subr.bf16.mxu1 %v3227_v28  ;;  %v1977_v28 = vsel %vm1975_vm2, %v1976_v56, %v1974_v51 }
 0x6b0   :  { %2802 = vmatpush3.bf16.msra.mxu1 %v3228_v35  ;;  %v1983_v35 = vand.u32 2147483648, %v1970_v25 }
 0x6b1   :  { %2803 = vmatprep.subr.bf16.mxu1 %v3229_v44 }
 0x6b4   :  { %2804 = vmatpush3.bf16.msra.mxu1 %v3230_v45  ;;  %v1985_v45 = vadd.f32 0.01, %v1977_v28 }
 0x6b5   :  { %2805 = vmatprep.subr.bf16.mxu1 %v3231_v14 }
 0x6b6   :  { %3291 = vrcp.f32 %v1985_v45 }
 0x6b8   :  { %2806 = vmatpush3.bf16.msra.mxu1 %v3232_v13 }
 0x6b9   :  { %2807 = vmatprep.subr.bf16.mxu1 %v3233_v19  ;;  %v2792_v19 = vld [vmem:[%s3982_s12] ss:$0 sm:$0xff] }
 0x6bc   :  { %2808 = vmatpush3.bf16.msra.mxu1 %v3234_v32 }
 0x6bd   :  { %2837 = vmatprep.subr.bf16.mxu1 %v3235_v54 }
 0x6c2   :  { %v2831_v46 = vpop.f32.mrb[4].mxu0 }
 0x6c3   :  { %v2832_v1 = vpop.f32.mrb[5].mxu0 }
 0x6c4   :  { %v3935_v0 = vadd.f32 %v2832_v1, %v2831_v46  ;;  %v2834_v9 = vpop.f32.mrb[6].mxu0 }
 0x6c5   :  { %v2835_v47 = vpop.f32.mrb[7].mxu0 }
 0x6c6   :  { %v3937_v8 = vadd.f32 %v2835_v47, %v2834_v9 }
 0x772   :  { %v1940_v59 = vpop.f32.mrb[8].mxu1 }
 0x773   :  { %v1941_v52 = vadd.f32 %v1940_v59, %v1739_v49  ;;  %v1942_v60 = vpop.f32.mrb[9].mxu1 }
 0x774   :  { %v1943_v48 = vadd.f32 %v1942_v60, %v1743_v50  ;;  %v1944_v61 = vpop.f32.mrb[10].mxu1 }
 0x775   :  { %v1945_v62 = vadd.f32 %v1944_v61, %v1739_v49  ;;  %v1946_v43 = vpop.f32.mrb[11].mxu1  ;;  %v1949_v18 = vmax.f32 %v1941_v52, 0.0 }
 0x776   :  { %v1947_v2 = vadd.f32 %v1946_v43, %v1743_v50  ;;  %v1950_v4 = vmax.f32 %v1943_v48, 0.0 }
 0x777   :  { %v1951_v63 = vmax.f32 %v1945_v62, 0.0 }
 0x778   :  { %v1952_v5 = vmax.f32 %v1947_v2, 0.0 }
 0x779   :  { %v2089_v6 = vpack.c.bf16 %v1951_v63, %v1949_v18 }
 0x77a   :  { %v2090_v11 = vpack.c.bf16 %v1952_v5, %v1950_v4 }
 0x77c   :  { %2219 = vmatprep.mubr.bf16.mxu1 %v2090_v11 }
 0x77d   :  { %2220 = vmatmul.mubr.bf16.vlgmr.msra.gmra.mrb[12].mxu1 %v2089_v6 }
 0x77e   :  { %2838 = vmatpush3.bf16.msra.mxu1 %v3236_v12  ;;  %2495 = vmatprep.mubr.bf16.mxu1 %v2086_v57  ;;  %v3249_v57 = vld [vmem:[#allocation11 + $0x78] sm:$0xff]  }
 0x77f   :  { %2839 = vmatprep.subr.bf16.mxu1 %v3237_v15 }
 0x782   :  { %2840 = vmatpush3.bf16.msra.mxu1 %v3238_v27 }
 0x783   :  { %2841 = vmatprep.subr.bf16.mxu1 %v3239_v29 }
 0x786   :  { %2842 = vmatpush3.bf16.msra.mxu1 %v3240_v16 }
 0x787   :  { %2843 = vmatprep.subr.bf16.mxu1 %v3241_v20 }
 0x78a   :  { %2844 = vmatpush3.bf16.msra.mxu1 %v3242_v21 }
 0x78b   :  { %2845 = vmatprep.subr.bf16.mxu1 %v3243_v22 }
 0x78e   :  { %2846 = vmatpush3.bf16.msra.mxu1 %v3244_v23 }
 0x78f   :  { %2847 = vmatprep.subr.bf16.mxu1 %v3245_v10 }
 0x792   :  { %2848 = vmatpush3.bf16.msra.mxu1 %v3246_v7 }
 0x793   :  { %2849 = vmatprep.subr.bf16.mxu1 %v3247_v3 }
 0x796   :  { %2850 = vmatpush3.bf16.msra.mxu1 %v3248_v53 }
 0x797   :  { %2851 = vmatprep.subr.bf16.mxu1 %v3249_v57 }
 0x79a   :  { %2852 = vmatpush3.bf16.msra.mxu1 %v3250_v17 }
 0x79d   :  { %2496 = vmatmul.mubr.bf16.vlgmr.msra.gmra.mrb[16].mxu1 %v2085_v58  ;;  %v1981_v58 = vsel %vm1980_vm1, %v1970_v25, %v1979_v37 }
 0x79e   :  { %v1984_v44 = vsel %vm1982_vm3, %v1983_v35, %v1981_v58 }
 0x79f   :  { %v1986_v46 = vadd.f32 0.01, %v1984_v44 }
 0x7a1   :  { %3293 = vrcp.f32 %v1986_v46 }
 0x850   :  { %v2809_v26 = vpop.f32.mrb[12].mxu1 }
 0x851   :  { %v2810_v30 = vpop.f32.mrb[13].mxu1 }
 0x852   :  { %v2811_v31 = vadd.f32 %v2810_v30, %v2809_v26  ;;  %v2812_v34 = vpop.f32.mrb[14].mxu1 }
 0x853   :  { %v2813_v36 = vpop.f32.mrb[15].mxu1 }
 0x854   :  { %v2359_v38 = vadd.f32 %v3935_v0, %v2811_v31  ;;  %v2814_v39 = vadd.f32 %v2813_v36, %v2812_v34  ;;  %v3292_v0 = vpop.eup %3291 }
 0x855   :  { %v3294_v13 = vpop.eup %3293 }
 0x856   :  { %v2362_v41 = vadd.f32 %v3937_v8, %v2814_v39  ;;  %v2365_v47 = vmul.f32 %v3292_v0, %v2359_v38 }
 0x858   :  { %v2366_v55 = vmul.f32 %v3294_v13, %v2362_v41 }
 0x870   :  { %v2853_v1 = vpop.f32.mrb[16].mxu1 }
 0x871   :  { %v2854_v9 = vpop.f32.mrb[17].mxu1 }
 0x872   :  { %v2855_v8 = vadd.f32 %v2854_v9, %v2853_v1  ;;  %v2856_v14 = vpop.f32.mrb[18].mxu1 }
 0x873   :  { %v2857_v32 = vpop.f32.mrb[19].mxu1 }
 0x874   :  { %v2498_v54 = vadd.f32 %v2855_v8, %v2365_v47  ;;  %v2858_v49 = vadd.f32 %v2857_v32, %v2856_v14 }
 0x876   :  { %v2511_v50 = vadd.f32 %v2792_v19, %v2498_v54  ;;  %v2501_v59 = vadd.f32 %v2858_v49, %v2366_v55 }
 0x878   :  { %2513 = vst [vmem:[#allocation16] sm:$0xff] %v2511_v50  ;;  %v2512_v52 = vadd.f32 %v2792_v19, %v2501_v59 }
 0x87a   :  { %2514 = vst [vmem:[#allocation16 + $0x8] sm:$0xff] %v2512_v52 }
 0x87b   :  { %3482 = shalt.err (!%p3479_p12)
}
 0x87c   :  { %s3483_s7 = scalar_lea.hbm %s3983_s13, 256 }
 0x87d   :  { %p3484_p13 = scmp.ne.s32.totalorder %s3983_s13, %s3483_s7  ;;  %p3487_p0 = scmp.lt.u32.totalorder %s3483_s7, %s3983_s13 }
 0x87f   :  { %p3489_p1 = pnand %p3487_p0, %p3484_p13 }
 0x881   :  { %3492 = shalt.err (!%p3489_p1)
}
 0x882   :  { %2526 = dma.vmem_to_hbm [thread:$0]  %s2521_s29, 256, %s3983_s13, [#allocation4], %s3506_s18, %s3506_s18, %s3507_s19  }
 0x883   :  { %3503 = dma.done.wait [#allocation4], 256  }
 0x884   :  { %3504 = vsyncadd [#allocation4], 4294967040 }
 0x885   :  { %2530 = vsyncpa [#allocation3], 1 }
 0x886   :  { %2531 = vsyncpa [#allocation6], 1 }
 0x887   :  { %2532 = vsyncpa [#allocation9], 1 }
 0x888   :  { %2533 = vsyncpa [#allocation12], 1 }
 0x889   :  { %2534 = vsyncpa [#allocation15], 1 }
 0x88a   :  { %2535 = vsyncpa [#allocation4], 1 }

</bundles_post_ra>
